<compile_context>
chip_gen: v6e
topology: v6e:2x2x1
jax: 0.10.0
libtpu: 0.0.40
codegen_flags: <defaults>
</compile_context>

<pallas_src>
import functools

import jax
import jax.numpy as jnp
from jax.experimental import pallas as pl
from jax.experimental.pallas import tpu as pltpu

EPS = 1e-5                       # nn.BatchNorm2d default eps
MATMUL_DTYPE = jnp.bfloat16      # MXU operand dtype (accumulation stays f32)
VMEM_LIMIT = 48 * 1024 * 1024    # below v7x's 64 MiB physical, above defaults


# ----------------------------- Pallas kernels ------------------------------

def _conv_bn_stats_kernel(x_ref, w_ref, scl_ref, sft_ref, out_ref, stats_ref,
                          pad_ref, patch_ref, *, H, W, th, fuse_in_bn_relu):
    """One (batch, row-tile) step:
       [optional fused BN+ReLU of the previous block] -> PolarPad ->
       Conv3x3 as a single K=9*Cin matmul -> partial BN statistics.

    x_ref     (1, H, W, Cin)    full image for this batch element; its
                                index_map ignores the row-tile axis so the
                                block stays resident (one DMA per image).
    w_ref     (9*Cin, Cout)     conv weights with the taps folded into K.
    scl_ref   (1, Cin)          previous block's fused BN scale (if fused).
    sft_ref   (1, Cin)          previous block's fused BN shift (if fused).
    out_ref   (1, th, W, Cout)  raw conv output tile (f32).
    stats_ref (1, 1, 2, Cout)   per-tile [sum, sum_of_squares] of the conv out.
    pad_ref   (th+2, W+2, Cin)  VMEM scratch: polar-padded input tile.
    patch_ref (th*W, 9*Cin)     VMEM scratch: im2col slab (bounds vreg pressure).
    """
    t = pl.program_id(1)
    n_t = pl.num_programs(1)
    Cin = x_ref.shape[3]
    Cout = w_ref.shape[1]

    r0 = pl.multiple_of(t * th, th)
    # Circular halo rows (polar padding wraps on H).
    top_i = jnp.where(t == 0, H - 1, r0 - 1)
    bot_i = jnp.where(t == n_t - 1, 0, r0 + th)

    def _prep(v):
        v = v.astype(jnp.float32)
        if fuse_in_bn_relu:
            # Previous ConvBlock's BatchNorm + ReLU, fused into this read
            # (saves a full HBM write+read of the normalized activation).
            v = jnp.maximum(v * scl_ref[0, :] + sft_ref[0, :], 0.0)
        return v

    top = _prep(x_ref[0, pl.ds(top_i, 1), :, :])          # (1,  W, Cin)
    mid = _prep(x_ref[0, pl.ds(r0, th), :, :])            # (th, W, Cin)
    bot = _prep(x_ref[0, pl.ds(bot_i, 1), :, :])          # (1,  W, Cin)

    # Polar pad on W: zero columns (applied after the activation, so the pad
    # really is zero, exactly like F.pad on the activation tensor).
    zero_col = jnp.zeros((th + 2, 1, Cin), jnp.float32)
    pad_ref[:, 0:1, :] = zero_col
    pad_ref[:, W + 1:W + 2, :] = zero_col
    pad_ref[0:1, 1:W + 1, :] = top
    pad_ref[1:th + 1, 1:W + 1, :] = mid
    pad_ref[th + 1:th + 2, 1:W + 1, :] = bot

    # im2col: fold the 3x3 taps into the contraction dim -> one matmul with
    # K = 9*Cin instead of nine MXU-starving K=Cin matmuls.
    for kh in range(3):
        for kw in range(3):
            c0 = (kh * 3 + kw) * Cin
            tap = pad_ref[kh:kh + th, kw:kw + W, :]       # (th, W, Cin)
            patch_ref[:, c0:c0 + Cin] = (
                tap.reshape(th * W, Cin).astype(MATMUL_DTYPE))

    acc = jnp.dot(patch_ref[...], w_ref[...],
                  preferred_element_type=jnp.float32)     # (th*W, Cout) f32

    out_ref[...] = acc.reshape(1, th, W, Cout)

    # Partial BN statistics for this tile. They are reduced in the wrapper,
    # which keeps both grid axes "parallel" (megacore-friendly on v7x).
    stats_ref[0, 0, 0:1, :] = jnp.sum(acc, axis=0, keepdims=True)
    stats_ref[0, 0, 1:2, :] = jnp.sum(acc * acc, axis=0, keepdims=True)


def _bn_relu_kernel(x_ref, scl_ref, sft_ref, o_ref):
    """Final block's BatchNorm (precomputed scale/shift) + ReLU on one tile."""
    y = x_ref[...].astype(jnp.float32) * scl_ref[0, :] + sft_ref[0, :]
    o_ref[...] = jnp.maximum(y, 0.0).astype(o_ref.dtype)


# ------------------------------- JAX glue -----------------------------------

def _pick_tile_h(H, W):
    """Largest proper divisor of H giving <= 512 output rows per grid step
    (keeps im2col slab + accumulator small; for production channel counts this
    is the knob to sweep toward the largest tile that fits VMEM)."""
    for th in range(H // 2, 0, -1):
        if H % th == 0 and th * W <= 512:
            return th
    return H


def _compiler_params():
    return pltpu.CompilerParams(
        dimension_semantics=("parallel", "parallel"),
        vmem_limit_bytes=VMEM_LIMIT)


def _conv_bn_stats(x, w2d, in_scale, in_shift, *, fuse_in, tile_h):
    N, H, W, Cin = x.shape
    Cout = w2d.shape[1]
    T = H // tile_h
    kern = functools.partial(_conv_bn_stats_kernel, H=H, W=W, th=tile_h,
                             fuse_in_bn_relu=fuse_in)
    return pl.pallas_call(
        kern,
        out_shape=(jax.ShapeDtypeStruct((N, H, W, Cout), jnp.float32),
                   jax.ShapeDtypeStruct((N, T, 2, Cout), jnp.float32)),
        grid=(N, T),
        in_specs=[
            # Full image per batch element; index_map ignores t so the block is
            # resident across the row-tile axis (DMA'd once per image).
            pl.BlockSpec((1, H, W, Cin), lambda n, t: (n, 0, 0, 0)),
            pl.BlockSpec((9 * Cin, Cout), lambda n, t: (0, 0)),
            pl.BlockSpec((1, Cin), lambda n, t: (0, 0)),
            pl.BlockSpec((1, Cin), lambda n, t: (0, 0)),
        ],
        out_specs=(
            pl.BlockSpec((1, tile_h, W, Cout), lambda n, t: (n, t, 0, 0)),
            pl.BlockSpec((1, 1, 2, Cout), lambda n, t: (n, t, 0, 0)),
        ),
        scratch_shapes=[
            pltpu.VMEM((tile_h + 2, W + 2, Cin), jnp.float32),   # padded tile
            pltpu.VMEM((tile_h * W, 9 * Cin), MATMUL_DTYPE),     # im2col slab
        ],
        compiler_params=_compiler_params(),
    )(x, w2d, in_scale, in_shift)


def _bn_relu(x, scale, shift, *, tile_h):
    N, H, W, C = x.shape
    T = H // tile_h
    return pl.pallas_call(
        _bn_relu_kernel,
        out_shape=jax.ShapeDtypeStruct((N, H, W, C), jnp.float32),
        grid=(N, T),
        in_specs=[
            pl.BlockSpec((1, tile_h, W, C), lambda n, t: (n, t, 0, 0)),
            pl.BlockSpec((1, C), lambda n, t: (0, 0)),
            pl.BlockSpec((1, C), lambda n, t: (0, 0)),
        ],
        out_specs=pl.BlockSpec((1, tile_h, W, C), lambda n, t: (n, t, 0, 0)),
        compiler_params=_compiler_params(),
    )(x, scale, shift)


def _finalize_bn(pstats, gamma, beta, count):
    """Reduce per-tile partial sums into fused BN scale/shift (tiny XLA work)."""
    s = jnp.sum(pstats, axis=(0, 1))                       # (2, Cout)
    mean = s[0] / count
    var = jnp.maximum(s[1] / count - mean * mean, 0.0)     # biased var (train BN)
    scale = gamma * jax.lax.rsqrt(var + EPS)
    shift = beta - mean * scale
    return (scale.reshape(1, -1).astype(jnp.float32),
            shift.reshape(1, -1).astype(jnp.float32))


def bridge_forward(x_nchw, params):
    """Bridge.forward: two ConvBlocks.  NCHW in, NCHW out (PyTorch convention)."""
    x = jnp.transpose(x_nchw, (0, 2, 3, 1)).astype(jnp.float32)   # NCHW -> NHWC
    N, H, W, _ = x.shape
    tile_h = _pick_tile_h(H, W)
    count = N * H * W

    conv = x
    scale = shift = None
    for i, p in enumerate(params):
        Cin = conv.shape[-1]
        w2d = p["w"].reshape(9 * Cin, -1).astype(MATMUL_DTYPE)    # taps folded into K
        fuse = i > 0
        in_scale = scale if fuse else jnp.ones((1, Cin), jnp.float32)
        in_shift = shift if fuse else jnp.zeros((1, Cin), jnp.float32)
        # NOTE: p["b"] (Conv2d bias) is intentionally not applied in-kernel -
        # a constant per-channel bias is exactly cancelled by the train-mode BN
        # mean subtraction that follows (the reference below keeps it).
        conv, pstats = _conv_bn_stats(conv, w2d, in_scale, in_shift,
                                      fuse_in=fuse, tile_h=tile_h)
        scale, shift = _finalize_bn(pstats, p["gamma"], p["beta"], count)

    out = _bn_relu(conv, scale, shift, tile_h=tile_h)             # last block BN+ReLU
    return jnp.transpose(out, (0, 3, 1, 2))                       # NHWC -> NCHW


# --------------------------- parameter init ---------------------------------

def init_bridge_params(key, in_channels, out_channels):
    params = []
    cin = in_channels
    for _ in range(2):
        kw_, kb_, kg_, kbt_, key = jax.random.split(key, 5)
        fan_in = cin * 9
        w = jax.random.normal(kw_, (3, 3, cin, out_channels), jnp.float32)
        w = w * (1.0 / jnp.sqrt(fan_in))
        b = 0.05 * jax.random.normal(kb_, (out_channels,), jnp.float32)
        gamma = 1.0 + 0.1 * jax.random.normal(kg_, (out_channels,), jnp.float32)
        beta = 0.1 * jax.random.normal(kbt_, (out_channels,), jnp.float32)
        params.append({"w": w, "b": b, "gamma": gamma, "beta": beta})
        cin = out_channels
    return params


# --------------------------- pure-JAX reference ------------------------------

def _ref_polar_pad(x, p):
    # F.pad(x, (p, p, 0, 0)): zero-pad W, then circular wrap on H (NHWC here).
    x = jnp.pad(x, ((0, 0), (0, 0), (p, p), (0, 0)))
    return jnp.concatenate([x[:, -p:], x, x[:, :p]], axis=1)


def _ref_conv_block(x, w, b, gamma, beta):
    N, H, W, Cin = x.shape
    Cout = w.shape[3]
    xp = _ref_polar_pad(x, 1).astype(MATMUL_DTYPE)   # match kernel operand dtype
    wm = w.astype(MATMUL_DTYPE)
    acc = jnp.zeros((N, H, W, Cout), jnp.float32)
    for kh in range(3):
        for kw in range(3):
            acc = acc + jnp.einsum("nhwi,io->nhwo",
                                   xp[:, kh:kh + H, kw:kw + W, :], wm[kh, kw],
                                   preferred_element_type=jnp.float32)
    acc = acc + b                                    # conv bias (cancelled by BN)
    mean = jnp.mean(acc, axis=(0, 1, 2), keepdims=True)
    var = jnp.mean(jnp.square(acc - mean), axis=(0, 1, 2), keepdims=True)
    y = (acc - mean) * jax.lax.rsqrt(var + EPS) * gamma + beta
    return jnp.maximum(y, 0.0)


def _ref_bridge(x_nchw, params):
    x = jnp.transpose(x_nchw, (0, 2, 3, 1))
    for p in params:
        x = _ref_conv_block(x, p["w"], p["b"], p["gamma"], p["beta"])
    return jnp.transpose(x, (0, 3, 1, 2))


# --------------------------------- main --------------------------------------

if __name__ == "__main__":
    key = jax.random.PRNGKey(0)
    kx, kp = jax.random.split(key)

    N, Cin, H, W = 2, 4, 16, 16
    Cout = 8
    x = jax.random.normal(kx, (N, Cin, H, W), jnp.float32)   # NCHW, like PyTorch
    params = init_bridge_params(kp, Cin, Cout)

    out = jax.block_until_ready(jax.jit(bridge_forward)(x, params))
    assert out.shape == (N, Cout, H, W), out.shape

    ref = _ref_bridge(x, params)
    max_err = float(jnp.max(jnp.abs(out - ref)))
    # bf16 matmul operands (f32 accumulation) on both sides; tolerance covers
    # accumulation-order and rare bf16-rounding-boundary differences.
    assert jnp.allclose(out, ref, atol=2e-2, rtol=2e-2), max_err

    print("KERNEL_OK")
</pallas_src>

<mosaic_0001>
module attributes {stable_mosaic.version = 11 : i64} {
  func.func @_conv_bn_stats_kernel(%arg0: i32, %arg1: i32, %arg2: memref<1x16x16x4xf32, #tpu.memory_space<vmem>>, %arg3: memref<36x8xbf16, #tpu.memory_space<vmem>>, %arg4: memref<1x4xf32, #tpu.memory_space<vmem>>, %arg5: memref<1x4xf32, #tpu.memory_space<vmem>>, %arg6: memref<1x8x16x8xf32, #tpu.memory_space<vmem>>, %arg7: memref<1x1x2x8xf32, #tpu.memory_space<vmem>>, %arg8: memref<10x18x4xf32, #tpu.memory_space<vmem>>, %arg9: memref<128x36xbf16, #tpu.memory_space<vmem>>) attributes {dimension_semantics = [#tpu.dimension_semantics<parallel>, #tpu.dimension_semantics<parallel>], iteration_bounds = array<i64: 2, 2>, scalar_prefetch = 0 : i64, scratch_operands = 2 : i64, tpu.core_type = #tpu.core_type<tc>, window_params = [{transform_indices = @transform_0, window_bounds = array<i64: 1, 16, 16, 4>}, {pipeline_mode = #tpu.pipeline_mode<synchronous>, transform_indices = @transform_1, window_bounds = array<i64: 36, 8>}, {pipeline_mode = #tpu.pipeline_mode<synchronous>, transform_indices = @transform_2, window_bounds = array<i64: 1, 4>}, {pipeline_mode = #tpu.pipeline_mode<synchronous>, transform_indices = @transform_3, window_bounds = array<i64: 1, 4>}, {transform_indices = @transform_4, window_bounds = array<i64: 1, 8, 16, 8>}, {transform_indices = @transform_5, window_bounds = array<i64: 1, 1, 2, 8>}]} {
    %c8_i32 = arith.constant 8 : i32
    %0 = arith.muli %arg1, %c8_i32 : i32
    %1 = tpu.assume_multiple %0, 8 : i32
    %c0_i32 = arith.constant 0 : i32
    %2 = arith.cmpi eq, %arg1, %c0_i32 : i32
    %c1_i32 = arith.constant 1 : i32
    %3 = arith.subi %1, %c1_i32 : i32
    %c15_i32 = arith.constant 15 : i32
    %4 = arith.select %2, %c15_i32, %3 : i32
    %c1_i32_0 = arith.constant 1 : i32
    %5 = arith.cmpi eq, %arg1, %c1_i32_0 : i32
    %c8_i32_1 = arith.constant 8 : i32
    %6 = arith.addi %1, %c8_i32_1 : i32
    %c0_i32_2 = arith.constant 0 : i32
    %7 = arith.select %5, %c0_i32_2, %6 : i32
    %c0 = arith.constant 0 : index
    %8 = arith.index_cast %4 : i32 to index
    %c0_3 = arith.constant 0 : index
    %c0_4 = arith.constant 0 : index
    %9 = vector.load %arg2[%c0, %8, %c0_3, %c0_4] : memref<1x16x16x4xf32, #tpu.memory_space<vmem>>, vector<1x1x16x4xf32>
    %10 = vector.shape_cast %9 : vector<1x1x16x4xf32> to vector<1x16x4xf32>
    %c0_5 = arith.constant 0 : index
    %11 = arith.index_cast %1 : i32 to index
    %c0_6 = arith.constant 0 : index
    %c0_7 = arith.constant 0 : index
    %12 = vector.load %arg2[%c0_5, %11, %c0_6, %c0_7] : memref<1x16x16x4xf32, #tpu.memory_space<vmem>>, vector<1x8x16x4xf32>
    %13 = vector.shape_cast %12 : vector<1x8x16x4xf32> to vector<8x16x4xf32>
    %c0_8 = arith.constant 0 : index
    %14 = arith.index_cast %7 : i32 to index
    %c0_9 = arith.constant 0 : index
    %c0_10 = arith.constant 0 : index
    %15 = vector.load %arg2[%c0_8, %14, %c0_9, %c0_10] : memref<1x16x16x4xf32, #tpu.memory_space<vmem>>, vector<1x1x16x4xf32>
    %16 = vector.shape_cast %15 : vector<1x1x16x4xf32> to vector<1x16x4xf32>
    %cst = arith.constant 0.000000e+00 : f32
    %17 = vector.broadcast %cst : f32 to vector<10x1x4xf32>
    %c0_11 = arith.constant 0 : index
    %c0_12 = arith.constant 0 : index
    %c0_13 = arith.constant 0 : index
    %18 = vector.load %arg8[%c0_11, %c0_12, %c0_13] : memref<10x18x4xf32, #tpu.memory_space<vmem>>, vector<10x1x4xf32>
    tpu.vector_store %arg8[%c0_11, %c0_12, %c0_13], %17 {strides = array<i32>} : memref<10x18x4xf32, #tpu.memory_space<vmem>>, vector<10x1x4xf32>,
    %c0_14 = arith.constant 0 : index
    %c17 = arith.constant 17 : index
    %c0_15 = arith.constant 0 : index
    %19 = vector.load %arg8[%c0_14, %c17, %c0_15] : memref<10x18x4xf32, #tpu.memory_space<vmem>>, vector<10x1x4xf32>
    tpu.vector_store %arg8[%c0_14, %c17, %c0_15], %17 {strides = array<i32>} : memref<10x18x4xf32, #tpu.memory_space<vmem>>, vector<10x1x4xf32>,
    %c0_16 = arith.constant 0 : index
    %c1 = arith.constant 1 : index
    %c0_17 = arith.constant 0 : index
    %20 = vector.load %arg8[%c0_16, %c1, %c0_17] : memref<10x18x4xf32, #tpu.memory_space<vmem>>, vector<1x16x4xf32>
    tpu.vector_store %arg8[%c0_16, %c1, %c0_17], %10 {strides = array<i32>} : memref<10x18x4xf32, #tpu.memory_space<vmem>>, vector<1x16x4xf32>,
    %c1_18 = arith.constant 1 : index
    %c1_19 = arith.constant 1 : index
    %c0_20 = arith.constant 0 : index
    %21 = vector.load %arg8[%c1_18, %c1_19, %c0_20] : memref<10x18x4xf32, #tpu.memory_space<vmem>>, vector<8x16x4xf32>
    tpu.vector_store %arg8[%c1_18, %c1_19, %c0_20], %13 {strides = array<i32>} : memref<10x18x4xf32, #tpu.memory_space<vmem>>, vector<8x16x4xf32>,
    %c9 = arith.constant 9 : index
    %c1_21 = arith.constant 1 : index
    %c0_22 = arith.constant 0 : index
    %22 = vector.load %arg8[%c9, %c1_21, %c0_22] : memref<10x18x4xf32, #tpu.memory_space<vmem>>, vector<1x16x4xf32>
    tpu.vector_store %arg8[%c9, %c1_21, %c0_22], %16 {strides = array<i32>} : memref<10x18x4xf32, #tpu.memory_space<vmem>>, vector<1x16x4xf32>,
    %c0_23 = arith.constant 0 : index
    %c0_24 = arith.constant 0 : index
    %c0_25 = arith.constant 0 : index
    %23 = vector.load %arg8[%c0_23, %c0_24, %c0_25] : memref<10x18x4xf32, #tpu.memory_space<vmem>>, vector<8x16x4xf32>
    %24 = vector.shape_cast %23 : vector<8x16x4xf32> to vector<128x4xf32>
    %25 = arith.truncf %24 : vector<128x4xf32> to vector<128x4xbf16>
    %c0_26 = arith.constant 0 : index
    %c0_27 = arith.constant 0 : index
    %26 = vector.load %arg9[%c0_26, %c0_27] : memref<128x36xbf16, #tpu.memory_space<vmem>>, vector<128x4xbf16>
    tpu.vector_store %arg9[%c0_26, %c0_27], %25 {strides = array<i32>} : memref<128x36xbf16, #tpu.memory_space<vmem>>, vector<128x4xbf16>,
    %c0_28 = arith.constant 0 : index
    %c1_29 = arith.constant 1 : index
    %c0_30 = arith.constant 0 : index
    %27 = vector.load %arg8[%c0_28, %c1_29, %c0_30] : memref<10x18x4xf32, #tpu.memory_space<vmem>>, vector<8x16x4xf32>
    %28 = vector.shape_cast %27 : vector<8x16x4xf32> to vector<128x4xf32>
    %29 = arith.truncf %28 : vector<128x4xf32> to vector<128x4xbf16>
    %c0_31 = arith.constant 0 : index
    %c4 = arith.constant 4 : index
    %30 = vector.load %arg9[%c0_31, %c4] : memref<128x36xbf16, #tpu.memory_space<vmem>>, vector<128x4xbf16>
    tpu.vector_store %arg9[%c0_31, %c4], %29 {strides = array<i32>} : memref<128x36xbf16, #tpu.memory_space<vmem>>, vector<128x4xbf16>,
    %c0_32 = arith.constant 0 : index
    %c2 = arith.constant 2 : index
    %c0_33 = arith.constant 0 : index
    %31 = vector.load %arg8[%c0_32, %c2, %c0_33] : memref<10x18x4xf32, #tpu.memory_space<vmem>>, vector<8x16x4xf32>
    %32 = vector.shape_cast %31 : vector<8x16x4xf32> to vector<128x4xf32>
    %33 = arith.truncf %32 : vector<128x4xf32> to vector<128x4xbf16>
    %c0_34 = arith.constant 0 : index
    %c8 = arith.constant 8 : index
    %34 = vector.load %arg9[%c0_34, %c8] : memref<128x36xbf16, #tpu.memory_space<vmem>>, vector<128x4xbf16>
    tpu.vector_store %arg9[%c0_34, %c8], %33 {strides = array<i32>} : memref<128x36xbf16, #tpu.memory_space<vmem>>, vector<128x4xbf16>,
    %c1_35 = arith.constant 1 : index
    %c0_36 = arith.constant 0 : index
    %c0_37 = arith.constant 0 : index
    %35 = vector.load %arg8[%c1_35, %c0_36, %c0_37] : memref<10x18x4xf32, #tpu.memory_space<vmem>>, vector<8x16x4xf32>
    %36 = vector.shape_cast %35 : vector<8x16x4xf32> to vector<128x4xf32>
    %37 = arith.truncf %36 : vector<128x4xf32> to vector<128x4xbf16>
    %c0_38 = arith.constant 0 : index
    %c12 = arith.constant 12 : index
    %38 = vector.load %arg9[%c0_38, %c12] : memref<128x36xbf16, #tpu.memory_space<vmem>>, vector<128x4xbf16>
    tpu.vector_store %arg9[%c0_38, %c12], %37 {strides = array<i32>} : memref<128x36xbf16, #tpu.memory_space<vmem>>, vector<128x4xbf16>,
    %c1_39 = arith.constant 1 : index
    %c1_40 = arith.constant 1 : index
    %c0_41 = arith.constant 0 : index
    %39 = vector.load %arg8[%c1_39, %c1_40, %c0_41] : memref<10x18x4xf32, #tpu.memory_space<vmem>>, vector<8x16x4xf32>
    %40 = vector.shape_cast %39 : vector<8x16x4xf32> to vector<128x4xf32>
    %41 = arith.truncf %40 : vector<128x4xf32> to vector<128x4xbf16>
    %c0_42 = arith.constant 0 : index
    %c16 = arith.constant 16 : index
    %42 = vector.load %arg9[%c0_42, %c16] : memref<128x36xbf16, #tpu.memory_space<vmem>>, vector<128x4xbf16>
    tpu.vector_store %arg9[%c0_42, %c16], %41 {strides = array<i32>} : memref<128x36xbf16, #tpu.memory_space<vmem>>, vector<128x4xbf16>,
    %c1_43 = arith.constant 1 : index
    %c2_44 = arith.constant 2 : index
    %c0_45 = arith.constant 0 : index
    %43 = vector.load %arg8[%c1_43, %c2_44, %c0_45] : memref<10x18x4xf32, #tpu.memory_space<vmem>>, vector<8x16x4xf32>
    %44 = vector.shape_cast %43 : vector<8x16x4xf32> to vector<128x4xf32>
    %45 = arith.truncf %44 : vector<128x4xf32> to vector<128x4xbf16>
    %c0_46 = arith.constant 0 : index
    %c20 = arith.constant 20 : index
    %46 = vector.load %arg9[%c0_46, %c20] : memref<128x36xbf16, #tpu.memory_space<vmem>>, vector<128x4xbf16>
    tpu.vector_store %arg9[%c0_46, %c20], %45 {strides = array<i32>} : memref<128x36xbf16, #tpu.memory_space<vmem>>, vector<128x4xbf16>,
    %c2_47 = arith.constant 2 : index
    %c0_48 = arith.constant 0 : index
    %c0_49 = arith.constant 0 : index
    %47 = vector.load %arg8[%c2_47, %c0_48, %c0_49] : memref<10x18x4xf32, #tpu.memory_space<vmem>>, vector<8x16x4xf32>
    %48 = vector.shape_cast %47 : vector<8x16x4xf32> to vector<128x4xf32>
    %49 = arith.truncf %48 : vector<128x4xf32> to vector<128x4xbf16>
    %c0_50 = arith.constant 0 : index
    %c24 = arith.constant 24 : index
    %50 = vector.load %arg9[%c0_50, %c24] : memref<128x36xbf16, #tpu.memory_space<vmem>>, vector<128x4xbf16>
    tpu.vector_store %arg9[%c0_50, %c24], %49 {strides = array<i32>} : memref<128x36xbf16, #tpu.memory_space<vmem>>, vector<128x4xbf16>,
    %c2_51 = arith.constant 2 : index
    %c1_52 = arith.constant 1 : index
    %c0_53 = arith.constant 0 : index
    %51 = vector.load %arg8[%c2_51, %c1_52, %c0_53] : memref<10x18x4xf32, #tpu.memory_space<vmem>>, vector<8x16x4xf32>
    %52 = vector.shape_cast %51 : vector<8x16x4xf32> to vector<128x4xf32>
    %53 = arith.truncf %52 : vector<128x4xf32> to vector<128x4xbf16>
    %c0_54 = arith.constant 0 : index
    %c28 = arith.constant 28 : index
    %54 = vector.load %arg9[%c0_54, %c28] : memref<128x36xbf16, #tpu.memory_space<vmem>>, vector<128x4xbf16>
    tpu.vector_store %arg9[%c0_54, %c28], %53 {strides = array<i32>} : memref<128x36xbf16, #tpu.memory_space<vmem>>, vector<128x4xbf16>,
    %c2_55 = arith.constant 2 : index
    %c2_56 = arith.constant 2 : index
    %c0_57 = arith.constant 0 : index
    %55 = vector.load %arg8[%c2_55, %c2_56, %c0_57] : memref<10x18x4xf32, #tpu.memory_space<vmem>>, vector<8x16x4xf32>
    %56 = vector.shape_cast %55 : vector<8x16x4xf32> to vector<128x4xf32>
    %57 = arith.truncf %56 : vector<128x4xf32> to vector<128x4xbf16>
    %c0_58 = arith.constant 0 : index
    %c32 = arith.constant 32 : index
    %58 = vector.load %arg9[%c0_58, %c32] : memref<128x36xbf16, #tpu.memory_space<vmem>>, vector<128x4xbf16>
    tpu.vector_store %arg9[%c0_58, %c32], %57 {strides = array<i32>} : memref<128x36xbf16, #tpu.memory_space<vmem>>, vector<128x4xbf16>,
    %c0_59 = arith.constant 0 : index
    %c0_60 = arith.constant 0 : index
    %59 = vector.load %arg9[%c0_59, %c0_60] : memref<128x36xbf16, #tpu.memory_space<vmem>>, vector<128x36xbf16>
    %c0_61 = arith.constant 0 : index
    %c0_62 = arith.constant 0 : index
    %60 = vector.load %arg3[%c0_61, %c0_62] : memref<36x8xbf16, #tpu.memory_space<vmem>>, vector<36x8xbf16>
    %cst_63 = arith.constant dense<0.000000e+00> : vector<128x8xf32>
    %61 = tpu.matmul %59, %60, %cst_63 {dimension_numbers = #tpu.dot_dimension_numbers<[1], [0], [0], [1], [0, 0, 1, 1], [], []>} : vector<128x36xbf16>, vector<36x8xbf16>, vector<128x8xf32> -> vector<128x8xf32>
    %62 = vector.shape_cast %61 : vector<128x8xf32> to vector<1x8x16x8xf32>
    %c0_64 = arith.constant 0 : index
    %c0_65 = arith.constant 0 : index
    %c0_66 = arith.constant 0 : index
    %c0_67 = arith.constant 0 : index
    %63 = vector.load %arg6[%c0_64, %c0_65, %c0_66, %c0_67] : memref<1x8x16x8xf32, #tpu.memory_space<vmem>>, vector<1x8x16x8xf32>
    tpu.vector_store %arg6[%c0_64, %c0_65, %c0_66, %c0_67], %62 {strides = array<i32>} : memref<1x8x16x8xf32, #tpu.memory_space<vmem>>, vector<1x8x16x8xf32>,
    %cst_68 = arith.constant dense<0.000000e+00> : vector<8xf32>
    %64 = vector.multi_reduction <add>, %61, %cst_68 [0] : vector<128x8xf32> to vector<8xf32>
    %65 = vector.shape_cast %64 : vector<8xf32> to vector<1x8xf32>
    %c0_69 = arith.constant 0 : index
    %c0_70 = arith.constant 0 : index
    %c0_71 = arith.constant 0 : index
    %c0_72 = arith.constant 0 : index
    %66 = vector.load %arg7[%c0_69, %c0_70, %c0_71, %c0_72] : memref<1x1x2x8xf32, #tpu.memory_space<vmem>>, vector<1x1x1x8xf32>
    %67 = vector.shape_cast %66 : vector<1x1x1x8xf32> to vector<1x8xf32>
    %68 = vector.shape_cast %65 : vector<1x8xf32> to vector<1x1x1x8xf32>
    tpu.vector_store %arg7[%c0_69, %c0_70, %c0_71, %c0_72], %68 {strides = array<i32>} : memref<1x1x2x8xf32, #tpu.memory_space<vmem>>, vector<1x1x1x8xf32>,
    %69 = arith.mulf %61, %61 : vector<128x8xf32>
    %cst_73 = arith.constant dense<0.000000e+00> : vector<8xf32>
    %70 = vector.multi_reduction <add>, %69, %cst_73 [0] : vector<128x8xf32> to vector<8xf32>
    %71 = vector.shape_cast %70 : vector<8xf32> to vector<1x8xf32>
    %c0_74 = arith.constant 0 : index
    %c0_75 = arith.constant 0 : index
    %c1_76 = arith.constant 1 : index
    %c0_77 = arith.constant 0 : index
    %72 = vector.load %arg7[%c0_74, %c0_75, %c1_76, %c0_77] : memref<1x1x2x8xf32, #tpu.memory_space<vmem>>, vector<1x1x1x8xf32>
    %73 = vector.shape_cast %72 : vector<1x1x1x8xf32> to vector<1x8xf32>
    %74 = vector.shape_cast %71 : vector<1x8xf32> to vector<1x1x1x8xf32>
    tpu.vector_store %arg7[%c0_74, %c0_75, %c1_76, %c0_77], %74 {strides = array<i32>} : memref<1x1x2x8xf32, #tpu.memory_space<vmem>>, vector<1x1x1x8xf32>,
    return
  }
  func.func @transform_0(%arg0: i32, %arg1: i32) -> (i32, i32, i32, i32) {
    %c0_i32 = arith.constant 0 : i32
    %c0_i32_0 = arith.constant 0 : i32
    %c0_i32_1 = arith.constant 0 : i32
    %c0_i32_2 = arith.constant 0 : i32
    return %arg0, %c0_i32, %c0_i32_0, %c0_i32_1 : i32, i32, i32, i32
  }
  func.func @transform_1(%arg0: i32, %arg1: i32) -> (i32, i32) {
    %c0_i32 = arith.constant 0 : i32
    %c0_i32_0 = arith.constant 0 : i32
    %c0_i32_1 = arith.constant 0 : i32
    return %c0_i32, %c0_i32_0 : i32, i32
  }
  func.func @transform_2(%arg0: i32, %arg1: i32) -> (i32, i32) {
    %c0_i32 = arith.constant 0 : i32
    %c0_i32_0 = arith.constant 0 : i32
    %c0_i32_1 = arith.constant 0 : i32
    return %c0_i32, %c0_i32_0 : i32, i32
  }
  func.func @transform_3(%arg0: i32, %arg1: i32) -> (i32, i32) {
    %c0_i32 = arith.constant 0 : i32
    %c0_i32_0 = arith.constant 0 : i32
    %c0_i32_1 = arith.constant 0 : i32
    return %c0_i32, %c0_i32_0 : i32, i32
  }
  func.func @transform_4(%arg0: i32, %arg1: i32) -> (i32, i32, i32, i32) {
    %c0_i32 = arith.constant 0 : i32
    %c0_i32_0 = arith.constant 0 : i32
    %c0_i32_1 = arith.constant 0 : i32
    return %arg0, %arg1, %c0_i32, %c0_i32_0 : i32, i32, i32, i32
  }
  func.func @transform_5(%arg0: i32, %arg1: i32) -> (i32, i32, i32, i32) {
    %c0_i32 = arith.constant 0 : i32
    %c0_i32_0 = arith.constant 0 : i32
    %c0_i32_1 = arith.constant 0 : i32
    return %arg0, %arg1, %c0_i32, %c0_i32_0 : i32, i32, i32, i32
  }
}

module attributes {stable_mosaic.version = 11 : i64} {
  func.func @_bn_relu_kernel(%arg0: i32, %arg1: i32, %arg2: memref<1x8x16x8xf32, #tpu.memory_space<vmem>>, %arg3: memref<1x8xf32, #tpu.memory_space<vmem>>, %arg4: memref<1x8xf32, #tpu.memory_space<vmem>>, %arg5: memref<1x8x16x8xf32, #tpu.memory_space<vmem>>) attributes {dimension_semantics = [#tpu.dimension_semantics<parallel>, #tpu.dimension_semantics<parallel>], iteration_bounds = array<i64: 2, 2>, scalar_prefetch = 0 : i64, scratch_operands = 0 : i64, tpu.core_type = #tpu.core_type<tc>, window_params = [{transform_indices = @transform_0, window_bounds = array<i64: 1, 8, 16, 8>}, {pipeline_mode = #tpu.pipeline_mode<synchronous>, transform_indices = @transform_1, window_bounds = array<i64: 1, 8>}, {pipeline_mode = #tpu.pipeline_mode<synchronous>, transform_indices = @transform_2, window_bounds = array<i64: 1, 8>}, {transform_indices = @transform_3, window_bounds = array<i64: 1, 8, 16, 8>}]} {
    %c0 = arith.constant 0 : index
    %c0_0 = arith.constant 0 : index
    %c0_1 = arith.constant 0 : index
    %c0_2 = arith.constant 0 : index
    %0 = vector.load %arg2[%c0, %c0_0, %c0_1, %c0_2] : memref<1x8x16x8xf32, #tpu.memory_space<vmem>>, vector<1x8x16x8xf32>
    %c0_3 = arith.constant 0 : index
    %c0_4 = arith.constant 0 : index
    %1 = vector.load %arg3[%c0_3, %c0_4] : memref<1x8xf32, #tpu.memory_space<vmem>>, vector<1x8xf32>
    %2 = vector.shape_cast %1 : vector<1x8xf32> to vector<8xf32>
    %3 = vector.shape_cast %2 : vector<8xf32> to vector<1x1x1x8xf32>
    %4 = vector.broadcast %3 : vector<1x1x1x8xf32> to vector<1x8x16x8xf32>
    %5 = arith.mulf %0, %4 : vector<1x8x16x8xf32>
    %c0_5 = arith.constant 0 : index
    %c0_6 = arith.constant 0 : index
    %6 = vector.load %arg4[%c0_5, %c0_6] : memref<1x8xf32, #tpu.memory_space<vmem>>, vector<1x8xf32>
    %7 = vector.shape_cast %6 : vector<1x8xf32> to vector<8xf32>
    %8 = vector.shape_cast %7 : vector<8xf32> to vector<1x1x1x8xf32>
    %9 = vector.broadcast %8 : vector<1x1x1x8xf32> to vector<1x8x16x8xf32>
    %10 = arith.addf %5, %9 : vector<1x8x16x8xf32>
    %cst = arith.constant 0.000000e+00 : f32
    %11 = vector.broadcast %cst : f32 to vector<1x8x16x8xf32>
    %12 = arith.maximumf %10, %11 : vector<1x8x16x8xf32>
    %c0_7 = arith.constant 0 : index
    %c0_8 = arith.constant 0 : index
    %c0_9 = arith.constant 0 : index
    %c0_10 = arith.constant 0 : index
    %13 = vector.load %arg5[%c0_7, %c0_8, %c0_9, %c0_10] : memref<1x8x16x8xf32, #tpu.memory_space<vmem>>, vector<1x8x16x8xf32>
    tpu.vector_store %arg5[%c0_7, %c0_8, %c0_9, %c0_10], %12 {strides = array<i32>} : memref<1x8x16x8xf32, #tpu.memory_space<vmem>>, vector<1x8x16x8xf32>,
    return
  }
  func.func @transform_0(%arg0: i32, %arg1: i32) -> (i32, i32, i32, i32) {
    %c0_i32 = arith.constant 0 : i32
    %c0_i32_0 = arith.constant 0 : i32
    %c0_i32_1 = arith.constant 0 : i32
    return %arg0, %arg1, %c0_i32, %c0_i32_0 : i32, i32, i32, i32
  }
  func.func @transform_1(%arg0: i32, %arg1: i32) -> (i32, i32) {
    %c0_i32 = arith.constant 0 : i32
    %c0_i32_0 = arith.constant 0 : i32
    %c0_i32_1 = arith.constant 0 : i32
    return %c0_i32, %c0_i32_0 : i32, i32
  }
  func.func @transform_2(%arg0: i32, %arg1: i32) -> (i32, i32) {
    %c0_i32 = arith.constant 0 : i32
    %c0_i32_0 = arith.constant 0 : i32
    %c0_i32_1 = arith.constant 0 : i32
    return %c0_i32, %c0_i32_0 : i32, i32
  }
  func.func @transform_3(%arg0: i32, %arg1: i32) -> (i32, i32, i32, i32) {
    %c0_i32 = arith.constant 0 : i32
    %c0_i32_0 = arith.constant 0 : i32
    %c0_i32_1 = arith.constant 0 : i32
    return %arg0, %arg1, %c0_i32, %c0_i32_0 : i32, i32, i32, i32
  }
}

module attributes {stable_mosaic.version = 11 : i64} {
  func.func @_conv_bn_stats_kernel(%arg0: i32, %arg1: i32, %arg2: memref<1x16x16x8xf32, #tpu.memory_space<vmem>>, %arg3: memref<72x8xbf16, #tpu.memory_space<vmem>>, %arg4: memref<1x8xf32, #tpu.memory_space<vmem>>, %arg5: memref<1x8xf32, #tpu.memory_space<vmem>>, %arg6: memref<1x8x16x8xf32, #tpu.memory_space<vmem>>, %arg7: memref<1x1x2x8xf32, #tpu.memory_space<vmem>>, %arg8: memref<10x18x8xf32, #tpu.memory_space<vmem>>, %arg9: memref<128x72xbf16, #tpu.memory_space<vmem>>) attributes {dimension_semantics = [#tpu.dimension_semantics<parallel>, #tpu.dimension_semantics<parallel>], iteration_bounds = array<i64: 2, 2>, scalar_prefetch = 0 : i64, scratch_operands = 2 : i64, tpu.core_type = #tpu.core_type<tc>, window_params = [{transform_indices = @transform_0, window_bounds = array<i64: 1, 16, 16, 8>}, {pipeline_mode = #tpu.pipeline_mode<synchronous>, transform_indices = @transform_1, window_bounds = array<i64: 72, 8>}, {pipeline_mode = #tpu.pipeline_mode<synchronous>, transform_indices = @transform_2, window_bounds = array<i64: 1, 8>}, {pipeline_mode = #tpu.pipeline_mode<synchronous>, transform_indices = @transform_3, window_bounds = array<i64: 1, 8>}, {transform_indices = @transform_4, window_bounds = array<i64: 1, 8, 16, 8>}, {transform_indices = @transform_5, window_bounds = array<i64: 1, 1, 2, 8>}]} {
    %c8_i32 = arith.constant 8 : i32
    %0 = arith.muli %arg1, %c8_i32 : i32
    %1 = tpu.assume_multiple %0, 8 : i32
    %c0_i32 = arith.constant 0 : i32
    %2 = arith.cmpi eq, %arg1, %c0_i32 : i32
    %c1_i32 = arith.constant 1 : i32
    %3 = arith.subi %1, %c1_i32 : i32
    %c15_i32 = arith.constant 15 : i32
    %4 = arith.select %2, %c15_i32, %3 : i32
    %c1_i32_0 = arith.constant 1 : i32
    %5 = arith.cmpi eq, %arg1, %c1_i32_0 : i32
    %c8_i32_1 = arith.constant 8 : i32
    %6 = arith.addi %1, %c8_i32_1 : i32
    %c0_i32_2 = arith.constant 0 : i32
    %7 = arith.select %5, %c0_i32_2, %6 : i32
    %c0 = arith.constant 0 : index
    %8 = arith.index_cast %4 : i32 to index
    %c0_3 = arith.constant 0 : index
    %c0_4 = arith.constant 0 : index
    %9 = vector.load %arg2[%c0, %8, %c0_3, %c0_4] : memref<1x16x16x8xf32, #tpu.memory_space<vmem>>, vector<1x1x16x8xf32>
    %10 = vector.shape_cast %9 : vector<1x1x16x8xf32> to vector<1x16x8xf32>
    %c0_5 = arith.constant 0 : index
    %c0_6 = arith.constant 0 : index
    %11 = vector.load %arg4[%c0_5, %c0_6] : memref<1x8xf32, #tpu.memory_space<vmem>>, vector<1x8xf32>
    %12 = vector.shape_cast %11 : vector<1x8xf32> to vector<8xf32>
    %13 = vector.shape_cast %12 : vector<8xf32> to vector<1x1x8xf32>
    %14 = vector.broadcast %13 : vector<1x1x8xf32> to vector<1x16x8xf32>
    %15 = arith.mulf %10, %14 : vector<1x16x8xf32>
    %c0_7 = arith.constant 0 : index
    %c0_8 = arith.constant 0 : index
    %16 = vector.load %arg5[%c0_7, %c0_8] : memref<1x8xf32, #tpu.memory_space<vmem>>, vector<1x8xf32>
    %17 = vector.shape_cast %16 : vector<1x8xf32> to vector<8xf32>
    %18 = vector.shape_cast %17 : vector<8xf32> to vector<1x1x8xf32>
    %19 = vector.broadcast %18 : vector<1x1x8xf32> to vector<1x16x8xf32>
    %20 = arith.addf %15, %19 : vector<1x16x8xf32>
    %cst = arith.constant 0.000000e+00 : f32
    %21 = vector.broadcast %cst : f32 to vector<1x16x8xf32>
    %22 = arith.maximumf %20, %21 : vector<1x16x8xf32>
    %c0_9 = arith.constant 0 : index
    %23 = arith.index_cast %1 : i32 to index
    %c0_10 = arith.constant 0 : index
    %c0_11 = arith.constant 0 : index
    %24 = vector.load %arg2[%c0_9, %23, %c0_10, %c0_11] : memref<1x16x16x8xf32, #tpu.memory_space<vmem>>, vector<1x8x16x8xf32>
    %25 = vector.shape_cast %24 : vector<1x8x16x8xf32> to vector<8x16x8xf32>
    %c0_12 = arith.constant 0 : index
    %c0_13 = arith.constant 0 : index
    %26 = vector.load %arg4[%c0_12, %c0_13] : memref<1x8xf32, #tpu.memory_space<vmem>>, vector<1x8xf32>
    %27 = vector.shape_cast %26 : vector<1x8xf32> to vector<8xf32>
    %28 = vector.shape_cast %27 : vector<8xf32> to vector<1x1x8xf32>
    %29 = vector.broadcast %28 : vector<1x1x8xf32> to vector<8x16x8xf32>
    %30 = arith.mulf %25, %29 : vector<8x16x8xf32>
    %c0_14 = arith.constant 0 : index
    %c0_15 = arith.constant 0 : index
    %31 = vector.load %arg5[%c0_14, %c0_15] : memref<1x8xf32, #tpu.memory_space<vmem>>, vector<1x8xf32>
    %32 = vector.shape_cast %31 : vector<1x8xf32> to vector<8xf32>
    %33 = vector.shape_cast %32 : vector<8xf32> to vector<1x1x8xf32>
    %34 = vector.broadcast %33 : vector<1x1x8xf32> to vector<8x16x8xf32>
    %35 = arith.addf %30, %34 : vector<8x16x8xf32>
    %cst_16 = arith.constant 0.000000e+00 : f32
    %36 = vector.broadcast %cst_16 : f32 to vector<8x16x8xf32>
    %37 = arith.maximumf %35, %36 : vector<8x16x8xf32>
    %c0_17 = arith.constant 0 : index
    %38 = arith.index_cast %7 : i32 to index
    %c0_18 = arith.constant 0 : index
    %c0_19 = arith.constant 0 : index
    %39 = vector.load %arg2[%c0_17, %38, %c0_18, %c0_19] : memref<1x16x16x8xf32, #tpu.memory_space<vmem>>, vector<1x1x16x8xf32>
    %40 = vector.shape_cast %39 : vector<1x1x16x8xf32> to vector<1x16x8xf32>
    %c0_20 = arith.constant 0 : index
    %c0_21 = arith.constant 0 : index
    %41 = vector.load %arg4[%c0_20, %c0_21] : memref<1x8xf32, #tpu.memory_space<vmem>>, vector<1x8xf32>
    %42 = vector.shape_cast %41 : vector<1x8xf32> to vector<8xf32>
    %43 = vector.shape_cast %42 : vector<8xf32> to vector<1x1x8xf32>
    %44 = vector.broadcast %43 : vector<1x1x8xf32> to vector<1x16x8xf32>
    %45 = arith.mulf %40, %44 : vector<1x16x8xf32>
    %c0_22 = arith.constant 0 : index
    %c0_23 = arith.constant 0 : index
    %46 = vector.load %arg5[%c0_22, %c0_23] : memref<1x8xf32, #tpu.memory_space<vmem>>, vector<1x8xf32>
    %47 = vector.shape_cast %46 : vector<1x8xf32> to vector<8xf32>
    %48 = vector.shape_cast %47 : vector<8xf32> to vector<1x1x8xf32>
    %49 = vector.broadcast %48 : vector<1x1x8xf32> to vector<1x16x8xf32>
    %50 = arith.addf %45, %49 : vector<1x16x8xf32>
    %cst_24 = arith.constant 0.000000e+00 : f32
    %51 = vector.broadcast %cst_24 : f32 to vector<1x16x8xf32>
    %52 = arith.maximumf %50, %51 : vector<1x16x8xf32>
    %cst_25 = arith.constant 0.000000e+00 : f32
    %53 = vector.broadcast %cst_25 : f32 to vector<10x1x8xf32>
    %c0_26 = arith.constant 0 : index
    %c0_27 = arith.constant 0 : index
    %c0_28 = arith.constant 0 : index
    %54 = vector.load %arg8[%c0_26, %c0_27, %c0_28] : memref<10x18x8xf32, #tpu.memory_space<vmem>>, vector<10x1x8xf32>
    tpu.vector_store %arg8[%c0_26, %c0_27, %c0_28], %53 {strides = array<i32>} : memref<10x18x8xf32, #tpu.memory_space<vmem>>, vector<10x1x8xf32>,
    %c0_29 = arith.constant 0 : index
    %c17 = arith.constant 17 : index
    %c0_30 = arith.constant 0 : index
    %55 = vector.load %arg8[%c0_29, %c17, %c0_30] : memref<10x18x8xf32, #tpu.memory_space<vmem>>, vector<10x1x8xf32>
    tpu.vector_store %arg8[%c0_29, %c17, %c0_30], %53 {strides = array<i32>} : memref<10x18x8xf32, #tpu.memory_space<vmem>>, vector<10x1x8xf32>,
    %c0_31 = arith.constant 0 : index
    %c1 = arith.constant 1 : index
    %c0_32 = arith.constant 0 : index
    %56 = vector.load %arg8[%c0_31, %c1, %c0_32] : memref<10x18x8xf32, #tpu.memory_space<vmem>>, vector<1x16x8xf32>
    tpu.vector_store %arg8[%c0_31, %c1, %c0_32], %22 {strides = array<i32>} : memref<10x18x8xf32, #tpu.memory_space<vmem>>, vector<1x16x8xf32>,
    %c1_33 = arith.constant 1 : index
    %c1_34 = arith.constant 1 : index
    %c0_35 = arith.constant 0 : index
    %57 = vector.load %arg8[%c1_33, %c1_34, %c0_35] : memref<10x18x8xf32, #tpu.memory_space<vmem>>, vector<8x16x8xf32>
    tpu.vector_store %arg8[%c1_33, %c1_34, %c0_35], %37 {strides = array<i32>} : memref<10x18x8xf32, #tpu.memory_space<vmem>>, vector<8x16x8xf32>,
    %c9 = arith.constant 9 : index
    %c1_36 = arith.constant 1 : index
    %c0_37 = arith.constant 0 : index
    %58 = vector.load %arg8[%c9, %c1_36, %c0_37] : memref<10x18x8xf32, #tpu.memory_space<vmem>>, vector<1x16x8xf32>
    tpu.vector_store %arg8[%c9, %c1_36, %c0_37], %52 {strides = array<i32>} : memref<10x18x8xf32, #tpu.memory_space<vmem>>, vector<1x16x8xf32>,
    %c0_38 = arith.constant 0 : index
    %c0_39 = arith.constant 0 : index
    %c0_40 = arith.constant 0 : index
    %59 = vector.load %arg8[%c0_38, %c0_39, %c0_40] : memref<10x18x8xf32, #tpu.memory_space<vmem>>, vector<8x16x8xf32>
    %60 = vector.shape_cast %59 : vector<8x16x8xf32> to vector<128x8xf32>
    %61 = arith.truncf %60 : vector<128x8xf32> to vector<128x8xbf16>
    %c0_41 = arith.constant 0 : index
    %c0_42 = arith.constant 0 : index
    %62 = vector.load %arg9[%c0_41, %c0_42] : memref<128x72xbf16, #tpu.memory_space<vmem>>, vector<128x8xbf16>
    tpu.vector_store %arg9[%c0_41, %c0_42], %61 {strides = array<i32>} : memref<128x72xbf16, #tpu.memory_space<vmem>>, vector<128x8xbf16>,
    %c0_43 = arith.constant 0 : index
    %c1_44 = arith.constant 1 : index
    %c0_45 = arith.constant 0 : index
    %63 = vector.load %arg8[%c0_43, %c1_44, %c0_45] : memref<10x18x8xf32, #tpu.memory_space<vmem>>, vector<8x16x8xf32>
    %64 = vector.shape_cast %63 : vector<8x16x8xf32> to vector<128x8xf32>
    %65 = arith.truncf %64 : vector<128x8xf32> to vector<128x8xbf16>
    %c0_46 = arith.constant 0 : index
    %c8 = arith.constant 8 : index
    %66 = vector.load %arg9[%c0_46, %c8] : memref<128x72xbf16, #tpu.memory_space<vmem>>, vector<128x8xbf16>
    tpu.vector_store %arg9[%c0_46, %c8], %65 {strides = array<i32>} : memref<128x72xbf16, #tpu.memory_space<vmem>>, vector<128x8xbf16>,
    %c0_47 = arith.constant 0 : index
    %c2 = arith.constant 2 : index
    %c0_48 = arith.constant 0 : index
    %67 = vector.load %arg8[%c0_47, %c2, %c0_48] : memref<10x18x8xf32, #tpu.memory_space<vmem>>, vector<8x16x8xf32>
    %68 = vector.shape_cast %67 : vector<8x16x8xf32> to vector<128x8xf32>
    %69 = arith.truncf %68 : vector<128x8xf32> to vector<128x8xbf16>
    %c0_49 = arith.constant 0 : index
    %c16 = arith.constant 16 : index
    %70 = vector.load %arg9[%c0_49, %c16] : memref<128x72xbf16, #tpu.memory_space<vmem>>, vector<128x8xbf16>
    tpu.vector_store %arg9[%c0_49, %c16], %69 {strides = array<i32>} : memref<128x72xbf16, #tpu.memory_space<vmem>>, vector<128x8xbf16>,
    %c1_50 = arith.constant 1 : index
    %c0_51 = arith.constant 0 : index
    %c0_52 = arith.constant 0 : index
    %71 = vector.load %arg8[%c1_50, %c0_51, %c0_52] : memref<10x18x8xf32, #tpu.memory_space<vmem>>, vector<8x16x8xf32>
    %72 = vector.shape_cast %71 : vector<8x16x8xf32> to vector<128x8xf32>
    %73 = arith.truncf %72 : vector<128x8xf32> to vector<128x8xbf16>
    %c0_53 = arith.constant 0 : index
    %c24 = arith.constant 24 : index
    %74 = vector.load %arg9[%c0_53, %c24] : memref<128x72xbf16, #tpu.memory_space<vmem>>, vector<128x8xbf16>
    tpu.vector_store %arg9[%c0_53, %c24], %73 {strides = array<i32>} : memref<128x72xbf16, #tpu.memory_space<vmem>>, vector<128x8xbf16>,
    %c1_54 = arith.constant 1 : index
    %c1_55 = arith.constant 1 : index
    %c0_56 = arith.constant 0 : index
    %75 = vector.load %arg8[%c1_54, %c1_55, %c0_56] : memref<10x18x8xf32, #tpu.memory_space<vmem>>, vector<8x16x8xf32>
    %76 = vector.shape_cast %75 : vector<8x16x8xf32> to vector<128x8xf32>
    %77 = arith.truncf %76 : vector<128x8xf32> to vector<128x8xbf16>
    %c0_57 = arith.constant 0 : index
    %c32 = arith.constant 32 : index
    %78 = vector.load %arg9[%c0_57, %c32] : memref<128x72xbf16, #tpu.memory_space<vmem>>, vector<128x8xbf16>
    tpu.vector_store %arg9[%c0_57, %c32], %77 {strides = array<i32>} : memref<128x72xbf16, #tpu.memory_space<vmem>>, vector<128x8xbf16>,
    %c1_58 = arith.constant 1 : index
    %c2_59 = arith.constant 2 : index
    %c0_60 = arith.constant 0 : index
    %79 = vector.load %arg8[%c1_58, %c2_59, %c0_60] : memref<10x18x8xf32, #tpu.memory_space<vmem>>, vector<8x16x8xf32>
    %80 = vector.shape_cast %79 : vector<8x16x8xf32> to vector<128x8xf32>
    %81 = arith.truncf %80 : vector<128x8xf32> to vector<128x8xbf16>
    %c0_61 = arith.constant 0 : index
    %c40 = arith.constant 40 : index
    %82 = vector.load %arg9[%c0_61, %c40] : memref<128x72xbf16, #tpu.memory_space<vmem>>, vector<128x8xbf16>
    tpu.vector_store %arg9[%c0_61, %c40], %81 {strides = array<i32>} : memref<128x72xbf16, #tpu.memory_space<vmem>>, vector<128x8xbf16>,
    %c2_62 = arith.constant 2 : index
    %c0_63 = arith.constant 0 : index
    %c0_64 = arith.constant 0 : index
    %83 = vector.load %arg8[%c2_62, %c0_63, %c0_64] : memref<10x18x8xf32, #tpu.memory_space<vmem>>, vector<8x16x8xf32>
    %84 = vector.shape_cast %83 : vector<8x16x8xf32> to vector<128x8xf32>
    %85 = arith.truncf %84 : vector<128x8xf32> to vector<128x8xbf16>
    %c0_65 = arith.constant 0 : index
    %c48 = arith.constant 48 : index
    %86 = vector.load %arg9[%c0_65, %c48] : memref<128x72xbf16, #tpu.memory_space<vmem>>, vector<128x8xbf16>
    tpu.vector_store %arg9[%c0_65, %c48], %85 {strides = array<i32>} : memref<128x72xbf16, #tpu.memory_space<vmem>>, vector<128x8xbf16>,
    %c2_66 = arith.constant 2 : index
    %c1_67 = arith.constant 1 : index
    %c0_68 = arith.constant 0 : index
    %87 = vector.load %arg8[%c2_66, %c1_67, %c0_68] : memref<10x18x8xf32, #tpu.memory_space<vmem>>, vector<8x16x8xf32>
    %88 = vector.shape_cast %87 : vector<8x16x8xf32> to vector<128x8xf32>
    %89 = arith.truncf %88 : vector<128x8xf32> to vector<128x8xbf16>
    %c0_69 = arith.constant 0 : index
    %c56 = arith.constant 56 : index
    %90 = vector.load %arg9[%c0_69, %c56] : memref<128x72xbf16, #tpu.memory_space<vmem>>, vector<128x8xbf16>
    tpu.vector_store %arg9[%c0_69, %c56], %89 {strides = array<i32>} : memref<128x72xbf16, #tpu.memory_space<vmem>>, vector<128x8xbf16>,
    %c2_70 = arith.constant 2 : index
    %c2_71 = arith.constant 2 : index
    %c0_72 = arith.constant 0 : index
    %91 = vector.load %arg8[%c2_70, %c2_71, %c0_72] : memref<10x18x8xf32, #tpu.memory_space<vmem>>, vector<8x16x8xf32>
    %92 = vector.shape_cast %91 : vector<8x16x8xf32> to vector<128x8xf32>
    %93 = arith.truncf %92 : vector<128x8xf32> to vector<128x8xbf16>
    %c0_73 = arith.constant 0 : index
    %c64 = arith.constant 64 : index
    %94 = vector.load %arg9[%c0_73, %c64] : memref<128x72xbf16, #tpu.memory_space<vmem>>, vector<128x8xbf16>
    tpu.vector_store %arg9[%c0_73, %c64], %93 {strides = array<i32>} : memref<128x72xbf16, #tpu.memory_space<vmem>>, vector<128x8xbf16>,
    %c0_74 = arith.constant 0 : index
    %c0_75 = arith.constant 0 : index
    %95 = vector.load %arg9[%c0_74, %c0_75] : memref<128x72xbf16, #tpu.memory_space<vmem>>, vector<128x72xbf16>
    %c0_76 = arith.constant 0 : index
    %c0_77 = arith.constant 0 : index
    %96 = vector.load %arg3[%c0_76, %c0_77] : memref<72x8xbf16, #tpu.memory_space<vmem>>, vector<72x8xbf16>
    %cst_78 = arith.constant dense<0.000000e+00> : vector<128x8xf32>
    %97 = tpu.matmul %95, %96, %cst_78 {dimension_numbers = #tpu.dot_dimension_numbers<[1], [0], [0], [1], [0, 0, 1, 1], [], []>} : vector<128x72xbf16>, vector<72x8xbf16>, vector<128x8xf32> -> vector<128x8xf32>
    %98 = vector.shape_cast %97 : vector<128x8xf32> to vector<1x8x16x8xf32>
    %c0_79 = arith.constant 0 : index
    %c0_80 = arith.constant 0 : index
    %c0_81 = arith.constant 0 : index
    %c0_82 = arith.constant 0 : index
    %99 = vector.load %arg6[%c0_79, %c0_80, %c0_81, %c0_82] : memref<1x8x16x8xf32, #tpu.memory_space<vmem>>, vector<1x8x16x8xf32>
    tpu.vector_store %arg6[%c0_79, %c0_80, %c0_81, %c0_82], %98 {strides = array<i32>} : memref<1x8x16x8xf32, #tpu.memory_space<vmem>>, vector<1x8x16x8xf32>,
    %cst_83 = arith.constant dense<0.000000e+00> : vector<8xf32>
    %100 = vector.multi_reduction <add>, %97, %cst_83 [0] : vector<128x8xf32> to vector<8xf32>
    %101 = vector.shape_cast %100 : vector<8xf32> to vector<1x8xf32>
    %c0_84 = arith.constant 0 : index
    %c0_85 = arith.constant 0 : index
    %c0_86 = arith.constant 0 : index
    %c0_87 = arith.constant 0 : index
    %102 = vector.load %arg7[%c0_84, %c0_85, %c0_86, %c0_87] : memref<1x1x2x8xf32, #tpu.memory_space<vmem>>, vector<1x1x1x8xf32>
    %103 = vector.shape_cast %102 : vector<1x1x1x8xf32> to vector<1x8xf32>
    %104 = vector.shape_cast %101 : vector<1x8xf32> to vector<1x1x1x8xf32>
    tpu.vector_store %arg7[%c0_84, %c0_85, %c0_86, %c0_87], %104 {strides = array<i32>} : memref<1x1x2x8xf32, #tpu.memory_space<vmem>>, vector<1x1x1x8xf32>,
    %105 = arith.mulf %97, %97 : vector<128x8xf32>
    %cst_88 = arith.constant dense<0.000000e+00> : vector<8xf32>
    %106 = vector.multi_reduction <add>, %105, %cst_88 [0] : vector<128x8xf32> to vector<8xf32>
    %107 = vector.shape_cast %106 : vector<8xf32> to vector<1x8xf32>
    %c0_89 = arith.constant 0 : index
    %c0_90 = arith.constant 0 : index
    %c1_91 = arith.constant 1 : index
    %c0_92 = arith.constant 0 : index
    %108 = vector.load %arg7[%c0_89, %c0_90, %c1_91, %c0_92] : memref<1x1x2x8xf32, #tpu.memory_space<vmem>>, vector<1x1x1x8xf32>
    %109 = vector.shape_cast %108 : vector<1x1x1x8xf32> to vector<1x8xf32>
    %110 = vector.shape_cast %107 : vector<1x8xf32> to vector<1x1x1x8xf32>
    tpu.vector_store %arg7[%c0_89, %c0_90, %c1_91, %c0_92], %110 {strides = array<i32>} : memref<1x1x2x8xf32, #tpu.memory_space<vmem>>, vector<1x1x1x8xf32>,
    return
  }
  func.func @transform_0(%arg0: i32, %arg1: i32) -> (i32, i32, i32, i32) {
    %c0_i32 = arith.constant 0 : i32
    %c0_i32_0 = arith.constant 0 : i32
    %c0_i32_1 = arith.constant 0 : i32
    %c0_i32_2 = arith.constant 0 : i32
    return %arg0, %c0_i32, %c0_i32_0, %c0_i32_1 : i32, i32, i32, i32
  }
  func.func @transform_1(%arg0: i32, %arg1: i32) -> (i32, i32) {
    %c0_i32 = arith.constant 0 : i32
    %c0_i32_0 = arith.constant 0 : i32
    %c0_i32_1 = arith.constant 0 : i32
    return %c0_i32, %c0_i32_0 : i32, i32
  }
  func.func @transform_2(%arg0: i32, %arg1: i32) -> (i32, i32) {
    %c0_i32 = arith.constant 0 : i32
    %c0_i32_0 = arith.constant 0 : i32
    %c0_i32_1 = arith.constant 0 : i32
    return %c0_i32, %c0_i32_0 : i32, i32
  }
  func.func @transform_3(%arg0: i32, %arg1: i32) -> (i32, i32) {
    %c0_i32 = arith.constant 0 : i32
    %c0_i32_0 = arith.constant 0 : i32
    %c0_i32_1 = arith.constant 0 : i32
    return %c0_i32, %c0_i32_0 : i32, i32
  }
  func.func @transform_4(%arg0: i32, %arg1: i32) -> (i32, i32, i32, i32) {
    %c0_i32 = arith.constant 0 : i32
    %c0_i32_0 = arith.constant 0 : i32
    %c0_i32_1 = arith.constant 0 : i32
    return %arg0, %arg1, %c0_i32, %c0_i32_0 : i32, i32, i32, i32
  }
  func.func @transform_5(%arg0: i32, %arg1: i32) -> (i32, i32, i32, i32) {
    %c0_i32 = arith.constant 0 : i32
    %c0_i32_0 = arith.constant 0 : i32
    %c0_i32_1 = arith.constant 0 : i32
    return %arg0, %arg1, %c0_i32, %c0_i32_0 : i32, i32, i32, i32
  }
}

</mosaic_0001>

<bundles_post_ra>
// kernel: bridge_forward.5
= control target key start
LH: loop header
LB: loop body
LE: loop exit
PB: predicated region body
PF: predicated region fallthrough
CT: control target
= control target key end

     0   :  { %s526_s12 = smov 0   ;;  %s528_s13 = smov 0   ;;  %s671_s0 = inlined_call_operand.vmem [shape: f32[2,16,16,8], index: 0, kind: input, shape index: {}]   ;;  %s672_s1 = inlined_call_operand.vmem [shape: f32[1,8], index: 1, kind: input, shape index: {}]   ;;  %s673_s2 = inlined_call_operand.vmem [shape: f32[1,8], index: 2, kind: input, shape index: {}]   ;;  %s674_s3 = inlined_call_operand.vmem [shape: f32[2,16,16,8], index: 3, kind: output, shape index: {}]  }
   0x1   :  { %s530_s14 = smov 0   ;;  %s532_s15 = smov 0  }
   0x2   :  { %s534_s16 = smov 0  }
   0x3 LB: > { %s22_s17 = sadd.s32 1, %s496_s14  ;;  %s25_s18 = sadd.s32 1, %s500_s15  ;;  %s504_s16 = sphi %s534_s16, %s13_s16   ;;  %s500_s15 = sphi %s532_s15, %s678_s15   ;;  %s496_s14 = sphi %s530_s14, %s677_s14   ;;  %s492_s13 = sphi %s528_s13, %s676_s13   ;;  %s488_s12 = sphi %s526_s12, %s675_s12  }
   0x4   : > { %p23_p0 = scmp.ge.s32.totalorder %s22_s17, 2  ;;  %p413_p1 = scmp.ge.s32.totalorder %s504_s16, 1 }
   0x5   : > { %p159_p2 = scmp.lt.s32.totalorder %s504_s16, 5 }
   0x6   : > { %s680_s17 = smov (%p23_p0, %s22_s17), 0  ;;  %s682_s18 = smov (!%p23_p0, %s25_s18), %s500_s15 }
   0x7   : > { %p160_p3 = pnand %p413_p1, %p159_p2  ;;  %p27_p4 = scmp.ge.s32.totalorder %s682_s18, 2 }
   0x8   : > { %s414_s19 = sshll.u32 (!%p160_p3), %s488_s12, 3  ;;  %p194_p5 = scmp.lt.s32.totalorder (!%p160_p3), %s492_s13, 1 }
   0x9   : > { %s684_s18 = smov (%p27_p4, %s682_s18), 0  ;;  %163 = sbr.rel (%p160_p3) target bundleno = 37 (0x25), region = 32 }
   0xa   : > { %p196_p6 = scmp.lt.s32.totalorder (!%p160_p3), %s414_s19, 15 }
   0xe   : > { %s686_s13 = smov (!%p194_p5, %s492_s13), 1  ;;  %s688_s19 = smov (!%p196_p6, %s414_s19), 15  ;;  %v559_v0 = vld [vmem:[%s672_s1] ss:$0 sm:$0xff]  ;;  %vm293_vm0 = vcmask 64512  }
   0xf   : > { %s416_s20 = sshll.u32 %s686_s13, 5  ;;  %s415_s21 = sshll.u32 %s688_s19, 1  ;;  %v569_v1 = vld [vmem:[%s673_s2] ss:$0 sm:$0xff] }
  0x10   : > { %s200_s22 = sadd.s32 %s416_s20, %s415_s21 }
  0x11   : > { %s417_s23 = sshll.u32 %s200_s22, 3 }
  0x12   : > { %s564_s28 = scalar_lea.vmem %s671_s0, %s417_s23  ;;  %s592_s6 = scalar_lea.vmem %s674_s3, %s417_s23 }
  0x13   : > { %v215_v2 = vld [vmem:[%s564_s28] sm:$0xff]  ;;  %v216_v3 = vld [vmem:[%s564_s28 + $0x8] sm:$0xff]  ;;  %v217_v4 = vld [vmem:[%s564_s28 + $0x10] sm:$0xff] }
  0x14   : > { %v238_v5 = vmul.f32 %v559_v0, %v215_v2  ;;  %v239_v6 = vmul.f32 %v559_v0, %v216_v3  ;;  %v240_v7 = vmul.f32 %v559_v0, %v217_v4  ;;  %v218_v8 = vld [vmem:[%s564_s28 + $0x18] sm:$0xff]  ;;  %v219_v9 = vld [vmem:[%s564_s28 + $0x20] sm:$0xff]  ;;  %v220_v10 = vld [vmem:[%s564_s28 + $0x28] sm:$0xff] }
  0x15   : > { %v241_v11 = vmul.f32 %v559_v0, %v218_v8  ;;  %v242_v12 = vmul.f32 %v559_v0, %v219_v9  ;;  %v243_v13 = vmul.f32 %v559_v0, %v220_v10  ;;  %v221_v14 = vld [vmem:[%s564_s28 + $0x30] sm:$0xff]  ;;  %v222_v15 = vld [vmem:[%s564_s28 + $0x38] sm:$0xff]  ;;  %v223_v24 = vld [vmem:[%s564_s28 + $0x40] sm:$0xff] }
  0x16   : > { %v261_v16 = vadd.f32 %v569_v1, %v238_v5  ;;  %v262_v17 = vadd.f32 %v569_v1, %v239_v6  ;;  %v263_v18 = vadd.f32 %v569_v1, %v240_v7  ;;  %v244_v19 = vmul.f32 %v559_v0, %v221_v14  ;;  %v224_v25 = vld [vmem:[%s564_s28 + $0x48] sm:$0xff]  ;;  %v225_v26 = vld [vmem:[%s564_s28 + $0x50] sm:$0xff]  ;;  %v226_v31 = vld [vmem:[%s564_s28 + $0x58] sm:$0xff] }
  0x17   : > { %v264_v20 = vadd.f32 %v569_v1, %v241_v11  ;;  %v265_v21 = vadd.f32 %v569_v1, %v242_v12  ;;  %v266_v22 = vadd.f32 %v569_v1, %v243_v13  ;;  %v245_v23 = vmul.f32 %v559_v0, %v222_v15  ;;  %v227_v32 = vld [vmem:[%s564_s28 + $0x60] sm:$0xff]  ;;  %v228_v33 = vld [vmem:[%s564_s28 + $0x68] sm:$0xff]  ;;  %v229_v38 = vld [vmem:[%s564_s28 + $0x70] sm:$0xff] }
  0x18   : > { %v277_v27 = vmax.f32 %v261_v16, 0.0  ;;  %v278_v28 = vmax.f32 %v262_v17, 0.0  ;;  %v279_v29 = vmax.f32 %v263_v18, 0.0  ;;  %v267_v30 = vadd.f32 %v569_v1, %v244_v19  ;;  %v230_v43 = vld [vmem:[%s564_s28 + $0x78] sm:$0xff] }
  0x19   : > { %v280_v34 = vmax.f32 %v264_v20, 0.0  ;;  %v281_v35 = vmax.f32 %v265_v21, 0.0  ;;  %v282_v36 = vmax.f32 %v266_v22, 0.0  ;;  %v268_v37 = vadd.f32 %v569_v1, %v245_v23 }
  0x1a   : > { %294 = vst.msk [vmem:[%s592_s6] sm:$0xff] %vm293_vm0, %v277_v27  ;;  %295 = vst.msk [vmem:[%s592_s6 + $0x8] sm:$0xff] %vm293_vm0, %v278_v28  ;;  %v283_v39 = vmax.f32 %v267_v30, 0.0  ;;  %v246_v40 = vmul.f32 %v559_v0, %v223_v24  ;;  %v247_v41 = vmul.f32 %v559_v0, %v224_v25  ;;  %v248_v42 = vmul.f32 %v559_v0, %v225_v26 }
  0x1b   : > { %296 = vst.msk [vmem:[%s592_s6 + $0x10] sm:$0xff] %vm293_vm0, %v279_v29  ;;  %297 = vst.msk [vmem:[%s592_s6 + $0x18] sm:$0xff] %vm293_vm0, %v280_v34  ;;  %v284_v44 = vmax.f32 %v268_v37, 0.0  ;;  %v249_v45 = vmul.f32 %v559_v0, %v226_v31  ;;  %v250_v46 = vmul.f32 %v559_v0, %v227_v32  ;;  %v251_v47 = vmul.f32 %v559_v0, %v228_v33 }
  0x1c   : > { %298 = vst.msk [vmem:[%s592_s6 + $0x20] sm:$0xff] %vm293_vm0, %v281_v35  ;;  %299 = vst.msk [vmem:[%s592_s6 + $0x28] sm:$0xff] %vm293_vm0, %v282_v36  ;;  %v269_v48 = vadd.f32 %v569_v1, %v246_v40  ;;  %v270_v49 = vadd.f32 %v569_v1, %v247_v41  ;;  %v271_v50 = vadd.f32 %v569_v1, %v248_v42 }
  0x1d   : > { %300 = vst.msk [vmem:[%s592_s6 + $0x30] sm:$0xff] %vm293_vm0, %v283_v39  ;;  %v252_v51 = vmul.f32 %v559_v0, %v229_v38  ;;  %301 = vst.msk [vmem:[%s592_s6 + $0x38] sm:$0xff] %vm293_vm0, %v284_v44  ;;  %v272_v52 = vadd.f32 %v569_v1, %v249_v45  ;;  %v273_v53 = vadd.f32 %v569_v1, %v250_v46 }
  0x1e   : > { %v274_v54 = vadd.f32 %v569_v1, %v251_v47  ;;  %v253_v55 = vmul.f32 %v559_v0, %v230_v43  ;;  %v285_v56 = vmax.f32 %v269_v48, 0.0  ;;  %v286_v57 = vmax.f32 %v270_v49, 0.0 }
  0x1f   : > { %v287_v58 = vmax.f32 %v271_v50, 0.0  ;;  %v275_v59 = vadd.f32 %v569_v1, %v252_v51  ;;  %v288_v60 = vmax.f32 %v272_v52, 0.0  ;;  %v289_v61 = vmax.f32 %v273_v53, 0.0 }
  0x20   : > { %v290_v62 = vmax.f32 %v274_v54, 0.0  ;;  %v276_v63 = vadd.f32 %v569_v1, %v253_v55  ;;  %302 = vst.msk [vmem:[%s592_s6 + $0x40] sm:$0xff] %vm293_vm0, %v285_v56  ;;  %303 = vst.msk [vmem:[%s592_s6 + $0x48] sm:$0xff] %vm293_vm0, %v286_v57 }
  0x21   : > { %304 = vst.msk [vmem:[%s592_s6 + $0x50] sm:$0xff] %vm293_vm0, %v287_v58  ;;  %v291_v2 = vmax.f32 %v275_v59, 0.0  ;;  %305 = vst.msk [vmem:[%s592_s6 + $0x58] sm:$0xff] %vm293_vm0, %v288_v60 }
  0x22   : > { %306 = vst.msk [vmem:[%s592_s6 + $0x60] sm:$0xff] %vm293_vm0, %v289_v61  ;;  %307 = vst.msk [vmem:[%s592_s6 + $0x68] sm:$0xff] %vm293_vm0, %v290_v62  ;;  %v292_v0 = vmax.f32 %v276_v63, 0.0 }
  0x23   : > { %308 = vst.msk [vmem:[%s592_s6 + $0x70] sm:$0xff] %vm293_vm0, %v291_v2 }
  0x24   : > { %309 = vst.msk [vmem:[%s592_s6 + $0x78] sm:$0xff] %vm293_vm0, %v292_v0 }
  0x25 PF: > { %s13_s16 = sadd.s32 1, %s504_s16   ;;  %s675_s12 = smov %s496_s14 }
  0x26   : > { %p10_p7 = scmp.ge.s32.totalorder %s13_s16, 6   ;;  %s676_s13 = smov %s500_s15 }
  0x27   : > { %s677_s14 = smov %s680_s17  ;;  %s678_s15 = smov %s684_s18 }
  0x28   :  { %12 = sbr.rel (!%p10_p7) target bundleno = 3 (0x3), region = 62 }

// kernel: bridge_forward.3
= control target key start
LH: loop header
LB: loop body
LE: loop exit
PB: predicated region body
PF: predicated region fallthrough
CT: control target
= control target key end

     0   :  { %s2443_s18 = smov 0   ;;  %s2445_s19 = smov 0   ;;  %s3073_s0 = inlined_call_operand.vmem [shape: f32[2,16,16,4], index: 0, kind: input, shape index: {}]   ;;  %s3074_s1 = inlined_call_operand.vmem [shape: bf16[36,8], index: 1, kind: input, shape index: {}]   ;;  %s3075_s2 = inlined_call_operand.vmem [shape: f32[1,4], index: 2, kind: input, shape index: {}]   ;;  %s3076_s3 = inlined_call_operand.vmem [shape: f32[1,4], index: 3, kind: input, shape index: {}]   ;;  %s3077_s4 = inlined_call_operand.vmem [shape: f32[2,16,16,8], index: 4, kind: output, shape index: {0}]   ;;  %s3078_s5 = inlined_call_operand.vmem [shape: f32[2,2,2,8], index: 5, kind: output, shape index: {1}]  }
   0x1   :  { %s2447_s20 = smov 0   ;;  %s2449_s21 = smov 0  }
   0x2   :  { %s2451_s22 = smov 0  }
   0x3 LB: > { %s25_s2 = sadd.s32 1, %s2394_s20  ;;  %s28_s3 = sadd.s32 1, %s2398_s21  ;;  %s2402_s22 = sphi %s2451_s22, %s16_s22   ;;  %s2398_s21 = sphi %s2449_s21, %s3082_s21   ;;  %s2394_s20 = sphi %s2447_s20, %s3081_s20   ;;  %s2390_s19 = sphi %s2445_s19, %s3080_s19   ;;  %s2386_s18 = sphi %s2443_s18, %s3079_s18  }
   0x4   : > { %p26_p0 = scmp.ge.s32.totalorder %s25_s2, 2  ;;  %p1938_p1 = scmp.ge.s32.totalorder %s2402_s22, 1 }
   0x5   : > { %p206_p2 = scmp.lt.s32.totalorder %s2402_s22, 5 }
   0x6   : > { %s3084_s2 = smov (%p26_p0, %s25_s2), 0  ;;  %s3086_s3 = smov (!%p26_p0, %s28_s3), %s2398_s21 }
   0x7   : > { %p207_p3 = pnand %p1938_p1, %p206_p2  ;;  %p30_p4 = scmp.ge.s32.totalorder %s3086_s3, 2 }
   0x8   : > { %p247_p5 = scmp.lt.s32.totalorder (!%p207_p3), %s2390_s19, 1  ;;  %s2479_s23 = sshll.u32 (!%p207_p3), %s2386_s18, 3 }
   0x9   : > { %s3088_s3 = smov (%p30_p4, %s3086_s3), 0  ;;  %210 = sbr.rel (%p207_p3) target bundleno = 636 (0x27c), region = 36 }
   0xa   : > { %s2118_s24 = sshll.u32 (!%p207_p3), %s2386_s18, 7  ;;  %p273_p6 = scmp.eq.s32.totalorder (!%p207_p3), %s2386_s18, 0 }
   0xb   : > { %s1948_s29 = sadd.s32 (!%p207_p3), 4294967295, %s2479_s23  ;;  %s2405_s8 = smov (!%p207_p3), 4  }
   0xc   : > { %s2406_s9 = smov (!%p207_p3), 8   ;;  %s2407_s10 = smov (!%p207_p3), 12  }
   0xd   : > { %s2408_s11 = smov (!%p207_p3), 16   ;;  %s2409_s12 = smov (!%p207_p3), 20  }
   0xe   : > { %vm305_vm0 = vcmask 24576   ;;  %v2404_v0 = vmov 0.0   ;;  %s3090_s19 = smov (!%p247_p5, %s2390_s19), 1  ;;  %vm326_vm1 = vcmask 31744   ;;  %s3092_s29 = smov (%p273_p6, %s1948_s29), 15  ;;  %vm429_vm2 = vcmask 27648  }
   0xf   : > { %316 = vst.msk [vmem:[#allocation2 + $0x11] sm:$0x1] %vm305_vm0, %v2404_v0  ;;  %306 = vst.msk [vmem:[#allocation2] sm:$0x1] %vm305_vm0, %v2404_v0  ;;  %s2117_s25 = sshll.u32 %s3090_s19, 8  ;;  %s1949_s6 = sshll.u32 %s3092_s29, 4 }
  0x10   : > { %307 = vst.msk [vmem:[#allocation2 + $0x18] sm:$0x1] %vm305_vm0, %v2404_v0  ;;  %308 = vst.msk [vmem:[#allocation2 + $0x30] sm:$0x1] %vm305_vm0, %v2404_v0  ;;  %s2512_s28 = scalar_lea.vmem %s3073_s0, %s2117_s25  ;;  %s2410_s13 = smov 24   ;;  %vm1580_vm3 = vcmask 1041408  }
  0x11   : > { %309 = vst.msk [vmem:[#allocation2 + $0x48] sm:$0x1] %vm305_vm0, %v2404_v0  ;;  %310 = vst.msk [vmem:[#allocation2 + $0x60] sm:$0x1] %vm305_vm0, %v2404_v0  ;;  %s2516_s30 = scalar_lea.vmem %s2512_s28, %s2118_s24  ;;  %s280_s7 = scalar_lea.vmem %s2512_s28, %s1949_s6  ;;  %vm558_vm4 = vcmask 60448   ;;  %vm687_vm5 = vcmask 93248  }
  0x12   : > { %311 = vst.msk [vmem:[#allocation2 + $0x78] sm:$0x1] %vm305_vm0, %v2404_v0  ;;  %312 = vst.msk [vmem:[#allocation2 + $0x90] sm:$0x1] %vm305_vm0, %v2404_v0  ;;  %v285_v1 = vld [vmem:[%s2516_s30] sm:$0xff]  ;;  %v286_v2 = vld [vmem:[%s2516_s30 + $0x8] sm:$0xff] }
  0x13   : > { %313 = vst.msk [vmem:[#allocation2 + $0xa8] sm:$0x1] %vm305_vm0, %v2404_v0  ;;  %314 = vst.msk [vmem:[#allocation2 + $0xc0] sm:$0x1] %vm305_vm0, %v2404_v0  ;;  %v287_v3 = vld [vmem:[%s2516_s30 + $0x10] sm:$0xff]  ;;  %v288_v4 = vld [vmem:[%s2516_s30 + $0x18] sm:$0xff] }
  0x14   : > { %315 = vst.msk [vmem:[#allocation2 + $0xd8] sm:$0x1] %vm305_vm0, %v2404_v0  ;;  %317 = vst.msk [vmem:[#allocation2 + $0x29] sm:$0x1] %vm305_vm0, %v2404_v0  ;;  %v289_v5 = vld [vmem:[%s2516_s30 + $0x20] sm:$0xff]  ;;  %v290_v6 = vld [vmem:[%s2516_s30 + $0x28] sm:$0xff] }
  0x15   : > { %318 = vst.msk [vmem:[#allocation2 + $0x41] sm:$0x1] %vm305_vm0, %v2404_v0  ;;  %319 = vst.msk [vmem:[#allocation2 + $0x59] sm:$0x1] %vm305_vm0, %v2404_v0  ;;  %v291_v7 = vld [vmem:[%s2516_s30 + $0x30] sm:$0xff]  ;;  %v292_v8 = vld [vmem:[%s2516_s30 + $0x38] sm:$0xff] }
  0x16   : > { %320 = vst.msk [vmem:[#allocation2 + $0x71] sm:$0x1] %vm305_vm0, %v2404_v0  ;;  %321 = vst.msk [vmem:[#allocation2 + $0x89] sm:$0x1] %vm305_vm0, %v2404_v0  ;;  %v293_v9 = vld [vmem:[%s2516_s30 + $0x40] sm:$0xff]  ;;  %v294_v10 = vld [vmem:[%s2516_s30 + $0x48] sm:$0xff] }
  0x17   : > { %322 = vst.msk [vmem:[#allocation2 + $0xa1] sm:$0x1] %vm305_vm0, %v2404_v0  ;;  %323 = vst.msk [vmem:[#allocation2 + $0xb9] sm:$0x1] %vm305_vm0, %v2404_v0  ;;  %v281_v11 = vld [vmem:[%s280_s7] sm:$0xff]  ;;  %v282_v12 = vld [vmem:[%s280_s7 + $0x8] sm:$0xff] }
  0x18   : > { %324 = vst.msk [vmem:[#allocation2 + $0xd1] sm:$0x1] %vm305_vm0, %v2404_v0  ;;  %325 = vst.msk [vmem:[#allocation2 + $0xe9] sm:$0x1] %vm305_vm0, %v2404_v0  ;;  %v295_v53 = vld [vmem:[%s2516_s30 + $0x50] sm:$0xff]  ;;  %v296_v54 = vld [vmem:[%s2516_s30 + $0x58] sm:$0xff] }
  0x19   : > { %330 = vst.msk [vmem:[#allocation2 + $0x19] sm:$0xff] %vm326_vm1, %v285_v1  ;;  %331 = vst.msk [vmem:[#allocation2 + $0x21] sm:$0xff] %vm326_vm1, %v286_v2  ;;  %s2411_s14 = smov 28   ;;  %s2412_s25 = smov 32   ;;  %vm816_vm6 = vcmask 126048   ;;  %vm945_vm7 = vcmask 158848  }
  0x1a   : > { %332 = vst.msk [vmem:[#allocation2 + $0x31] sm:$0xff] %vm326_vm1, %v287_v3  ;;  %333 = vst.msk [vmem:[#allocation2 + $0x39] sm:$0xff] %vm326_vm1, %v288_v4  ;;  %v297_v3 = vld [vmem:[%s2516_s30 + $0x60] sm:$0xff]  ;;  %v298_v4 = vld [vmem:[%s2516_s30 + $0x68] sm:$0xff]  ;;  %p276_p7 = scmp.eq.s32.totalorder %s2386_s18, 1  ;;  %s277_s29 = sadd.s32 8, %s2479_s23 }
  0x1b   : > { %334 = vst.msk [vmem:[#allocation2 + $0x49] sm:$0xff] %vm326_vm1, %v289_v5  ;;  %335 = vst.msk [vmem:[#allocation2 + $0x51] sm:$0xff] %vm326_vm1, %v290_v6  ;;  %vm1074_vm8 = vcmask 191648   ;;  %vm1204_vm9 = vcmask 224448   ;;  %vm1333_vm10 = vcmask 257248   ;;  %vm1462_vm11 = vcmask 290048  }
  0x1c   : > { %336 = vst.msk [vmem:[#allocation2 + $0x61] sm:$0xff] %vm326_vm1, %v291_v7  ;;  %337 = vst.msk [vmem:[#allocation2 + $0x69] sm:$0xff] %vm326_vm1, %v292_v8  ;;  %s3094_s29 = smov (%p276_p7, %s277_s29), 0  ;;  %vm1555_vm12 = vcmask 293888   ;;  %p255_p8 = scmp.lt.s32.totalorder %s2479_s23, 15  ;;  %vm1681_vm13 = vcmask 64512  }
  0x1d   : > { %338 = vst.msk [vmem:[#allocation2 + $0x79] sm:$0xff] %vm326_vm1, %v293_v9  ;;  %339 = vst.msk [vmem:[#allocation2 + $0x81] sm:$0xff] %vm326_vm1, %v294_v10  ;;  %s1943_s7 = sshll.u32 %s3090_s19, 5  ;;  %p265_p9 = scmp.lt.s32.totalorder %s2386_s18, 1  ;;  %vm1735_vm14 = vcmask 57344  }
  0x1e   : > { %327 = vst.msk [vmem:[#allocation2 + $0x1] sm:$0xff] %vm326_vm1, %v281_v11  ;;  %328 = vst.msk [vmem:[#allocation2 + $0x9] sm:$0xff] %vm326_vm1, %v282_v12  ;;  %v2353_v12 = vld [vmem:[%s3074_s1 + $0x10] ss:$0 sps:$4 sm:$0x33]   ;;  %s3096_s23 = smov (!%p255_p8, %s2479_s23), 15 }
  0x1f   : > { %340 = vst.msk [vmem:[#allocation2 + $0x91] sm:$0xff] %vm326_vm1, %v295_v53  ;;  %341 = vst.msk [vmem:[#allocation2 + $0x99] sm:$0xff] %vm326_vm1, %v296_v54  ;;  %2302 = vmatprep.subr.msk.bf16.mxu0 %vm1580_vm3, %v2353_v12  ;;  %2303 = vmatprep.subr.msk.bf16.mxu1 %vm1580_vm3, %v2353_v12  ;;  %s3098_s18 = smov (!%p265_p9, %s2386_s18), 1 }
  0x20   : > { %v448_v13 = vld [vmem:[#allocation2 + $0x19] sm:$0xff]  ;;  %v449_v14 = vld [vmem:[#allocation2 + $0x21] sm:$0xff]  ;;  %342 = vst.msk [vmem:[#allocation2 + $0xa9] sm:$0xff] %vm326_vm1, %v297_v3  ;;  %343 = vst.msk [vmem:[#allocation2 + $0xb1] sm:$0xff] %vm326_vm1, %v298_v4 }
  0x21   : > { %v2541_v15 = vpack.c.bf16 %v448_v13, %v448_v13  ;;  %v705_v16 = vld [vmem:[#allocation2 + $0x20] sm:$0xff]  ;;  %v704_v17 = vld [vmem:[#allocation2 + $0x18] sm:$0xff]  ;;  %v706_v21 = vld [vmem:[#allocation2 + $0x30] sm:$0xff]  ;;  %v2545_v22 = vpack.c.bf16 %v449_v14, %v449_v14  ;;  %v1582_v14 = vsel %vm1580_vm3, %v2353_v12, 0 }
  0x22   : > { %v2168_v18 = vpack.c.bf16 %v705_v16, %v705_v16  ;;  %v2167_v19 = vpack.c.bf16 %v704_v17, %v704_v17  ;;  %v707_v20 = vld [vmem:[#allocation2 + $0x38] sm:$0xff]  ;;  %v2549_v24 = vpack.c.bf16 %v706_v21, %v706_v21  ;;  %v1095_v25 = vld [vmem:[#allocation2 + $0x50] sm:$0xff]  ;;  %v1094_v26 = vld [vmem:[#allocation2 + $0x48] sm:$0xff]  ;;  %2275 = vmatpush3.bf16.msra.mxu0 %v1582_v14  ;;  %2299 = vmatpush3.bf16.msra.mxu1 %v1582_v14 }
  0x23   : > { %514 = vrot.lane.b32.xlu1 %v2541_v15, %s2405_s8  ;;  %v2547_v23 = vpack.c.bf16 %v707_v20, %v707_v20  ;;  %v2553_v30 = vpack.c.bf16 %v1095_v25, %v1095_v25  ;;  %v2555_v31 = vpack.c.bf16 %v1094_v26, %v1094_v26  ;;  %v711_v34 = vld [vmem:[#allocation2 + $0x68] sm:$0xff]  ;;  %v710_v35 = vld [vmem:[#allocation2 + $0x60] sm:$0xff]  ;;  %v835_v61 = vld [vmem:[#allocation2 + $0x31] sm:$0xff] }
  0x24   : > { %432 = vst.msk [vmem:[#allocation3 + $0x8] sm:$0xf] %vm429_vm2, %v2167_v19  ;;  %433 = vst.msk [vmem:[#allocation3 + $0xc] sm:$0xf] %vm429_vm2, %v2168_v18  ;;  %v578_v37 = vld [vmem:[#allocation2 + $0x22] sm:$0xff]  ;;  %v2568_v38 = vpack.c.bf16 %v711_v34, %v711_v34  ;;  %v2570_v39 = vpack.c.bf16 %v710_v35, %v710_v35  ;;  %v1098_v42 = vld [vmem:[#allocation2 + $0x78] sm:$0xff]  ;;  %v2185_v62 = vpack.c.bf16 %v835_v61, %v835_v61 }
  0x25   : > { %v446_v27 = vld [vmem:[#allocation2 + $0x1] sm:$0xff]  ;;  %v447_v28 = vld [vmem:[#allocation2 + $0x9] sm:$0xff]  ;;  %435 = vst.msk [vmem:[#allocation3 + $0x14] sm:$0xf] %vm429_vm2, %v2547_v23  ;;  %434 = vst.msk [vmem:[#allocation3 + $0x10] sm:$0xf] %vm429_vm2, %v2549_v24  ;;  %v2574_v44 = vpack.c.bf16 %v1098_v42, %v1098_v42  ;;  %v2154_v46 = vpack.c.bf16 %v578_v37, %v578_v37 }
  0x26   : > { %v576_v29 = vld [vmem:[#allocation2 + $0xa] sm:$0xff]  ;;  %v2135_v32 = vpack.c.bf16 %v446_v27, %v446_v27  ;;  %437 = vst.msk [vmem:[#allocation3 + $0x1c] sm:$0xf] %vm429_vm2, %v2553_v30  ;;  %436 = vst.msk [vmem:[#allocation3 + $0x18] sm:$0xf] %vm429_vm2, %v2555_v31  ;;  %v2136_v36 = vpack.c.bf16 %v447_v28, %v447_v28  ;;  %v575_v40 = vld [vmem:[#allocation2 + $0x2] sm:$0xff] }
  0x27   : > { %516 = vrot.lane.b32.xlu1 %v2545_v22, %s2405_s8  ;;  %v2152_v33 = vpack.c.bf16 %v576_v29, %v576_v29  ;;  %v1099_v41 = vld [vmem:[#allocation2 + $0x80] sm:$0xff]  ;;  %439 = vst.msk [vmem:[#allocation3 + $0x24] sm:$0xf] %vm429_vm2, %v2568_v38  ;;  %438 = vst.msk [vmem:[#allocation3 + $0x20] sm:$0xf] %vm429_vm2, %v2570_v39  ;;  %v350_v48 = vld [vmem:[#allocation2 + $0x8] sm:$0xff]  ;;  %v2151_v49 = vpack.c.bf16 %v575_v40, %v575_v40 }
  0x28   : > { %510 = vrot.lane.b32.xlu0 %v2135_v32, %s2405_s8  ;;  %v2572_v43 = vpack.c.bf16 %v1099_v41, %v1099_v41  ;;  %v349_v45 = vld [vmem:[#allocation2] sm:$0xff]  ;;  %v2120_v50 = vpack.c.bf16 %v350_v48, %v350_v48  ;;  %440 = vst.msk [vmem:[#allocation3 + $0x28] sm:$0xf] %vm429_vm2, %v2574_v44  ;;  %v715_v56 = vld [vmem:[#allocation2 + $0x98] sm:$0xff]  ;;  %v714_v57 = vld [vmem:[#allocation2 + $0x90] sm:$0xff] }
  0x29   : > { %v2119_v47 = vpack.c.bf16 %v349_v45, %v349_v45  ;;  %v577_v51 = vld [vmem:[#allocation2 + $0x1a] sm:$0xff]  ;;  %v2599_v58 = vpack.c.bf16 %v715_v56, %v715_v56  ;;  %v2601_v59 = vpack.c.bf16 %v714_v57, %v714_v57  ;;  %v964_v1 = vld [vmem:[#allocation2 + $0x32] sm:$0xff]  ;;  %v1102_v6 = vld [vmem:[#allocation2 + $0xa8] sm:$0xff] }
  0x2a   : > { %441 = vst.msk [vmem:[#allocation3 + $0x2c] sm:$0xf] %vm429_vm2, %v2572_v43  ;;  %431 = vst.msk [vmem:[#allocation3 + $0x4] sm:$0xf] %vm429_vm2, %v2120_v50  ;;  %v2153_v52 = vpack.c.bf16 %v577_v51, %v577_v51  ;;  %v836_v55 = vld [vmem:[#allocation2 + $0x39] sm:$0xff]  ;;  %v2201_v2 = vpack.c.bf16 %v964_v1, %v964_v1  ;;  %v1224_v5 = vld [vmem:[#allocation2 + $0x51] sm:$0xff]  ;;  %v2629_v8 = vpack.c.bf16 %v1102_v6, %v1102_v6 }
  0x2b   : > { %641 = vrot.lane.b32.xlu1 %v2152_v33, %s2406_s9  ;;  %430 = vst.msk [vmem:[#allocation3] sm:$0xf] %vm429_vm2, %v2119_v47  ;;  %v2186_v60 = vpack.c.bf16 %v836_v55, %v836_v55  ;;  %443 = vst.msk [vmem:[#allocation3 + $0x34] sm:$0xf] %vm429_vm2, %v2599_v58  ;;  %v965_v63 = vld [vmem:[#allocation2 + $0x3a] sm:$0xff]  ;;  %v1103_v7 = vld [vmem:[#allocation2 + $0xb0] sm:$0xff]  ;;  %v2234_v9 = vpack.c.bf16 %v1224_v5, %v1224_v5 }
  0x2c   : > { %512 = vrot.lane.b32.xlu0 %v2136_v36, %s2405_s8  ;;  %442 = vst.msk [vmem:[#allocation3 + $0x30] sm:$0xf] %vm429_vm2, %v2601_v59  ;;  %v2202_v0 = vpack.c.bf16 %v965_v63, %v965_v63  ;;  %v2632_v10 = vpack.c.bf16 %v1103_v7, %v1103_v7  ;;  %444 = vst.msk [vmem:[#allocation3 + $0x38] sm:$0xf] %vm429_vm2, %v2629_v8  ;;  %v1223_v11 = vld [vmem:[#allocation2 + $0x49] sm:$0xff]  ;;  %v1353_v16 = vld [vmem:[#allocation2 + $0x52] sm:$0xff] }
  0x2d   : > { %v2233_v13 = vpack.c.bf16 %v1223_v11, %v1223_v11  ;;  %v2356_v17 = vld [vmem:[%s3074_s1] sm:$0xff]   ;;  %v299_v21 = vld [vmem:[%s2516_s30 + $0x70] sm:$0xff] }
  0x2e   : > { %445 = vst.msk [vmem:[#allocation3 + $0x3c] sm:$0xf] %vm429_vm2, %v2632_v10  ;;  %v839_v25 = vld [vmem:[#allocation2 + $0x61] sm:$0xff]  ;;  %v969_v27 = vld [vmem:[#allocation2 + $0x6a] sm:$0xff]  ;;  %v1227_v36 = vld [vmem:[#allocation2 + $0x79] sm:$0xff] }
  0x2f   : > { %645 = vrot.lane.b32.xlu1 %v2154_v46, %s2406_s9  ;;  %344 = vst.msk [vmem:[#allocation2 + $0xc1] sm:$0xff] %vm326_vm1, %v299_v21  ;;  %v2189_v26 = vpack.c.bf16 %v839_v25, %v839_v25  ;;  %v2680_v28 = vpack.c.bf16 %v969_v27, %v969_v27  ;;  %v968_v29 = vld [vmem:[#allocation2 + $0x62] sm:$0xff]  ;;  %v2707_v37 = vpack.c.bf16 %v1227_v36, %v1227_v36  ;;  %v1356_v47 = vld [vmem:[#allocation2 + $0x7a] sm:$0xff]  ;;  %v972_v11 = vld [vmem:[#allocation2 + $0x92] sm:$0xff] }
  0x30   : > { %639 = vrot.lane.b32.xlu0 %v2151_v49, %s2406_s9  ;;  %v1228_v33 = vld [vmem:[#allocation2 + $0x81] sm:$0xff]  ;;  %v2726_v49 = vpack.c.bf16 %v1356_v47, %v1356_v47  ;;  %v1361_v27 = vld [vmem:[#allocation2 + $0xb2] sm:$0xff] }
  0x31   : > { %v2699_v34 = vpack.c.bf16 %v1228_v33, %v1228_v33  ;;  %v1357_v40 = vld [vmem:[#allocation2 + $0x82] sm:$0xff]  ;;  %v973_v4 = vld [vmem:[#allocation2 + $0x9a] sm:$0xff] }
  0x32   : > { %v2717_v45 = vpack.c.bf16 %v1357_v40, %v1357_v40  ;;  %v2777_v7 = vpack.c.bf16 %v973_v4, %v973_v4 }
  0x33   : > { %770 = vrot.lane.b32.xlu1 %v2168_v18, %s2407_s10  ;;  %v2250_v18 = vpack.c.bf16 %v1353_v16, %v1353_v16 }
  0x34   : > { %643 = vrot.lane.b32.xlu0 %v2153_v52, %s2406_s9 }
  0x37   : > { %774 = vrot.lane.b32.xlu1 %v2547_v23, %s2407_s10 }
  0x38   : > { %768 = vrot.lane.b32.xlu0 %v2167_v19, %s2407_s10  ;;  %v1352_v19 = vld [vmem:[#allocation2 + $0x4a] sm:$0xff] }
  0x39   : > { %v2249_v20 = vpack.c.bf16 %v1352_v19, %v1352_v19 }
  0x3b   : > { %899 = vrot.lane.b32.xlu1 %v2545_v22, %s2408_s11  ;;  %v300_v22 = vld [vmem:[%s2516_s30 + $0x78] sm:$0xff]  ;;  %s1951_s30 = sshll.u32 %s3094_s29, 4 }
  0x3c   : > { %772 = vrot.lane.b32.xlu0 %v2549_v24, %s2407_s10  ;;  %345 = vst.msk [vmem:[#allocation2 + $0xc9] sm:$0xff] %vm326_vm1, %v300_v22  ;;  %s302_s6 = scalar_lea.vmem %s2512_s28, %s1951_s30  ;;  %v1231_v22 = vld [vmem:[#allocation2 + $0xa9] sm:$0xff]  ;;  %s1942_s28 = sshll.u32 %s3096_s23, 1 }
  0x3d   : > { %v304_v32 = vld [vmem:[%s302_s6 + $0x8] sm:$0xff]  ;;  %s1945_s23 = sshll.u32 %s3090_s19, 1 }
  0x3e   : > { %348 = vst.msk [vmem:[#allocation2 + $0xe1] sm:$0xff] %vm326_vm1, %v304_v32  ;;  %v1360_v32 = vld [vmem:[#allocation2 + $0xaa] sm:$0xff] }
  0x3f   : > { %903 = vrot.lane.b32.xlu1 %v2186_v60, %s2408_s11 }
  0x40   : > { %897 = vrot.lane.b32.xlu0 %v2541_v15, %s2408_s11  ;;  %v2354_v15 = vld [vmem:[%s3074_s1 + $0x8] sm:$0xff]  }
  0x41   : > { %2276 = vmatprep.subr.bf16.mxu0 %v2354_v15  ;;  %2297 = vmatprep.subr.bf16.mxu1 %v2354_v15 }
  0x42   : > { %2277 = vmatpush3.bf16.msra.mxu0 %v2354_v15  ;;  %2300 = vmatpush3.bf16.msra.mxu1 %v2354_v15 }
  0x43   : > { %1028 = vrot.lane.b32.xlu1 %v2154_v46, %s2409_s12  ;;  %2278 = vmatprep.subr.bf16.mxu0 %v2356_v17 }
  0x44   : > { %901 = vrot.lane.b32.xlu0 %v2185_v62, %s2408_s11  ;;  %2298 = vmatprep.subr.bf16.mxu1 %v2356_v17 }
  0x46   : > { %2279 = vmatpush3.bf16.msra.mxu0 %v2356_v17  ;;  %2301 = vmatpush3.bf16.msra.mxu1 %v2356_v17 }
  0x47   : > { %1032 = vrot.lane.b32.xlu1 %v2202_v0, %s2409_s12 }
  0x48   : > { %1026 = vrot.lane.b32.xlu0 %v2153_v52, %s2409_s12 }
  0x4b   : > { %1158 = vrot.lane.b32.xlu1 %v2547_v23, %s2410_s13  ;;  %v840_v23 = vld [vmem:[#allocation2 + $0x69] sm:$0xff] }
  0x4c   : > { %1030 = vrot.lane.b32.xlu0 %v2201_v2, %s2409_s12 }
  0x4f   : > { %1162 = vrot.lane.b32.xlu1 %v2553_v30, %s2410_s13 }
  0x50   : > { %1156 = vrot.lane.b32.xlu0 %v2549_v24, %s2410_s13  ;;  %v2190_v24 = vpack.c.bf16 %v840_v23, %v840_v23 }
  0x53   : > { %1287 = vrot.lane.b32.xlu1 %v2186_v60, %s2411_s14 }
  0x54   : > { %1160 = vrot.lane.b32.xlu0 %v2555_v31, %s2410_s13 }
  0x57   : > { %1291 = vrot.lane.b32.xlu1 %v2234_v9, %s2411_s14 }
  0x58   : > { %1285 = vrot.lane.b32.xlu0 %v2185_v62, %s2411_s14 }
  0x5b   : > { %1416 = vrot.lane.b32.xlu1 %v2202_v0, %s2412_s25 }
  0x5c   : > { %1289 = vrot.lane.b32.xlu0 %v2233_v13, %s2411_s14 }
  0x5f   : > { %520 = vrot.lane.b32.xlu1 %v2186_v60, %s2405_s8 }
  0x60   : > { %1414 = vrot.lane.b32.xlu0 %v2201_v2, %s2412_s25 }
  0x63   : > { %1420 = vrot.lane.b32.xlu1 %v2250_v18, %s2412_s25 }
  0x64   : > { %518 = vrot.lane.b32.xlu0 %v2185_v62, %s2405_s8  ;;  %v844_v62 = vld [vmem:[#allocation2 + $0x99] sm:$0xff] }
  0x67   : > { %524 = vrot.lane.b32.xlu1 %v2234_v9, %s2405_s8 }
  0x68   : > { %1418 = vrot.lane.b32.xlu0 %v2249_v20, %s2412_s25 }
  0x6b   : > { %649 = vrot.lane.b32.xlu1 %v2202_v0, %s2406_s9 }
  0x6c   : > { %522 = vrot.lane.b32.xlu0 %v2233_v13, %s2405_s8 }
  0x6f   : > { %653 = vrot.lane.b32.xlu1 %v2250_v18, %s2406_s9 }
  0x70   : > { %647 = vrot.lane.b32.xlu0 %v2201_v2, %s2406_s9  ;;  %v843_v2 = vld [vmem:[#allocation2 + $0x91] sm:$0xff] }
  0x73   : > { %778 = vrot.lane.b32.xlu1 %v2553_v30, %s2407_s10  ;;  %v2205_v30 = vpack.c.bf16 %v968_v29, %v968_v29 }
  0x74   : > { %651 = vrot.lane.b32.xlu0 %v2249_v20, %s2406_s9 }
  0x77   : > { %782 = vrot.lane.b32.xlu1 %v2568_v38, %s2407_s10 }
  0x78   : > { %776 = vrot.lane.b32.xlu0 %v2555_v31, %s2407_s10  ;;  %v303_v31 = vld [vmem:[%s302_s6] sm:$0xff] }
  0x79   : > { %347 = vst.msk [vmem:[#allocation2 + $0xd9] sm:$0xff] %vm326_vm1, %v303_v31 }
  0x7b   : > { %907 = vrot.lane.b32.xlu1 %v2234_v9, %s2408_s11 }
  0x7c   : > { %780 = vrot.lane.b32.xlu0 %v2570_v39, %s2407_s10 }
  0x7f   : > { %911 = vrot.lane.b32.xlu1 %v2190_v24, %s2408_s11 }
  0x80   : > { %905 = vrot.lane.b32.xlu0 %v2233_v13, %s2408_s11  ;;  %v2787_v13 = vpack.c.bf16 %v972_v11, %v972_v11 }
  0x83   : > { %1036 = vrot.lane.b32.xlu1 %v2250_v18, %s2409_s12  ;;  %v1232_v18 = vld [vmem:[#allocation2 + $0xb1] sm:$0xff] }
  0x84   : > { %909 = vrot.lane.b32.xlu0 %v2189_v26, %s2408_s11 }
  0x87   : > { %1040 = vrot.lane.b32.xlu1 %v2680_v28, %s2409_s12 }
  0x88   : > { %1034 = vrot.lane.b32.xlu0 %v2249_v20, %s2409_s12 }
  0x8b   : > { %1166 = vrot.lane.b32.xlu1 %v2568_v38, %s2410_s13 }
  0x8c   : > { %1038 = vrot.lane.b32.xlu0 %v2205_v30, %s2409_s12 }
  0x8f   : > { %1170 = vrot.lane.b32.xlu1 %v2572_v43, %s2410_s13 }
  0x90   : > { %1164 = vrot.lane.b32.xlu0 %v2570_v39, %s2410_s13 }
  0x93   : > { %1295 = vrot.lane.b32.xlu1 %v2190_v24, %s2411_s14 }
  0x94   : > { %1168 = vrot.lane.b32.xlu0 %v2574_v44, %s2410_s13 }
  0x95   : > { %v515_v35 = vpop.permute.xlu1 %514 }
  0x96   : > { %561 = vst.msk [vmem:[#allocation3 + $0x8] sm:$0xf] %vm558_vm4, %v515_v35  ;;  %v2839_v35 = vpack.c.bf16 %v1360_v32, %v1360_v32 }
  0x97   : > { %1299 = vrot.lane.b32.xlu1 %v2699_v34, %s2411_s14 }
  0x98   : > { %1293 = vrot.lane.b32.xlu0 %v2189_v26, %s2411_s14 }
  0x99   : > { %v517_v38 = vpop.permute.xlu1 %516 }
  0x9a   : > { %v511_v39 = vpop.permute.xlu0 %510  ;;  %562 = vst.msk [vmem:[#allocation3 + $0xc] sm:$0xf] %vm558_vm4, %v517_v38 }
  0x9b   : > { %559 = vst.msk [vmem:[#allocation3] sm:$0xf] %vm558_vm4, %v511_v39  ;;  %1424 = vrot.lane.b32.xlu1 %v2680_v28, %s2412_s25 }
  0x9c   : > { %1297 = vrot.lane.b32.xlu0 %v2707_v37, %s2411_s14 }
  0x9d   : > { %v642_v41 = vpop.permute.xlu1 %641 }
  0x9e   : > { %v513_v42 = vpop.permute.xlu0 %512 }
  0x9f   : > { %560 = vst.msk [vmem:[#allocation3 + $0x4] sm:$0xf] %vm558_vm4, %v513_v42  ;;  %528 = vrot.lane.b32.xlu1 %v2190_v24, %s2405_s8  ;;  %v719_v42 = vld [vmem:[#allocation2 + $0xc8] sm:$0xff] }
  0xa0   : > { %1422 = vrot.lane.b32.xlu0 %v2205_v30, %s2412_s25  ;;  %689 = vst.msk [vmem:[#allocation3 + $0x4] sm:$0xf] %vm687_vm5, %v642_v41  ;;  %v2182_v47 = vpack.c.bf16 %v719_v42, %v719_v42 }
  0xa1   : > { %v646_v46 = vpop.permute.xlu1 %645 }
  0xa2   : > { %v640_v48 = vpop.permute.xlu0 %639  ;;  %691 = vst.msk [vmem:[#allocation3 + $0xc] sm:$0xf] %vm687_vm5, %v646_v46 }
  0xa3   : > { %688 = vst.msk [vmem:[#allocation3] sm:$0xf] %vm687_vm5, %v640_v48  ;;  %1428 = vrot.lane.b32.xlu1 %v2717_v45, %s2412_s25 }
  0xa4   : > { %526 = vrot.lane.b32.xlu0 %v2189_v26, %s2405_s8 }
  0xa5   : > { %v771_v50 = vpop.permute.xlu1 %770 }
  0xa6   : > { %v644_v51 = vpop.permute.xlu0 %643  ;;  %818 = vst.msk [vmem:[#allocation3 + $0x4] sm:$0xf] %vm816_vm6, %v771_v50 }
  0xa7   : > { %690 = vst.msk [vmem:[#allocation3 + $0x8] sm:$0xf] %vm687_vm5, %v644_v51  ;;  %532 = vrot.lane.b32.xlu1 %v2699_v34, %s2405_s8 }
  0xa8   : > { %1426 = vrot.lane.b32.xlu0 %v2726_v49, %s2412_s25 }
  0xa9   : > { %v775_v52 = vpop.permute.xlu1 %774 }
  0xaa   : > { %v769_v53 = vpop.permute.xlu0 %768  ;;  %820 = vst.msk [vmem:[#allocation3 + $0xc] sm:$0xf] %vm816_vm6, %v775_v52  ;;  %v848_v52 = vld [vmem:[#allocation2 + $0xc9] sm:$0xff] }
  0xab   : > { %817 = vst.msk [vmem:[#allocation3] sm:$0xf] %vm816_vm6, %v769_v53  ;;  %657 = vrot.lane.b32.xlu1 %v2680_v28, %s2406_s9 }
  0xac   : > { %530 = vrot.lane.b32.xlu0 %v2707_v37, %s2405_s8 }
  0xad   : > { %v900_v54 = vpop.permute.xlu1 %899 }
  0xae   : > { %v773_v55 = vpop.permute.xlu0 %772  ;;  %947 = vst.msk [vmem:[#allocation3 + $0x4] sm:$0xf] %vm945_vm7, %v900_v54  ;;  %v2198_v54 = vpack.c.bf16 %v848_v52, %v848_v52 }
  0xaf   : > { %819 = vst.msk [vmem:[#allocation3 + $0x8] sm:$0xf] %vm816_vm6, %v773_v55  ;;  %661 = vrot.lane.b32.xlu1 %v2717_v45, %s2406_s9 }
  0xb0   : > { %655 = vrot.lane.b32.xlu0 %v2205_v30, %s2406_s9  ;;  %v2828_v30 = vpack.c.bf16 %v1361_v27, %v1361_v27 }
  0xb1   : > { %v904_v56 = vpop.permute.xlu1 %903 }
  0xb2   : > { %v898_v57 = vpop.permute.xlu0 %897  ;;  %949 = vst.msk [vmem:[#allocation3 + $0xc] sm:$0xf] %vm945_vm7, %v904_v56  ;;  %v847_v56 = vld [vmem:[#allocation2 + $0xc1] sm:$0xff] }
  0xb3   : > { %946 = vst.msk [vmem:[#allocation3] sm:$0xf] %vm945_vm7, %v898_v57  ;;  %786 = vrot.lane.b32.xlu1 %v2572_v43, %s2407_s10  ;;  %v2761_v43 = vpack.c.bf16 %v844_v62, %v844_v62 }
  0xb4   : > { %659 = vrot.lane.b32.xlu0 %v2726_v49, %s2406_s9 }
  0xb5   : > { %v1029_v60 = vpop.permute.xlu1 %1028 }
  0xb6   : > { %v902_v61 = vpop.permute.xlu0 %901  ;;  %1076 = vst.msk [vmem:[#allocation3 + $0x4] sm:$0xf] %vm1074_vm8, %v1029_v60  ;;  %v977_v60 = vld [vmem:[#allocation2 + $0xca] sm:$0xff] }
  0xb7   : > { %948 = vst.msk [vmem:[#allocation3 + $0x8] sm:$0xf] %vm945_vm7, %v902_v61  ;;  %790 = vrot.lane.b32.xlu1 %v2599_v58, %s2407_s10 }
  0xb8   : > { %784 = vrot.lane.b32.xlu0 %v2574_v44, %s2407_s10  ;;  %v2771_v44 = vpack.c.bf16 %v843_v2, %v843_v2 }
  0xb9   : > { %v1033_v63 = vpop.permute.xlu1 %1032 }
  0xba   : > { %v1027_v0 = vpop.permute.xlu0 %1026  ;;  %1078 = vst.msk [vmem:[#allocation3 + $0xc] sm:$0xf] %vm1074_vm8, %v1033_v63  ;;  %v2214_v63 = vpack.c.bf16 %v977_v60, %v977_v60 }
  0xbb   : > { %1075 = vst.msk [vmem:[#allocation3] sm:$0xf] %vm1074_vm8, %v1027_v0  ;;  %915 = vrot.lane.b32.xlu1 %v2699_v34, %s2408_s11 }
  0xbc   : > { %788 = vrot.lane.b32.xlu0 %v2601_v59, %s2407_s10 }
  0xbd   : > { %v1159_v1 = vpop.permute.xlu1 %1158 }
  0xbe   : > { %v1031_v3 = vpop.permute.xlu0 %1030  ;;  %1206 = vst.msk [vmem:[#allocation3 + $0x4] sm:$0xf] %vm1204_vm9, %v1159_v1 }
  0xbf   : > { %1077 = vst.msk [vmem:[#allocation3 + $0x8] sm:$0xf] %vm1074_vm8, %v1031_v3  ;;  %919 = vrot.lane.b32.xlu1 %v2761_v43, %s2408_s11  ;;  %v1107_v3 = vld [vmem:[#allocation2 + $0xe0] sm:$0xff] }
  0xc0   : > { %913 = vrot.lane.b32.xlu0 %v2707_v37, %s2408_s11 }
  0xc1   : > { %v1163_v5 = vpop.permute.xlu1 %1162 }
  0xc2   : > { %v1157_v6 = vpop.permute.xlu0 %1156  ;;  %1208 = vst.msk [vmem:[#allocation3 + $0xc] sm:$0xf] %vm1204_vm9, %v1163_v5  ;;  %v2230_v5 = vpack.c.bf16 %v1107_v3, %v1107_v3 }
  0xc3   : > { %1205 = vst.msk [vmem:[#allocation3] sm:$0xf] %vm1204_vm9, %v1157_v6  ;;  %1044 = vrot.lane.b32.xlu1 %v2717_v45, %s2409_s12 }
  0xc4   : > { %917 = vrot.lane.b32.xlu0 %v2771_v44, %s2408_s11 }
  0xc5   : > { %v1288_v9 = vpop.permute.xlu1 %1287 }
  0xc6   : > { %v1161_v12 = vpop.permute.xlu0 %1160  ;;  %1335 = vst.msk [vmem:[#allocation3 + $0x4] sm:$0xf] %vm1333_vm10, %v1288_v9 }
  0xc7   : > { %1207 = vst.msk [vmem:[#allocation3 + $0x8] sm:$0xf] %vm1204_vm9, %v1161_v12  ;;  %1048 = vrot.lane.b32.xlu1 %v2777_v7, %s2409_s12  ;;  %v1236_v12 = vld [vmem:[#allocation2 + $0xe1] sm:$0xff] }
  0xc8   : > { %1042 = vrot.lane.b32.xlu0 %v2726_v49, %s2409_s12  ;;  %v718_v49 = vld [vmem:[#allocation2 + $0xc0] sm:$0xff] }
  0xc9   : > { %v1292_v14 = vpop.permute.xlu1 %1291  ;;  %v2181_v51 = vpack.c.bf16 %v718_v49, %v718_v49 }
  0xca   : > { %v1286_v15 = vpop.permute.xlu0 %1285  ;;  %1337 = vst.msk [vmem:[#allocation3 + $0xc] sm:$0xf] %vm1333_vm10, %v1292_v14 }
  0xcb   : > { %1334 = vst.msk [vmem:[#allocation3] sm:$0xf] %vm1333_vm10, %v1286_v15  ;;  %1174 = vrot.lane.b32.xlu1 %v2599_v58, %s2410_s13  ;;  %v2805_v58 = vpack.c.bf16 %v1232_v18, %v1232_v18  ;;  %v2246_v15 = vpack.c.bf16 %v1236_v12, %v1236_v12 }
  0xcc   : > { %1046 = vrot.lane.b32.xlu0 %v2787_v13, %s2409_s12 }
  0xcd   : > { %v1417_v16 = vpop.permute.xlu1 %1416 }
  0xce   : > { %v1290_v17 = vpop.permute.xlu0 %1289  ;;  %1464 = vst.msk [vmem:[#allocation3 + $0x4] sm:$0xf] %vm1462_vm11, %v1417_v16 }
  0xcf   : > { %1336 = vst.msk [vmem:[#allocation3 + $0x8] sm:$0xf] %vm1333_vm10, %v1290_v17  ;;  %1178 = vrot.lane.b32.xlu1 %v2632_v10, %s2410_s13  ;;  %v1235_v17 = vld [vmem:[#allocation2 + $0xd9] sm:$0xff] }
  0xd0   : > { %1172 = vrot.lane.b32.xlu0 %v2601_v59, %s2410_s13  ;;  %v2815_v59 = vpack.c.bf16 %v1231_v22, %v1231_v22 }
  0xd1   : > { %v521_v19 = vpop.permute.xlu1 %520 }
  0xd2   : > { %v1415_v20 = vpop.permute.xlu0 %1414  ;;  %564 = vst.msk [vmem:[#allocation3 + $0x14] sm:$0xf] %vm558_vm4, %v521_v19  ;;  %v2245_v19 = vpack.c.bf16 %v1235_v17, %v1235_v17 }
  0xd3   : > { %1463 = vst.msk [vmem:[#allocation3] sm:$0xf] %vm1462_vm11, %v1415_v20  ;;  %1303 = vrot.lane.b32.xlu1 %v2761_v43, %s2411_s14  ;;  %v1365_v20 = vld [vmem:[#allocation2 + $0xe2] sm:$0xff] }
  0xd4   : > { %1176 = vrot.lane.b32.xlu0 %v2629_v8, %s2410_s13 }
  0xd5   : > { %v1421_v21 = vpop.permute.xlu1 %1420 }
  0xd6   : > { %v519_v23 = vpop.permute.xlu0 %518  ;;  %1466 = vst.msk [vmem:[#allocation3 + $0xc] sm:$0xf] %vm1462_vm11, %v1421_v21 }
  0xd7   : > { %563 = vst.msk [vmem:[#allocation3 + $0x10] sm:$0xf] %vm558_vm4, %v519_v23  ;;  %1307 = vrot.lane.b32.xlu1 %v2805_v58, %s2411_s14  ;;  %v2262_v23 = vpack.c.bf16 %v1365_v20, %v1365_v20 }
  0xd8   : > { %1301 = vrot.lane.b32.xlu0 %v2771_v44, %s2411_s14 }
  0xd9   : > { %v525_v24 = vpop.permute.xlu1 %524 }
  0xda   : > { %v1419_v25 = vpop.permute.xlu0 %1418  ;;  %v2355_v26 = vld [vmem:[#allocation3] sm:$0xff]   ;;  %566 = vst.msk [vmem:[#allocation3 + $0x1c] sm:$0xf] %vm558_vm4, %v525_v24  ;;  %v1364_v24 = vld [vmem:[#allocation2 + $0xda] sm:$0xff] }
  0xdb   : > { %1465 = vst.msk [vmem:[#allocation3 + $0x8] sm:$0xf] %vm1462_vm11, %v1419_v25  ;;  %1432 = vrot.lane.b32.xlu1 %v2777_v7, %s2412_s25  ;;  %2280 = vmatprep.mubr.msk.bf16.mxu0 %vm1555_vm12, %v2355_v26  ;;  %v2261_v26 = vpack.c.bf16 %v1364_v24, %v1364_v24 }
  0xdc   : > { %1305 = vrot.lane.b32.xlu0 %v2815_v59, %s2411_s14 }
  0xdd   : > { %v650_v28 = vpop.permute.xlu1 %649 }
  0xde   : > { %v523_v29 = vpop.permute.xlu0 %522  ;;  %693 = vst.msk [vmem:[#allocation3 + $0x14] sm:$0xf] %vm687_vm5, %v650_v28 }
  0xdf   : > { %565 = vst.msk [vmem:[#allocation3 + $0x18] sm:$0xf] %vm558_vm4, %v523_v29  ;;  %536 = vrot.lane.b32.xlu1 %v2761_v43, %s2405_s8  ;;  %v976_v43 = vld [vmem:[#allocation2 + $0xc2] sm:$0xff] }
  0xe0   : > { %1430 = vrot.lane.b32.xlu0 %v2787_v13, %s2412_s25  ;;  %v2213_v2 = vpack.c.bf16 %v976_v43, %v976_v43 }
  0xe1   : > { %v654_v31 = vpop.permute.xlu1 %653 }
  0xe2   : > { %v648_v33 = vpop.permute.xlu0 %647  ;;  %v2357_v34 = vld [vmem:[#allocation3 + $0x8] sm:$0xff]   ;;  %695 = vst.msk [vmem:[#allocation3 + $0x1c] sm:$0xf] %vm687_vm5, %v654_v31 }
  0xe3   : > { %692 = vst.msk [vmem:[#allocation3 + $0x10] sm:$0xf] %vm687_vm5, %v648_v33  ;;  %1436 = vrot.lane.b32.xlu1 %v2828_v30, %s2412_s25  ;;  %2281 = vmatmul.mubr.msk.bf16.vlgmr.msra.gmra.mxu0 %vm1555_vm12, %v2357_v34 }
  0xe4   : > { %534 = vrot.lane.b32.xlu0 %v2771_v44, %s2405_s8 }
  0xe5   : > { %v779_v36 = vpop.permute.xlu1 %778 }
  0xe6   : > { %v652_v37 = vpop.permute.xlu0 %651  ;;  %822 = vst.msk [vmem:[#allocation3 + $0x14] sm:$0xf] %vm816_vm6, %v779_v36 }
  0xe7   : > { %694 = vst.msk [vmem:[#allocation3 + $0x18] sm:$0xf] %vm687_vm5, %v652_v37  ;;  %540 = vrot.lane.b32.xlu1 %v2805_v58, %s2405_s8 }
  0xe8   : > { %1434 = vrot.lane.b32.xlu0 %v2839_v35, %s2412_s25 }
  0xe9   : > { %v783_v38 = vpop.permute.xlu1 %782 }
  0xea   : > { %v777_v39 = vpop.permute.xlu0 %776  ;;  %824 = vst.msk [vmem:[#allocation3 + $0x1c] sm:$0xf] %vm816_vm6, %v783_v38 }
  0xeb   : > { %821 = vst.msk [vmem:[#allocation3 + $0x10] sm:$0xf] %vm816_vm6, %v777_v39  ;;  %665 = vrot.lane.b32.xlu1 %v2777_v7, %s2406_s9  ;;  %v1106_v7 = vld [vmem:[#allocation2 + $0xd8] sm:$0xff] }
  0xec   : > { %538 = vrot.lane.b32.xlu0 %v2815_v59, %s2405_s8  ;;  %v2229_v11 = vpack.c.bf16 %v1106_v7, %v1106_v7  ;;  %s259_s8 = sadd.s32 %s1943_s7, %s1942_s28 }
  0xed   : > { %v908_v40 = vpop.permute.xlu1 %907 }
  0xee   : > { %v781_v41 = vpop.permute.xlu0 %780  ;;  %951 = vst.msk [vmem:[#allocation3 + $0x14] sm:$0xf] %vm945_vm7, %v908_v40 }
  0xef   : > { %823 = vst.msk [vmem:[#allocation3 + $0x18] sm:$0xf] %vm816_vm6, %v781_v41  ;;  %669 = vrot.lane.b32.xlu1 %v2828_v30, %s2406_s9 }
  0xf0   : > { %663 = vrot.lane.b32.xlu0 %v2787_v13, %s2406_s9 }
  0xf1   : > { %v912_v45 = vpop.permute.xlu1 %911 }
  0xf2   : > { %v906_v46 = vpop.permute.xlu0 %905  ;;  %953 = vst.msk [vmem:[#allocation3 + $0x1c] sm:$0xf] %vm945_vm7, %v912_v45 }
  0xf3   : > { %950 = vst.msk [vmem:[#allocation3 + $0x10] sm:$0xf] %vm945_vm7, %v906_v46  ;;  %794 = vrot.lane.b32.xlu1 %v2632_v10, %s2407_s10 }
  0xf4   : > { %667 = vrot.lane.b32.xlu0 %v2839_v35, %s2406_s9  ;;  %s1944_s9 = sshll.u32 %s259_s8, 3 }
  0xf5   : > { %v1037_v48 = vpop.permute.xlu1 %1036 }
  0xf6   : > { %v910_v50 = vpop.permute.xlu0 %909  ;;  %1080 = vst.msk [vmem:[#allocation3 + $0x14] sm:$0xf] %vm1074_vm8, %v1037_v48 }
  0xf7   : > { %952 = vst.msk [vmem:[#allocation3 + $0x18] sm:$0xf] %vm945_vm7, %v910_v50  ;;  %798 = vrot.lane.b32.xlu1 %v2182_v47, %s2407_s10 }
  0xf8   : > { %792 = vrot.lane.b32.xlu0 %v2629_v8, %s2407_s10  ;;  %v2197_v8 = vpack.c.bf16 %v847_v56, %v847_v56 }
  0xf9   : > { %v1041_v53 = vpop.permute.xlu1 %1040 }
  0xfa   : > { %v1035_v10 = vpop.permute.xlu0 %1034  ;;  %1082 = vst.msk [vmem:[#allocation3 + $0x1c] sm:$0xf] %vm1074_vm8, %v1041_v53 }
  0xfb   : > { %1079 = vst.msk [vmem:[#allocation3 + $0x10] sm:$0xf] %vm1074_vm8, %v1035_v10  ;;  %923 = vrot.lane.b32.xlu1 %v2805_v58, %s2408_s11 }
  0xfc   : > { %796 = vrot.lane.b32.xlu0 %v2181_v51, %s2407_s10 }
  0xfd   : > { %v1167_v55 = vpop.permute.xlu1 %1166 }
  0xfe   : > { %v1039_v57 = vpop.permute.xlu0 %1038  ;;  %1210 = vst.msk [vmem:[#allocation3 + $0x14] sm:$0xf] %vm1204_vm9, %v1167_v55 }
  0xff   : > { %1081 = vst.msk [vmem:[#allocation3 + $0x18] sm:$0xf] %vm1074_vm8, %v1039_v57  ;;  %927 = vrot.lane.b32.xlu1 %v2198_v54, %s2408_s11 }
 0x100   : > { %921 = vrot.lane.b32.xlu0 %v2815_v59, %s2408_s11 }
 0x101   : > { %v1171_v61 = vpop.permute.xlu1 %1170 }
 0x102   : > { %v1165_v62 = vpop.permute.xlu0 %1164  ;;  %1212 = vst.msk [vmem:[#allocation3 + $0x1c] sm:$0xf] %vm1204_vm9, %v1171_v61 }
 0x103   : > { %1209 = vst.msk [vmem:[#allocation3 + $0x10] sm:$0xf] %vm1204_vm9, %v1165_v62  ;;  %1052 = vrot.lane.b32.xlu1 %v2828_v30, %s2409_s12 }
 0x104   : > { %925 = vrot.lane.b32.xlu0 %v2197_v8, %s2408_s11 }
 0x105   : > { %v1296_v0 = vpop.permute.xlu1 %1295 }
 0x106   : > { %v1169_v1 = vpop.permute.xlu0 %1168  ;;  %1339 = vst.msk [vmem:[#allocation3 + $0x14] sm:$0xf] %vm1333_vm10, %v1296_v0 }
 0x107   : > { %1211 = vst.msk [vmem:[#allocation3 + $0x18] sm:$0xf] %vm1204_vm9, %v1169_v1  ;;  %1056 = vrot.lane.b32.xlu1 %v2214_v63, %s2409_s12 }
 0x108   : > { %1050 = vrot.lane.b32.xlu0 %v2839_v35, %s2409_s12 }
 0x109   : > { %v1300_v44 = vpop.permute.xlu1 %1299 }
 0x10a   : > { %v1294_v4 = vpop.permute.xlu0 %1293  ;;  %1341 = vst.msk [vmem:[#allocation3 + $0x1c] sm:$0xf] %vm1333_vm10, %v1300_v44 }
 0x10b   : > { %1338 = vst.msk [vmem:[#allocation3 + $0x10] sm:$0xf] %vm1333_vm10, %v1294_v4  ;;  %1182 = vrot.lane.b32.xlu1 %v2182_v47, %s2410_s13 }
 0x10c   : > { %1054 = vrot.lane.b32.xlu0 %v2213_v2, %s2409_s12  ;;  %s2986_s12 = scalar_lea.vmem %s3077_s4, %s1944_s9 }
 0x10d   : > { %v1425_v6 = vpop.permute.xlu1 %1424 }
 0x10e   : > { %v1298_v9 = vpop.permute.xlu0 %1297  ;;  %1468 = vst.msk [vmem:[#allocation3 + $0x14] sm:$0xf] %vm1462_vm11, %v1425_v6 }
 0x10f   : > { %1340 = vst.msk [vmem:[#allocation3 + $0x18] sm:$0xf] %vm1333_vm10, %v1298_v9  ;;  %1186 = vrot.lane.b32.xlu1 %v2230_v5, %s2410_s13 }
 0x110   : > { %1180 = vrot.lane.b32.xlu0 %v2181_v51, %s2410_s13 }
 0x111   : > { %v529_v13 = vpop.permute.xlu1 %528 }
 0x112   : > { %v1423_v14 = vpop.permute.xlu0 %1422  ;;  %568 = vst.msk [vmem:[#allocation3 + $0x24] sm:$0xf] %vm558_vm4, %v529_v13 }
 0x113   : > { %1467 = vst.msk [vmem:[#allocation3 + $0x10] sm:$0xf] %vm1462_vm11, %v1423_v14  ;;  %1311 = vrot.lane.b32.xlu1 %v2198_v54, %s2411_s14 }
 0x114   : > { %1184 = vrot.lane.b32.xlu0 %v2229_v11, %s2410_s13  ;;  %s268_s13 = sadd.s32 %s1945_s23, %s3098_s18 }
 0x115   : > { %v1429_v16 = vpop.permute.xlu1 %1428 }
 0x116   : > { %v527_v18 = vpop.permute.xlu0 %526  ;;  %1470 = vst.msk [vmem:[#allocation3 + $0x1c] sm:$0xf] %vm1462_vm11, %v1429_v16 }
 0x117   : > { %567 = vst.msk [vmem:[#allocation3 + $0x20] sm:$0xf] %vm558_vm4, %v527_v18  ;;  %1315 = vrot.lane.b32.xlu1 %v2246_v15, %s2411_s14 }
 0x118   : > { %1309 = vrot.lane.b32.xlu0 %v2197_v8, %s2411_s14 }
 0x119   : > { %v533_v58 = vpop.permute.xlu1 %532 }
 0x11a   : > { %v1427_v21 = vpop.permute.xlu0 %1426  ;;  %v2358_v22 = vld [vmem:[#allocation3 + $0x10] sm:$0xff]   ;;  %570 = vst.msk [vmem:[#allocation3 + $0x2c] sm:$0xf] %vm558_vm4, %v533_v58 }
 0x11b   : > { %1469 = vst.msk [vmem:[#allocation3 + $0x18] sm:$0xf] %vm1462_vm11, %v1427_v21  ;;  %1440 = vrot.lane.b32.xlu1 %v2214_v63, %s2412_s25  ;;  %2284 = vmatprep.mubr.msk.bf16.mxu0 %vm1555_vm12, %v2358_v22 }
 0x11c   : > { %1313 = vrot.lane.b32.xlu0 %v2245_v19, %s2411_s14  ;;  %s1946_s14 = sshll.u32 %s268_s13, 1 }
 0x11d   : > { %v658_v59 = vpop.permute.xlu1 %657  ;;  %s270_s17 = scalar_lea.vmem %s3078_s5, %s1946_s14 }
 0x11e   : > { %v531_v25 = vpop.permute.xlu0 %530  ;;  %697 = vst.msk [vmem:[#allocation3 + $0x24] sm:$0xf] %vm687_vm5, %v658_v59 }
 0x11f   : > { %569 = vst.msk [vmem:[#allocation3 + $0x28] sm:$0xf] %vm558_vm4, %v531_v25  ;;  %1444 = vrot.lane.b32.xlu1 %v2262_v23, %s2412_s25 }
 0x120   : > { %1438 = vrot.lane.b32.xlu0 %v2213_v2, %s2412_s25 }
 0x121   : > { %v662_v27 = vpop.permute.xlu1 %661 }
 0x122   : > { %v656_v28 = vpop.permute.xlu0 %655  ;;  %v2359_v29 = vld [vmem:[#allocation3 + $0x18] sm:$0xff]   ;;  %699 = vst.msk [vmem:[#allocation3 + $0x2c] sm:$0xf] %vm687_vm5, %v662_v27 }
 0x123   : > { %696 = vst.msk [vmem:[#allocation3 + $0x20] sm:$0xf] %vm687_vm5, %v656_v28  ;;  %2285 = vmatmul.mubr.msk.bf16.gmra.mxu0 %vm1555_vm12, %v2359_v29 }
 0x124   : > { %1442 = vrot.lane.b32.xlu0 %v2261_v26, %s2412_s25 }
 0x125   : > { %v787_v30 = vpop.permute.xlu1 %786 }
 0x126   : > { %v660_v31 = vpop.permute.xlu0 %659  ;;  %826 = vst.msk [vmem:[#allocation3 + $0x24] sm:$0xf] %vm816_vm6, %v787_v30 }
 0x127   : > { %698 = vst.msk [vmem:[#allocation3 + $0x28] sm:$0xf] %vm687_vm5, %v660_v31 }
 0x129   : > { %v791_v32 = vpop.permute.xlu1 %790 }
 0x12a   : > { %v785_v33 = vpop.permute.xlu0 %784  ;;  %828 = vst.msk [vmem:[#allocation3 + $0x2c] sm:$0xf] %vm816_vm6, %v791_v32 }
 0x12b   : > { %825 = vst.msk [vmem:[#allocation3 + $0x20] sm:$0xf] %vm816_vm6, %v785_v33 }
 0x12d   : > { %v916_v34 = vpop.permute.xlu1 %915 }
 0x12e   : > { %v789_v35 = vpop.permute.xlu0 %788  ;;  %955 = vst.msk [vmem:[#allocation3 + $0x24] sm:$0xf] %vm945_vm7, %v916_v34 }
 0x12f   : > { %827 = vst.msk [vmem:[#allocation3 + $0x28] sm:$0xf] %vm816_vm6, %v789_v35 }
 0x131   : > { %v920_v36 = vpop.permute.xlu1 %919 }
 0x132   : > { %v914_v37 = vpop.permute.xlu0 %913  ;;  %957 = vst.msk [vmem:[#allocation3 + $0x2c] sm:$0xf] %vm945_vm7, %v920_v36 }
 0x133   : > { %954 = vst.msk [vmem:[#allocation3 + $0x20] sm:$0xf] %vm945_vm7, %v914_v37 }
 0x135   : > { %v1045_v38 = vpop.permute.xlu1 %1044 }
 0x136   : > { %v918_v39 = vpop.permute.xlu0 %917  ;;  %1084 = vst.msk [vmem:[#allocation3 + $0x24] sm:$0xf] %vm1074_vm8, %v1045_v38 }
 0x137   : > { %956 = vst.msk [vmem:[#allocation3 + $0x28] sm:$0xf] %vm945_vm7, %v918_v39 }
 0x139   : > { %v1049_v40 = vpop.permute.xlu1 %1048 }
 0x13a   : > { %v1043_v41 = vpop.permute.xlu0 %1042  ;;  %1086 = vst.msk [vmem:[#allocation3 + $0x2c] sm:$0xf] %vm1074_vm8, %v1049_v40 }
 0x13b   : > { %1083 = vst.msk [vmem:[#allocation3 + $0x20] sm:$0xf] %vm1074_vm8, %v1043_v41 }
 0x13d   : > { %v1175_v42 = vpop.permute.xlu1 %1174 }
 0x13e   : > { %v1047_v45 = vpop.permute.xlu0 %1046  ;;  %1214 = vst.msk [vmem:[#allocation3 + $0x24] sm:$0xf] %vm1204_vm9, %v1175_v42 }
 0x13f   : > { %1085 = vst.msk [vmem:[#allocation3 + $0x28] sm:$0xf] %vm1074_vm8, %v1047_v45 }
 0x141   : > { %v1179_v46 = vpop.permute.xlu1 %1178 }
 0x142   : > { %v1173_v47 = vpop.permute.xlu0 %1172  ;;  %1216 = vst.msk [vmem:[#allocation3 + $0x2c] sm:$0xf] %vm1204_vm9, %v1179_v46 }
 0x143   : > { %1213 = vst.msk [vmem:[#allocation3 + $0x20] sm:$0xf] %vm1204_vm9, %v1173_v47 }
 0x145   : > { %v1304_v48 = vpop.permute.xlu1 %1303 }
 0x146   : > { %v1177_v49 = vpop.permute.xlu0 %1176  ;;  %1343 = vst.msk [vmem:[#allocation3 + $0x24] sm:$0xf] %vm1333_vm10, %v1304_v48 }
 0x147   : > { %1215 = vst.msk [vmem:[#allocation3 + $0x28] sm:$0xf] %vm1204_vm9, %v1177_v49 }
 0x149   : > { %v1308_v50 = vpop.permute.xlu1 %1307 }
 0x14a   : > { %v1302_v51 = vpop.permute.xlu0 %1301  ;;  %1345 = vst.msk [vmem:[#allocation3 + $0x2c] sm:$0xf] %vm1333_vm10, %v1308_v50 }
 0x14b   : > { %1342 = vst.msk [vmem:[#allocation3 + $0x20] sm:$0xf] %vm1333_vm10, %v1302_v51 }
 0x14d   : > { %v1433_v52 = vpop.permute.xlu1 %1432 }
 0x14e   : > { %v1306_v53 = vpop.permute.xlu0 %1305  ;;  %1472 = vst.msk [vmem:[#allocation3 + $0x24] sm:$0xf] %vm1462_vm11, %v1433_v52 }
 0x14f   : > { %1344 = vst.msk [vmem:[#allocation3 + $0x28] sm:$0xf] %vm1333_vm10, %v1306_v53 }
 0x151   : > { %v537_v10 = vpop.permute.xlu1 %536 }
 0x152   : > { %v1431_v54 = vpop.permute.xlu0 %1430  ;;  %572 = vst.msk [vmem:[#allocation3 + $0x34] sm:$0xf] %vm558_vm4, %v537_v10 }
 0x153   : > { %1471 = vst.msk [vmem:[#allocation3 + $0x20] sm:$0xf] %vm1462_vm11, %v1431_v54 }
 0x155   : > { %v1437_v55 = vpop.permute.xlu1 %1436 }
 0x156   : > { %v535_v56 = vpop.permute.xlu0 %534  ;;  %1474 = vst.msk [vmem:[#allocation3 + $0x2c] sm:$0xf] %vm1462_vm11, %v1437_v55 }
 0x157   : > { %571 = vst.msk [vmem:[#allocation3 + $0x30] sm:$0xf] %vm558_vm4, %v535_v56 }
 0x159   : > { %v541_v57 = vpop.permute.xlu1 %540 }
 0x15a   : > { %v1435_v8 = vpop.permute.xlu0 %1434  ;;  %v2360_v60 = vld [vmem:[#allocation3 + $0x20] sm:$0xff]   ;;  %574 = vst.msk [vmem:[#allocation3 + $0x3c] sm:$0xf] %vm558_vm4, %v541_v57 }
 0x15b   : > { %1473 = vst.msk [vmem:[#allocation3 + $0x28] sm:$0xf] %vm1462_vm11, %v1435_v8  ;;  %2288 = vmatprep.mubr.msk.bf16.mxu1 %vm1555_vm12, %v2360_v60 }
 0x15d   : > { %v666_v61 = vpop.permute.xlu1 %665 }
 0x15e   : > { %v539_v62 = vpop.permute.xlu0 %538  ;;  %701 = vst.msk [vmem:[#allocation3 + $0x34] sm:$0xf] %vm687_vm5, %v666_v61 }
 0x15f   : > { %573 = vst.msk [vmem:[#allocation3 + $0x38] sm:$0xf] %vm558_vm4, %v539_v62 }
 0x161   : > { %v670_v63 = vpop.permute.xlu1 %669 }
 0x162   : > { %v664_v0 = vpop.permute.xlu0 %663  ;;  %v2361_v43 = vld [vmem:[#allocation3 + $0x28] sm:$0xff]   ;;  %703 = vst.msk [vmem:[#allocation3 + $0x3c] sm:$0xf] %vm687_vm5, %v670_v63 }
 0x163   : > { %700 = vst.msk [vmem:[#allocation3 + $0x30] sm:$0xf] %vm687_vm5, %v664_v0  ;;  %2289 = vmatmul.mubr.msk.bf16.vlgmr.msra.gmra.mxu1 %vm1555_vm12, %v2361_v43 }
 0x165   : > { %v795_v1 = vpop.permute.xlu1 %794 }
 0x166   : > { %v668_v2 = vpop.permute.xlu0 %667  ;;  %830 = vst.msk [vmem:[#allocation3 + $0x34] sm:$0xf] %vm816_vm6, %v795_v1 }
 0x167   : > { %702 = vst.msk [vmem:[#allocation3 + $0x38] sm:$0xf] %vm687_vm5, %v668_v2 }
 0x169   : > { %v799_v3 = vpop.permute.xlu1 %798 }
 0x16a   : > { %v793_v44 = vpop.permute.xlu0 %792  ;;  %832 = vst.msk [vmem:[#allocation3 + $0x3c] sm:$0xf] %vm816_vm6, %v799_v3 }
 0x16b   : > { %829 = vst.msk [vmem:[#allocation3 + $0x30] sm:$0xf] %vm816_vm6, %v793_v44 }
 0x16d   : > { %v924_v4 = vpop.permute.xlu1 %923 }
 0x16e   : > { %v797_v5 = vpop.permute.xlu0 %796  ;;  %959 = vst.msk [vmem:[#allocation3 + $0x34] sm:$0xf] %vm945_vm7, %v924_v4 }
 0x16f   : > { %831 = vst.msk [vmem:[#allocation3 + $0x38] sm:$0xf] %vm816_vm6, %v797_v5 }
 0x171   : > { %v928_v6 = vpop.permute.xlu1 %927 }
 0x172   : > { %v922_v7 = vpop.permute.xlu0 %921  ;;  %961 = vst.msk [vmem:[#allocation3 + $0x3c] sm:$0xf] %vm945_vm7, %v928_v6 }
 0x173   : > { %958 = vst.msk [vmem:[#allocation3 + $0x30] sm:$0xf] %vm945_vm7, %v922_v7 }
 0x175   : > { %v1053_v9 = vpop.permute.xlu1 %1052 }
 0x176   : > { %v926_v11 = vpop.permute.xlu0 %925  ;;  %1088 = vst.msk [vmem:[#allocation3 + $0x34] sm:$0xf] %vm1074_vm8, %v1053_v9 }
 0x177   : > { %960 = vst.msk [vmem:[#allocation3 + $0x38] sm:$0xf] %vm945_vm7, %v926_v11 }
 0x179   : > { %v1057_v12 = vpop.permute.xlu1 %1056 }
 0x17a   : > { %v1051_v13 = vpop.permute.xlu0 %1050  ;;  %1090 = vst.msk [vmem:[#allocation3 + $0x3c] sm:$0xf] %vm1074_vm8, %v1057_v12 }
 0x17b   : > { %1087 = vst.msk [vmem:[#allocation3 + $0x30] sm:$0xf] %vm1074_vm8, %v1051_v13 }
 0x17d   : > { %v1183_v14 = vpop.permute.xlu1 %1182 }
 0x17e   : > { %v1055_v15 = vpop.permute.xlu0 %1054  ;;  %1218 = vst.msk [vmem:[#allocation3 + $0x34] sm:$0xf] %vm1204_vm9, %v1183_v14 }
 0x17f   : > { %1089 = vst.msk [vmem:[#allocation3 + $0x38] sm:$0xf] %vm1074_vm8, %v1055_v15 }
 0x181   : > { %v1187_v16 = vpop.permute.xlu1 %1186 }
 0x182   : > { %v1181_v17 = vpop.permute.xlu0 %1180  ;;  %1220 = vst.msk [vmem:[#allocation3 + $0x3c] sm:$0xf] %vm1204_vm9, %v1187_v16 }
 0x183   : > { %1217 = vst.msk [vmem:[#allocation3 + $0x30] sm:$0xf] %vm1204_vm9, %v1181_v17 }
 0x185   : > { %v1312_v18 = vpop.permute.xlu1 %1311 }
 0x186   : > { %v1185_v19 = vpop.permute.xlu0 %1184  ;;  %1347 = vst.msk [vmem:[#allocation3 + $0x34] sm:$0xf] %vm1333_vm10, %v1312_v18 }
 0x187   : > { %1219 = vst.msk [vmem:[#allocation3 + $0x38] sm:$0xf] %vm1204_vm9, %v1185_v19 }
 0x189   : > { %v1316_v20 = vpop.permute.xlu1 %1315 }
 0x18a   : > { %v1310_v58 = vpop.permute.xlu0 %1309  ;;  %1349 = vst.msk [vmem:[#allocation3 + $0x3c] sm:$0xf] %vm1333_vm10, %v1316_v20 }
 0x18b   : > { %1346 = vst.msk [vmem:[#allocation3 + $0x30] sm:$0xf] %vm1333_vm10, %v1310_v58 }
 0x18d   : > { %v1441_v21 = vpop.permute.xlu1 %1440 }
 0x18e   : > { %v1314_v22 = vpop.permute.xlu0 %1313  ;;  %1476 = vst.msk [vmem:[#allocation3 + $0x34] sm:$0xf] %vm1462_vm11, %v1441_v21 }
 0x18f   : > { %1348 = vst.msk [vmem:[#allocation3 + $0x38] sm:$0xf] %vm1333_vm10, %v1314_v22 }
 0x191   : > { %v1445_v23 = vpop.permute.xlu1 %1444 }
 0x192   : > { %v1439_v59 = vpop.permute.xlu0 %1438  ;;  %1478 = vst.msk [vmem:[#allocation3 + $0x3c] sm:$0xf] %vm1462_vm11, %v1445_v23 }
 0x193   : > { %1475 = vst.msk [vmem:[#allocation3 + $0x30] sm:$0xf] %vm1462_vm11, %v1439_v59 }
 0x196   : > { %v1443_v24 = vpop.permute.xlu0 %1442 }
 0x197   : > { %1477 = vst.msk [vmem:[#allocation3 + $0x38] sm:$0xf] %vm1462_vm11, %v1443_v24 }
 0x19a   : > { %v2362_v25 = vld [vmem:[#allocation3 + $0x30] sm:$0xff]  }
 0x19b   : > { %2292 = vmatprep.mubr.msk.bf16.mxu1 %vm1555_vm12, %v2362_v25 }
 0x19e   : > { %v2363_v26 = vld [vmem:[#allocation3 + $0x38] sm:$0xff]  }
 0x19f   : > { %2293 = vmatmul.mubr.msk.bf16.gmra.mxu1 %vm1555_vm12, %v2363_v26 }
 0x1a3   : > { %v2282_v27 = vpop.f32.mrf.mxu0 }
 0x1a4   : > { %1684 = vst.msk [vmem:[%s2986_s12 + $0x10] sm:$0xff] %vm1681_vm13, %v2282_v27  ;;  %v1739_v32 = vmul.f32 %v2282_v27, %v2282_v27  ;;  %v1701_v37 = vsel %vm1681_vm13, %v2282_v27, 0.0 }
 0x1a5   : > { %v1618_v28 = vpop.f32.mrf.mxu0 }
 0x1a6   : > { %1682 = vst.msk [vmem:[%s2986_s12] sm:$0xff] %vm1681_vm13, %v1618_v28  ;;  %v1737_v30 = vmul.f32 %v1618_v28, %v1618_v28  ;;  %v1698_v33 = vsel %vm1681_vm13, %v1618_v28, 0.0  ;;  %v1756_v45 = vsel %vm1681_vm13, %v1739_v32, 0.0 }
 0x1a7   : > { %v2283_v29 = vpop.f32.mrf.mxu0 }
 0x1a8   : > { %1685 = vst.msk [vmem:[%s2986_s12 + $0x18] sm:$0xff] %vm1681_vm13, %v2283_v29  ;;  %v1753_v38 = vsel %vm1681_vm13, %v1737_v30, 0.0  ;;  %v1740_v39 = vmul.f32 %v2283_v29, %v2283_v29  ;;  %v1703_v46 = vsel %vm1681_vm13, %v2283_v29, 0.0 }
 0x1a9   : > { %v1621_v31 = vpop.f32.mrf.mxu0 }
 0x1aa   : > { %1683 = vst.msk [vmem:[%s2986_s12 + $0x8] sm:$0xff] %vm1681_vm13, %v1621_v31  ;;  %v1699_v34 = vsel %vm1681_vm13, %v1621_v31, 0.0  ;;  %v1738_v35 = vmul.f32 %v1621_v31, %v1621_v31  ;;  %v1758_v49 = vsel %vm1681_vm13, %v1740_v39, 0.0 }
 0x1ab   : > { %v1700_v36 = vadd.f32 %v1699_v34, %v1698_v33 }
 0x1ac   : > { %v1754_v40 = vsel %vm1681_vm13, %v1738_v35, 0.0 }
 0x1ad   : > { %v1702_v41 = vadd.f32 %v1701_v37, %v1700_v36  ;;  %v1755_v42 = vadd.f32 %v1754_v40, %v1753_v38 }
 0x1af   : > { %v1757_v47 = vadd.f32 %v1756_v45, %v1755_v42  ;;  %v1704_v48 = vadd.f32 %v1703_v46, %v1702_v41 }
 0x1b1   : > { %v1759_v50 = vadd.f32 %v1758_v49, %v1757_v47 }
 0x1e3   : > { %v2286_v51 = vpop.f32.mrf.mxu0 }
 0x1e4   : > { %1688 = vst.msk [vmem:[%s2986_s12 + $0x30] sm:$0xff] %vm1681_vm13, %v2286_v51  ;;  %v1743_v60 = vmul.f32 %v2286_v51, %v2286_v51  ;;  %v1709_v0 = vsel %vm1681_vm13, %v2286_v51, 0.0 }
 0x1e5   : > { %v1634_v52 = vpop.f32.mrf.mxu0 }
 0x1e6   : > { %1686 = vst.msk [vmem:[%s2986_s12 + $0x20] sm:$0xff] %vm1681_vm13, %v1634_v52  ;;  %v1705_v53 = vsel %vm1681_vm13, %v1634_v52, 0.0  ;;  %v1741_v10 = vmul.f32 %v1634_v52, %v1634_v52  ;;  %v1764_v44 = vsel %vm1681_vm13, %v1743_v60, 0.0 }
 0x1e7   : > { %v1706_v54 = vadd.f32 %v1705_v53, %v1704_v48  ;;  %v2287_v55 = vpop.f32.mrf.mxu0 }
 0x1e8   : > { %v1760_v56 = vsel %vm1681_vm13, %v1741_v10, 0.0  ;;  %1689 = vst.msk [vmem:[%s2986_s12 + $0x38] sm:$0xff] %vm1681_vm13, %v2287_v55  ;;  %v1744_v43 = vmul.f32 %v2287_v55, %v2287_v55  ;;  %v1711_v4 = vsel %vm1681_vm13, %v2287_v55, 0.0 }
 0x1e9   : > { %v1761_v57 = vadd.f32 %v1760_v56, %v1759_v50  ;;  %v1637_v8 = vpop.f32.mrf.mxu0 }
 0x1ea   : > { %1687 = vst.msk [vmem:[%s2986_s12 + $0x28] sm:$0xff] %vm1681_vm13, %v1637_v8  ;;  %v1707_v61 = vsel %vm1681_vm13, %v1637_v8, 0.0  ;;  %v1742_v62 = vmul.f32 %v1637_v8, %v1637_v8  ;;  %v1766_v7 = vsel %vm1681_vm13, %v1744_v43, 0.0 }
 0x1eb   : > { %v1708_v63 = vadd.f32 %v1707_v61, %v1706_v54 }
 0x1ec   : > { %v1762_v1 = vsel %vm1681_vm13, %v1742_v62, 0.0 }
 0x1ed   : > { %v1710_v2 = vadd.f32 %v1709_v0, %v1708_v63  ;;  %v1763_v3 = vadd.f32 %v1762_v1, %v1761_v57 }
 0x1ef   : > { %v1765_v5 = vadd.f32 %v1764_v44, %v1763_v3  ;;  %v1712_v6 = vadd.f32 %v1711_v4, %v1710_v2 }
 0x1f1   : > { %v1767_v9 = vadd.f32 %v1766_v7, %v1765_v5 }
 0x223   : > { %v2290_v11 = vpop.f32.mrf.mxu1 }
 0x224   : > { %1692 = vst.msk [vmem:[%s2986_s12 + $0x50] sm:$0xff] %vm1681_vm13, %v2290_v11  ;;  %v1747_v23 = vmul.f32 %v2290_v11, %v2290_v11  ;;  %v1717_v24 = vsel %vm1681_vm13, %v2290_v11, 0.0 }
 0x225   : > { %v1650_v12 = vpop.f32.mrf.mxu1 }
 0x226   : > { %1690 = vst.msk [vmem:[%s2986_s12 + $0x40] sm:$0xff] %vm1681_vm13, %v1650_v12  ;;  %v1745_v15 = vmul.f32 %v1650_v12, %v1650_v12  ;;  %v1713_v16 = vsel %vm1681_vm13, %v1650_v12, 0.0  ;;  %v1772_v27 = vsel %vm1681_vm13, %v1747_v23, 0.0 }
 0x227   : > { %v2291_v13 = vpop.f32.mrf.mxu1  ;;  %v1714_v20 = vadd.f32 %v1713_v16, %v1712_v6 }
 0x228   : > { %1693 = vst.msk [vmem:[%s2986_s12 + $0x58] sm:$0xff] %vm1681_vm13, %v2291_v13  ;;  %v1768_v18 = vsel %vm1681_vm13, %v1745_v15, 0.0  ;;  %v1748_v28 = vmul.f32 %v2291_v13, %v2291_v13  ;;  %v1719_v31 = vsel %vm1681_vm13, %v2291_v13, 0.0 }
 0x229   : > { %v1653_v14 = vpop.f32.mrf.mxu1  ;;  %v1769_v21 = vadd.f32 %v1768_v18, %v1767_v9 }
 0x22a   : > { %1691 = vst.msk [vmem:[%s2986_s12 + $0x48] sm:$0xff] %vm1681_vm13, %v1653_v14  ;;  %v1746_v17 = vmul.f32 %v1653_v14, %v1653_v14  ;;  %v1715_v19 = vsel %vm1681_vm13, %v1653_v14, 0.0  ;;  %v1774_v36 = vsel %vm1681_vm13, %v1748_v28, 0.0 }
 0x22b   : > { %v1716_v22 = vadd.f32 %v1715_v19, %v1714_v20 }
 0x22c   : > { %v1770_v58 = vsel %vm1681_vm13, %v1746_v17, 0.0 }
 0x22d   : > { %v1771_v59 = vadd.f32 %v1770_v58, %v1769_v21  ;;  %v1718_v25 = vadd.f32 %v1717_v24, %v1716_v22 }
 0x22f   : > { %v1773_v29 = vadd.f32 %v1772_v27, %v1771_v59  ;;  %v1720_v34 = vadd.f32 %v1719_v31, %v1718_v25 }
 0x231   : > { %v1775_v39 = vadd.f32 %v1774_v36, %v1773_v29 }
 0x25f   : > { %v2294_v26 = vpop.f32.mrf.mxu1 }
 0x260   : > { %1696 = vst.msk [vmem:[%s2986_s12 + $0x70] sm:$0xff] %vm1681_vm13, %v2294_v26  ;;  %v1751_v41 = vmul.f32 %v2294_v26, %v2294_v26  ;;  %v1725_v48 = vsel %vm1681_vm13, %v2294_v26, 0.0 }
 0x261   : > { %v1666_v30 = vpop.f32.mrf.mxu1 }
 0x262   : > { %1694 = vst.msk [vmem:[%s2986_s12 + $0x60] sm:$0xff] %vm1681_vm13, %v1666_v30  ;;  %v1721_v32 = vsel %vm1681_vm13, %v1666_v30, 0.0  ;;  %v1749_v33 = vmul.f32 %v1666_v30, %v1666_v30  ;;  %v1780_v53 = vsel %vm1681_vm13, %v1751_v41, 0.0 }
 0x263   : > { %v2295_v35 = vpop.f32.mrf.mxu1  ;;  %v1722_v38 = vadd.f32 %v1721_v32, %v1720_v34 }
 0x264   : > { %v1776_v37 = vsel %vm1681_vm13, %v1749_v33, 0.0  ;;  %1697 = vst.msk [vmem:[%s2986_s12 + $0x78] sm:$0xff] %vm1681_vm13, %v2295_v35  ;;  %v1752_v49 = vmul.f32 %v2295_v35, %v2295_v35  ;;  %v1727_v10 = vsel %vm1681_vm13, %v2295_v35, 0.0 }
 0x265   : > { %v1669_v40 = vpop.f32.mrf.mxu1  ;;  %v1777_v46 = vadd.f32 %v1776_v37, %v1775_v39 }
 0x266   : > { %1695 = vst.msk [vmem:[%s2986_s12 + $0x68] sm:$0xff] %vm1681_vm13, %v1669_v40  ;;  %v1723_v42 = vsel %vm1681_vm13, %v1669_v40, 0.0  ;;  %v1750_v45 = vmul.f32 %v1669_v40, %v1669_v40  ;;  %v1782_v56 = vsel %vm1681_vm13, %v1752_v49, 0.0 }
 0x267   : > { %v1724_v47 = vadd.f32 %v1723_v42, %v1722_v38 }
 0x268   : > { %v1778_v50 = vsel %vm1681_vm13, %v1750_v45, 0.0 }
 0x269   : > { %v1726_v51 = vadd.f32 %v1725_v48, %v1724_v47  ;;  %v1779_v52 = vadd.f32 %v1778_v50, %v1777_v46 }
 0x26b   : > { %v1728_v54 = vadd.f32 %v1727_v10, %v1726_v51  ;;  %v1781_v55 = vadd.f32 %v1780_v53, %v1779_v52 }
 0x26d   : > { %v1729_v57 = vrot.slane %v1728_v54, 4  ;;  %v1783_v8 = vadd.f32 %v1782_v56, %v1781_v55 }
 0x26f   : > { %v1730_v60 = vadd.f32 %v1729_v57, %v1728_v54  ;;  %v1784_v61 = vrot.slane %v1783_v8, 4 }
 0x271   : > { %v1731_v62 = vrot.slane %v1730_v60, 2  ;;  %v1785_v63 = vadd.f32 %v1784_v61, %v1783_v8 }
 0x273   : > { %v1732_v0 = vadd.f32 %v1731_v62, %v1730_v60  ;;  %v1786_v43 = vrot.slane %v1785_v63, 2 }
 0x275   : > { %v1733_v1 = vrot.slane %v1732_v0, 1  ;;  %v1787_v2 = vadd.f32 %v1786_v43, %v1785_v63 }
 0x277   : > { %v1734_v3 = vadd.f32 %v1733_v1, %v1732_v0  ;;  %v1788_v44 = vrot.slane %v1787_v2, 1 }
 0x279   : > { %1736 = vst.msk [vmem:[%s270_s17] sm:$0x1] %vm1735_vm14, %v1734_v3  ;;  %v1789_v4 = vadd.f32 %v1788_v44, %v1787_v2 }
 0x27b   : > { %1790 = vst.msk [vmem:[%s270_s17 + $0x1] sm:$0x1] %vm1735_vm14, %v1789_v4 }
 0x27c PF: > { %s16_s22 = sadd.s32 1, %s2402_s22   ;;  %s3079_s18 = smov %s2394_s20 }
 0x27d   : > { %p13_p10 = scmp.ge.s32.totalorder %s16_s22, 6   ;;  %s3080_s19 = smov %s2398_s21 }
 0x27e   : > { %s3081_s20 = smov %s3084_s2  ;;  %s3082_s21 = smov %s3088_s3 }
 0x27f   :  { %15 = sbr.rel (!%p13_p10) target bundleno = 3 (0x3), region = 84 }

// kernel: bridge_forward.4
= control target key start
LH: loop header
LB: loop body
LE: loop exit
PB: predicated region body
PF: predicated region fallthrough
CT: control target
= control target key end

     0   :  { %s2547_s18 = smov 0   ;;  %s2549_s19 = smov 0   ;;  %s3257_s0 = inlined_call_operand.vmem [shape: f32[2,16,16,8], index: 0, kind: input, shape index: {}]   ;;  %s3258_s1 = inlined_call_operand.vmem [shape: bf16[72,8], index: 1, kind: input, shape index: {}]   ;;  %s3259_s2 = inlined_call_operand.vmem [shape: f32[1,8], index: 2, kind: input, shape index: {}]   ;;  %s3260_s3 = inlined_call_operand.vmem [shape: f32[1,8], index: 3, kind: input, shape index: {}]   ;;  %s3261_s4 = inlined_call_operand.vmem [shape: f32[2,16,16,8], index: 4, kind: output, shape index: {0}]   ;;  %s3262_s5 = inlined_call_operand.vmem [shape: f32[2,2,2,8], index: 5, kind: output, shape index: {1}]  }
   0x1   :  { %s2551_s20 = smov 0   ;;  %s2553_s21 = smov 0  }
   0x2   :  { %s2555_s22 = smov 0  }
   0x3 LB: > { %s25_s23 = sadd.s32 1, %s2498_s20  ;;  %s28_s24 = sadd.s32 1, %s2502_s21  ;;  %s2506_s22 = sphi %s2555_s22, %s16_s22   ;;  %s2502_s21 = sphi %s2553_s21, %s3266_s21   ;;  %s2498_s20 = sphi %s2551_s20, %s3265_s20   ;;  %s2494_s19 = sphi %s2549_s19, %s3264_s19   ;;  %s2490_s18 = sphi %s2547_s18, %s3263_s18  }
   0x4   : > { %p26_p0 = scmp.ge.s32.totalorder %s25_s23, 2  ;;  %p2026_p1 = scmp.ge.s32.totalorder %s2506_s22, 1 }
   0x5   : > { %p206_p2 = scmp.lt.s32.totalorder %s2506_s22, 5 }
   0x6   : > { %s3268_s23 = smov (%p26_p0, %s25_s23), 0  ;;  %s3270_s24 = smov (!%p26_p0, %s28_s24), %s2502_s21 }
   0x7   : > { %p207_p3 = pnand %p2026_p1, %p206_p2  ;;  %p30_p4 = scmp.ge.s32.totalorder %s3270_s24, 2 }
   0x8   : > { %p247_p5 = scmp.lt.s32.totalorder (!%p207_p3), %s2494_s19, 1  ;;  %s2580_s25 = sshll.u32 (!%p207_p3), %s2490_s18, 3 }
   0x9   : > { %s3272_s24 = smov (%p30_p4, %s3270_s24), 0  ;;  %210 = sbr.rel (%p207_p3) target bundleno = 637 (0x27d), region = 36 }
   0xa   : > { %s2210_s28 = sshll.u32 (!%p207_p3), %s2490_s18, 7  ;;  %p273_p6 = scmp.eq.s32.totalorder (!%p207_p3), %s2490_s18, 0 }
   0xb   : > { %s2036_s8 = sadd.s32 (!%p207_p3), 4294967295, %s2580_s25  ;;  %s2509_s14 = smov (!%p207_p3), 8  }
   0xc   : > { %s2510_s15 = smov (!%p207_p3), 16   ;;  %s2511_s16 = smov (!%p207_p3), 24  }
   0xd   : > { %s2512_s17 = smov (!%p207_p3), 32   ;;  %s2513_s26 = smov (!%p207_p3), 40  }
   0xe   : > { %vm379_vm0 = vcmask 57344   ;;  %s3274_s19 = smov (!%p247_p5, %s2494_s19), 1  ;;  %v2508_v0 = vmov 0.0   ;;  %v2607_v1 = vld [vmem:[%s3259_s2] ss:$0 sm:$0xff]  ;;  %s3276_s8 = smov (%p273_p6, %s2036_s8), 15 }
   0xf   : > { %390 = vst.msk [vmem:[#allocation2 + $0x11] sm:$0x1] %vm379_vm0, %v2508_v0  ;;  %380 = vst.msk [vmem:[#allocation2] sm:$0x1] %vm379_vm0, %v2508_v0  ;;  %s2209_s29 = sshll.u32 %s3274_s19, 8  ;;  %vm400_vm1 = vcmask 64512  }
  0x10   : > { %381 = vst.msk [vmem:[#allocation2 + $0x18] sm:$0x1] %vm379_vm0, %v2508_v0  ;;  %382 = vst.msk [vmem:[#allocation2 + $0x30] sm:$0x1] %vm379_vm0, %v2508_v0  ;;  %s2615_s7 = scalar_lea.vmem %s3257_s0, %s2209_s29  ;;  %v2621_v2 = vld [vmem:[%s3260_s3] ss:$0 sm:$0xff] }
  0x11   : > { %383 = vst.msk [vmem:[#allocation2 + $0x48] sm:$0x1] %vm379_vm0, %v2508_v0  ;;  %384 = vst.msk [vmem:[#allocation2 + $0x60] sm:$0x1] %vm379_vm0, %v2508_v0  ;;  %s2624_s11 = scalar_lea.vmem %s2615_s7, %s2210_s28  ;;  %s2037_s12 = sshll.u32 %s3276_s8, 4  ;;  %vm503_vm2 = vcmask 60416  }
  0x12   : > { %385 = vst.msk [vmem:[#allocation2 + $0x78] sm:$0x1] %vm379_vm0, %v2508_v0  ;;  %386 = vst.msk [vmem:[#allocation2 + $0x90] sm:$0x1] %vm379_vm0, %v2508_v0  ;;  %v305_v3 = vld [vmem:[%s2624_s11] sm:$0xff]  ;;  %v306_v4 = vld [vmem:[%s2624_s11 + $0x8] sm:$0xff]  ;;  %s280_s13 = scalar_lea.vmem %s2615_s7, %s2037_s12 }
  0x13   : > { %387 = vst.msk [vmem:[#allocation2 + $0xa8] sm:$0x1] %vm379_vm0, %v2508_v0  ;;  %388 = vst.msk [vmem:[#allocation2 + $0xc0] sm:$0x1] %vm379_vm0, %v2508_v0  ;;  %v307_v5 = vld [vmem:[%s2624_s11 + $0x10] sm:$0xff]  ;;  %v321_v6 = vmul.f32 %v2607_v1, %v305_v3  ;;  %v322_v7 = vmul.f32 %v2607_v1, %v306_v4  ;;  %v308_v8 = vld [vmem:[%s2624_s11 + $0x18] sm:$0xff] }
  0x14   : > { %389 = vst.msk [vmem:[#allocation2 + $0xd8] sm:$0x1] %vm379_vm0, %v2508_v0  ;;  %391 = vst.msk [vmem:[#allocation2 + $0x29] sm:$0x1] %vm379_vm0, %v2508_v0  ;;  %v323_v9 = vmul.f32 %v2607_v1, %v307_v5  ;;  %v309_v10 = vld [vmem:[%s2624_s11 + $0x20] sm:$0xff]  ;;  %v310_v11 = vld [vmem:[%s2624_s11 + $0x28] sm:$0xff]  ;;  %v324_v12 = vmul.f32 %v2607_v1, %v308_v8 }
  0x15   : > { %392 = vst.msk [vmem:[#allocation2 + $0x41] sm:$0x1] %vm379_vm0, %v2508_v0  ;;  %393 = vst.msk [vmem:[#allocation2 + $0x59] sm:$0x1] %vm379_vm0, %v2508_v0  ;;  %v325_v13 = vmul.f32 %v2607_v1, %v309_v10  ;;  %v326_v14 = vmul.f32 %v2607_v1, %v310_v11  ;;  %v311_v15 = vld [vmem:[%s2624_s11 + $0x30] sm:$0xff]  ;;  %v312_v16 = vld [vmem:[%s2624_s11 + $0x38] sm:$0xff]  ;;  %v337_v17 = vadd.f32 %v2621_v2, %v321_v6 }
  0x16   : > { %394 = vst.msk [vmem:[#allocation2 + $0x71] sm:$0x1] %vm379_vm0, %v2508_v0  ;;  %395 = vst.msk [vmem:[#allocation2 + $0x89] sm:$0x1] %vm379_vm0, %v2508_v0  ;;  %v338_v18 = vadd.f32 %v2621_v2, %v322_v7  ;;  %v339_v19 = vadd.f32 %v2621_v2, %v323_v9  ;;  %v327_v20 = vmul.f32 %v2607_v1, %v311_v15  ;;  %v313_v25 = vld [vmem:[%s2624_s11 + $0x40] sm:$0xff]  ;;  %v282_v28 = vld [vmem:[%s280_s13 + $0x8] sm:$0xff] }
  0x17   : > { %396 = vst.msk [vmem:[#allocation2 + $0xa1] sm:$0x1] %vm379_vm0, %v2508_v0  ;;  %397 = vst.msk [vmem:[#allocation2 + $0xb9] sm:$0x1] %vm379_vm0, %v2508_v0  ;;  %v340_v21 = vadd.f32 %v2621_v2, %v324_v12  ;;  %v341_v22 = vadd.f32 %v2621_v2, %v325_v13  ;;  %v342_v23 = vadd.f32 %v2621_v2, %v326_v14  ;;  %v353_v26 = vmax.f32 %v337_v17, 0.0  ;;  %v281_v27 = vld [vmem:[%s280_s13] sm:$0xff] }
  0x18   : > { %398 = vst.msk [vmem:[#allocation2 + $0xd1] sm:$0x1] %vm379_vm0, %v2508_v0  ;;  %399 = vst.msk [vmem:[#allocation2 + $0xe9] sm:$0x1] %vm379_vm0, %v2508_v0  ;;  %v328_v24 = vmul.f32 %v2607_v1, %v312_v16  ;;  %v354_v29 = vmax.f32 %v338_v18, 0.0  ;;  %v355_v30 = vmax.f32 %v339_v19, 0.0  ;;  %v343_v31 = vadd.f32 %v2621_v2, %v327_v20 }
  0x19   : > { %v314_v32 = vld [vmem:[%s2624_s11 + $0x48] sm:$0xff]  ;;  %v290_v33 = vmul.f32 %v2607_v1, %v281_v27  ;;  %v291_v34 = vmul.f32 %v2607_v1, %v282_v28  ;;  %v356_v35 = vmax.f32 %v340_v21, 0.0  ;;  %v357_v36 = vmax.f32 %v341_v22, 0.0  ;;  %404 = vst.msk [vmem:[#allocation2 + $0x19] sm:$0xff] %vm400_vm1, %v353_v26  ;;  %v315_v27 = vld [vmem:[%s2624_s11 + $0x50] sm:$0xff]  ;;  %v316_v28 = vld [vmem:[%s2624_s11 + $0x58] sm:$0xff] }
  0x1a   : > { %405 = vst.msk [vmem:[#allocation2 + $0x21] sm:$0xff] %vm400_vm1, %v354_v29  ;;  %406 = vst.msk [vmem:[#allocation2 + $0x31] sm:$0xff] %vm400_vm1, %v355_v30  ;;  %v358_v37 = vmax.f32 %v342_v23, 0.0  ;;  %v344_v38 = vadd.f32 %v2621_v2, %v328_v24  ;;  %v359_v39 = vmax.f32 %v343_v31, 0.0  ;;  %v329_v40 = vmul.f32 %v2607_v1, %v313_v25  ;;  %s2514_s27 = smov 48   ;;  %s2515_s8 = smov 56  }
  0x1b   : > { %v299_v41 = vadd.f32 %v2621_v2, %v290_v33  ;;  %v300_v42 = vadd.f32 %v2621_v2, %v291_v34  ;;  %407 = vst.msk [vmem:[#allocation2 + $0x39] sm:$0xff] %vm400_vm1, %v356_v35  ;;  %408 = vst.msk [vmem:[#allocation2 + $0x49] sm:$0xff] %vm400_vm1, %v357_v36  ;;  %v330_v43 = vmul.f32 %v2607_v1, %v314_v32  ;;  %vm1670_vm3 = vcmask 1043456   ;;  %s2516_s28 = smov 64   ;;  %p276_p7 = scmp.eq.s32.totalorder %s2490_s18, 1 }
  0x1c   : > { %409 = vst.msk [vmem:[#allocation2 + $0x51] sm:$0xff] %vm400_vm1, %v358_v37  ;;  %v360_v44 = vmax.f32 %v344_v38, 0.0  ;;  %410 = vst.msk [vmem:[#allocation2 + $0x61] sm:$0xff] %vm400_vm1, %v359_v39  ;;  %v345_v45 = vadd.f32 %v2621_v2, %v329_v40  ;;  %v331_v30 = vmul.f32 %v2607_v1, %v315_v27  ;;  %v332_v31 = vmul.f32 %v2607_v1, %v316_v28  ;;  %p255_p8 = scmp.lt.s32.totalorder %s2580_s25, 15  ;;  %p265_p9 = scmp.lt.s32.totalorder %s2490_s18, 1 }
  0x1d   : > { %v301_v46 = vmax.f32 %v299_v41, 0.0  ;;  %v302_v47 = vmax.f32 %v300_v42, 0.0  ;;  %v346_v48 = vadd.f32 %v2621_v2, %v330_v43  ;;  %vm632_vm4 = vcmask 126016  }
  0x1e   : > { %411 = vst.msk [vmem:[#allocation2 + $0x69] sm:$0xff] %vm400_vm1, %v360_v44  ;;  %v361_v49 = vmax.f32 %v345_v45, 0.0  ;;  %v347_v32 = vadd.f32 %v2621_v2, %v331_v30  ;;  %v348_v33 = vadd.f32 %v2621_v2, %v332_v31  ;;  %vm761_vm5 = vcmask 191616   ;;  %s3282_s18 = smov (!%p265_p9, %s2490_s18), 1 }
  0x1f   : > { %401 = vst.msk [vmem:[#allocation2 + $0x1] sm:$0xff] %vm400_vm1, %v301_v46  ;;  %402 = vst.msk [vmem:[#allocation2 + $0x9] sm:$0xff] %vm400_vm1, %v302_v47  ;;  %v362_v50 = vmax.f32 %v346_v48, 0.0  ;;  %v317_v47 = vld [vmem:[%s2624_s11 + $0x60] sm:$0xff]  ;;  %v318_v48 = vld [vmem:[%s2624_s11 + $0x68] sm:$0xff]  ;;  %vm890_vm6 = vcmask 257216  }
  0x20   : > { %412 = vst.msk [vmem:[#allocation2 + $0x79] sm:$0xff] %vm400_vm1, %v361_v49  ;;  %v522_v51 = vld [vmem:[#allocation2 + $0x19] sm:$0xff]  ;;  %v363_v35 = vmax.f32 %v347_v32, 0.0  ;;  %v364_v36 = vmax.f32 %v348_v33, 0.0  ;;  %v333_v49 = vmul.f32 %v2607_v1, %v317_v47  ;;  %vm1019_vm7 = vcmask 322816  }
  0x21   : > { %v523_v52 = vld [vmem:[#allocation2 + $0x21] sm:$0xff]  ;;  %413 = vst.msk [vmem:[#allocation2 + $0x81] sm:$0xff] %vm400_vm1, %v362_v50  ;;  %v2673_v53 = vpack.c.bf16 %v522_v51, %v522_v51  ;;  %v778_v55 = vld [vmem:[#allocation2 + $0x18] sm:$0xff]  ;;  %v780_v59 = vld [vmem:[#allocation2 + $0x30] sm:$0xff]  ;;  %v334_v50 = vmul.f32 %v2607_v1, %v318_v48  ;;  %vm1148_vm8 = vcmask 388416   ;;  %vm1278_vm9 = vcmask 454016  }
  0x22   : > { %v779_v54 = vld [vmem:[#allocation2 + $0x20] sm:$0xff]  ;;  %v2677_v57 = vpack.c.bf16 %v778_v55, %v778_v55  ;;  %v781_v58 = vld [vmem:[#allocation2 + $0x38] sm:$0xff]  ;;  %v2681_v60 = vpack.c.bf16 %v523_v52, %v523_v52  ;;  %v2685_v62 = vpack.c.bf16 %v780_v59, %v780_v59  ;;  %v1168_v0 = vld [vmem:[#allocation2 + $0x48] sm:$0xff]  ;;  %414 = vst.msk [vmem:[#allocation2 + $0x91] sm:$0xff] %vm400_vm1, %v363_v35  ;;  %v349_v52 = vadd.f32 %v2621_v2, %v333_v49 }
  0x23   : > { %v2675_v56 = vpack.c.bf16 %v779_v54, %v779_v54  ;;  %588 = vrot.lane.b32.xlu1 %v2673_v53, %s2509_s14  ;;  %v2683_v61 = vpack.c.bf16 %v781_v58, %v781_v58  ;;  %v1169_v63 = vld [vmem:[#allocation2 + $0x50] sm:$0xff]  ;;  %v2693_v7 = vpack.c.bf16 %v1168_v0, %v1168_v0  ;;  %v784_v11 = vld [vmem:[#allocation2 + $0x60] sm:$0xff]  ;;  %415 = vst.msk [vmem:[#allocation2 + $0x99] sm:$0xff] %vm400_vm1, %v364_v36  ;;  %vm1407_vm10 = vcmask 519616  }
  0x24   : > { %506 = vst.msk [vmem:[#allocation3 + $0x8] sm:$0xf] %vm503_vm2, %v2677_v57  ;;  %v2691_v6 = vpack.c.bf16 %v1169_v63, %v1169_v63  ;;  %508 = vst.msk [vmem:[#allocation3 + $0x10] sm:$0xf] %vm503_vm2, %v2685_v62  ;;  %v652_v13 = vld [vmem:[#allocation2 + $0x22] sm:$0xff]  ;;  %v2708_v15 = vpack.c.bf16 %v784_v11, %v784_v11  ;;  %v651_v29 = vld [vmem:[#allocation2 + $0x1a] sm:$0xff] }
  0x25   : > { %507 = vst.msk [vmem:[#allocation3 + $0xc] sm:$0xf] %vm503_vm2, %v2675_v56  ;;  %509 = vst.msk [vmem:[#allocation3 + $0x14] sm:$0xf] %vm503_vm2, %v2683_v61  ;;  %v785_v10 = vld [vmem:[#allocation2 + $0x68] sm:$0xff]  ;;  %v2246_v22 = vpack.c.bf16 %v652_v13, %v652_v13  ;;  %v2245_v34 = vpack.c.bf16 %v651_v29, %v651_v29  ;;  %v910_v37 = vld [vmem:[#allocation2 + $0x39] sm:$0xff] }
  0x26   : > { %v520_v3 = vld [vmem:[#allocation2 + $0x1] sm:$0xff]  ;;  %v521_v4 = vld [vmem:[#allocation2 + $0x9] sm:$0xff]  ;;  %511 = vst.msk [vmem:[#allocation3 + $0x1c] sm:$0xf] %vm503_vm2, %v2691_v6  ;;  %510 = vst.msk [vmem:[#allocation3 + $0x18] sm:$0xf] %vm503_vm2, %v2693_v7  ;;  %v2706_v14 = vpack.c.bf16 %v785_v10, %v785_v10  ;;  %v2745_v40 = vpack.c.bf16 %v910_v37, %v910_v37 }
  0x27   : > { %v650_v5 = vld [vmem:[#allocation2 + $0xa] sm:$0xff]  ;;  %v2227_v8 = vpack.c.bf16 %v520_v3, %v520_v3  ;;  %590 = vrot.lane.b32.xlu1 %v2681_v60, %s2509_s14  ;;  %v2228_v12 = vpack.c.bf16 %v521_v4, %v521_v4  ;;  %v649_v16 = vld [vmem:[#allocation2 + $0x2] sm:$0xff]  ;;  %v1172_v18 = vld [vmem:[#allocation2 + $0x78] sm:$0xff]  ;;  %512 = vst.msk [vmem:[#allocation3 + $0x20] sm:$0xf] %vm503_vm2, %v2708_v15  ;;  %v365_v55 = vmax.f32 %v349_v52, 0.0 }
  0x28   : > { %v2244_v9 = vpack.c.bf16 %v650_v5, %v650_v5  ;;  %v1173_v17 = vld [vmem:[#allocation2 + $0x80] sm:$0xff]  ;;  %v2712_v20 = vpack.c.bf16 %v1172_v18, %v1172_v18  ;;  %513 = vst.msk [vmem:[#allocation3 + $0x24] sm:$0xf] %vm503_vm2, %v2706_v14  ;;  %v424_v24 = vld [vmem:[#allocation2 + $0x8] sm:$0xff]  ;;  %v2243_v25 = vpack.c.bf16 %v649_v16, %v649_v16  ;;  %v909_v43 = vld [vmem:[#allocation2 + $0x31] sm:$0xff]  ;;  %vm1536_vm11 = vcmask 585216  }
  0x29   : > { %584 = vrot.lane.b32.xlu0 %v2227_v8, %s2509_s14  ;;  %v2710_v19 = vpack.c.bf16 %v1173_v17, %v1173_v17  ;;  %v423_v21 = vld [vmem:[#allocation2] sm:$0xff]  ;;  %v2212_v26 = vpack.c.bf16 %v424_v24, %v424_v24  ;;  %v788_v39 = vld [vmem:[#allocation2 + $0x90] sm:$0xff]  ;;  %v2761_v44 = vpack.c.bf16 %v909_v43, %v909_v43  ;;  %416 = vst.msk [vmem:[#allocation2 + $0xa9] sm:$0xff] %vm400_vm1, %v365_v55  ;;  %v2456_v3 = vld [vmem:[%s3258_s1 + $0x18] sm:$0xff]   ;;  %vm1645_vm12 = vcmask 588800  }
  0x2a   : > { %v2211_v23 = vpack.c.bf16 %v423_v21, %v423_v21  ;;  %514 = vst.msk [vmem:[#allocation3 + $0x28] sm:$0xf] %vm503_vm2, %v2712_v20  ;;  %v789_v38 = vld [vmem:[#allocation2 + $0x98] sm:$0xff]  ;;  %v2749_v42 = vpack.c.bf16 %v788_v39, %v788_v39  ;;  %v1297_v4 = vld [vmem:[#allocation2 + $0x49] sm:$0xff]  ;;  %v2460_v11 = vld [vmem:[%s3258_s1] sm:$0xff]  }
  0x2b   : > { %715 = vrot.lane.b32.xlu1 %v2244_v9, %s2510_s15  ;;  %515 = vst.msk [vmem:[#allocation3 + $0x2c] sm:$0xf] %vm503_vm2, %v2710_v19  ;;  %505 = vst.msk [vmem:[#allocation3 + $0x4] sm:$0xf] %vm503_vm2, %v2212_v26  ;;  %v2747_v41 = vpack.c.bf16 %v789_v38, %v789_v38  ;;  %v1039_v45 = vld [vmem:[#allocation2 + $0x3a] sm:$0xff]  ;;  %v1038_v51 = vld [vmem:[#allocation2 + $0x32] sm:$0xff]  ;;  %v2325_v8 = vpack.c.bf16 %v1297_v4, %v1297_v4 }
  0x2c   : > { %504 = vst.msk [vmem:[#allocation3] sm:$0xf] %vm503_vm2, %v2211_v23  ;;  %516 = vst.msk [vmem:[#allocation3 + $0x30] sm:$0xf] %vm503_vm2, %v2749_v42  ;;  %v2764_v46 = vpack.c.bf16 %v1039_v45, %v1039_v45  ;;  %v2777_v54 = vpack.c.bf16 %v1038_v51, %v1038_v51  ;;  %v1298_v58 = vld [vmem:[#allocation2 + $0x51] sm:$0xff]  ;;  %v2458_v9 = vld [vmem:[%s3258_s1 + $0x8] sm:$0xff]  }
  0x2d   : > { %586 = vrot.lane.b32.xlu0 %v2228_v12, %s2509_s14  ;;  %517 = vst.msk [vmem:[#allocation3 + $0x34] sm:$0xf] %vm503_vm2, %v2747_v41  ;;  %v2457_v5 = vld [vmem:[%s3258_s1 + $0x10] sm:$0xff]   ;;  %v320_v18 = vld [vmem:[%s2624_s11 + $0x78] sm:$0xff]  ;;  %v913_v29 = vld [vmem:[#allocation2 + $0x61] sm:$0xff] }
  0x2e   : > { %v1427_v10 = vld [vmem:[#allocation2 + $0x52] sm:$0xff]  ;;  %v1426_v13 = vld [vmem:[#allocation2 + $0x4a] sm:$0xff]  ;;  %v1042_v35 = vld [vmem:[#allocation2 + $0x62] sm:$0xff] }
  0x2f   : > { %719 = vrot.lane.b32.xlu1 %v2246_v22, %s2510_s15  ;;  %v2342_v12 = vpack.c.bf16 %v1427_v10, %v1427_v10  ;;  %v2341_v16 = vpack.c.bf16 %v1426_v13, %v1426_v13  ;;  %v319_v17 = vld [vmem:[%s2624_s11 + $0x70] sm:$0xff]  ;;  %s277_s11 = sadd.s32 8, %s2580_s25  ;;  %v2297_v38 = vpack.c.bf16 %v1042_v35, %v1042_v35  ;;  %v1430_v51 = vld [vmem:[#allocation2 + $0x7a] sm:$0xff]  ;;  %s3280_s25 = smov (!%p255_p8, %s2580_s25), 15 }
  0x30   : > { %v335_v21 = vmul.f32 %v2607_v1, %v319_v17  ;;  %v914_v27 = vld [vmem:[#allocation2 + $0x69] sm:$0xff]  ;;  %s3278_s11 = smov (%p276_p7, %s277_s11), 0  ;;  %v918_v4 = vld [vmem:[#allocation2 + $0x99] sm:$0xff]  ;;  %v917_v10 = vld [vmem:[#allocation2 + $0x91] sm:$0xff] }
  0x31   : > { %713 = vrot.lane.b32.xlu0 %v2243_v25, %s2510_s15  ;;  %v2282_v28 = vpack.c.bf16 %v914_v27, %v914_v27  ;;  %v1043_v30 = vld [vmem:[#allocation2 + $0x6a] sm:$0xff]  ;;  %s2041_s6 = sshll.u32 %s3278_s11, 4 }
  0x32   : > { %v351_v23 = vadd.f32 %v2621_v2, %v335_v21  ;;  %s370_s9 = scalar_lea.vmem %s2615_s7, %s2041_s6  ;;  %v1046_v21 = vld [vmem:[#allocation2 + $0x92] sm:$0xff]  ;;  %s2030_s7 = sshll.u32 %s3280_s25, 1 }
  0x33   : > { %844 = vrot.lane.b32.xlu1 %v2675_v56, %s2511_s16  ;;  %v371_v31 = vld [vmem:[%s370_s9] sm:$0xff]  ;;  %v372_v32 = vld [vmem:[%s370_s9 + $0x8] sm:$0xff]  ;;  %s2033_s25 = sshll.u32 %s3274_s19, 1 }
  0x34   : > { %v367_v25 = vmax.f32 %v351_v23, 0.0  ;;  %v373_v33 = vmul.f32 %v2607_v1, %v371_v31  ;;  %v2969_v23 = vpack.c.bf16 %v1046_v21, %v1046_v21 }
  0x35   : > { %717 = vrot.lane.b32.xlu0 %v2245_v34, %s2510_s15 }
  0x36   : > { %418 = vst.msk [vmem:[#allocation2 + $0xc1] sm:$0xff] %vm400_vm1, %v367_v25  ;;  %v375_v36 = vadd.f32 %v2621_v2, %v373_v33 }
  0x37   : > { %848 = vrot.lane.b32.xlu1 %v2683_v61, %s2511_s16 }
  0x38   : > { %v377_v39 = vmax.f32 %v375_v36, 0.0 }
  0x39   : > { %842 = vrot.lane.b32.xlu0 %v2677_v57, %s2511_s16  ;;  %v2455_v57 = vld [vmem:[%s3258_s1 + $0x20] ss:$0 sps:$4 sm:$0xff]  }
  0x3a   : > { %2404 = vmatprep.subr.msk.bf16.mxu0 %vm1670_vm3, %v2455_v57  ;;  %v1672_v59 = vsel %vm1670_vm3, %v2455_v57, 0  ;;  %2405 = vmatprep.subr.msk.bf16.mxu1 %vm1670_vm3, %v2455_v57  ;;  %421 = vst.msk [vmem:[#allocation2 + $0xd9] sm:$0xff] %vm400_vm1, %v377_v39 }
  0x3b   : > { %973 = vrot.lane.b32.xlu1 %v2681_v60, %s2512_s17  ;;  %2369 = vmatpush3.bf16.msra.mxu0 %v1672_v59 }
  0x3c   : > { %2399 = vmatpush3.bf16.msra.mxu1 %v1672_v59  ;;  %2370 = vmatprep.subr.bf16.mxu0 %v2456_v3 }
  0x3d   : > { %846 = vrot.lane.b32.xlu0 %v2685_v62, %s2511_s16  ;;  %2395 = vmatprep.subr.bf16.mxu1 %v2456_v3 }
  0x3f   : > { %977 = vrot.lane.b32.xlu1 %v2745_v40, %s2512_s17  ;;  %2371 = vmatpush3.bf16.msra.mxu0 %v2456_v3 }
  0x40   : > { %2400 = vmatpush3.bf16.msra.mxu1 %v2456_v3  ;;  %2372 = vmatprep.subr.bf16.mxu0 %v2457_v5 }
  0x41   : > { %971 = vrot.lane.b32.xlu0 %v2673_v53, %s2512_s17  ;;  %v350_v53 = vadd.f32 %v2621_v2, %v334_v50  ;;  %2396 = vmatprep.subr.bf16.mxu1 %v2457_v5 }
  0x43   : > { %1102 = vrot.lane.b32.xlu1 %v2246_v22, %s2513_s26  ;;  %v366_v56 = vmax.f32 %v350_v53, 0.0  ;;  %2373 = vmatpush3.bf16.msra.mxu0 %v2457_v5  ;;  %v336_v22 = vmul.f32 %v2607_v1, %v320_v18  ;;  %v2908_v53 = vpack.c.bf16 %v1430_v51, %v1430_v51 }
  0x44   : > { %2401 = vmatpush3.bf16.msra.mxu1 %v2457_v5  ;;  %2374 = vmatprep.subr.bf16.mxu0 %v2458_v9 }
  0x45   : > { %975 = vrot.lane.b32.xlu0 %v2761_v44, %s2512_s17  ;;  %417 = vst.msk [vmem:[#allocation2 + $0xb1] sm:$0xff] %vm400_vm1, %v366_v56  ;;  %2397 = vmatprep.subr.bf16.mxu1 %v2458_v9  ;;  %v352_v24 = vadd.f32 %v2621_v2, %v336_v22 }
  0x47   : > { %1106 = vrot.lane.b32.xlu1 %v2764_v46, %s2513_s26  ;;  %2375 = vmatpush3.bf16.msra.mxu0 %v2458_v9  ;;  %v368_v26 = vmax.f32 %v352_v24, 0.0 }
  0x48   : > { %2402 = vmatpush3.bf16.msra.mxu1 %v2458_v9  ;;  %2376 = vmatprep.subr.bf16.mxu0 %v2460_v11 }
  0x49   : > { %1100 = vrot.lane.b32.xlu0 %v2245_v34, %s2513_s26  ;;  %2398 = vmatprep.subr.bf16.mxu1 %v2460_v11  ;;  %419 = vst.msk [vmem:[#allocation2 + $0xc9] sm:$0xff] %vm400_vm1, %v368_v26  ;;  %v374_v34 = vmul.f32 %v2607_v1, %v372_v32  ;;  %v1302_v1 = vld [vmem:[#allocation2 + $0x81] sm:$0xff] }
  0x4b   : > { %1232 = vrot.lane.b32.xlu1 %v2683_v61, %s2514_s27  ;;  %v1176_v61 = vld [vmem:[#allocation2 + $0xa8] sm:$0xff]  ;;  %2377 = vmatpush3.bf16.msra.mxu0 %v2460_v11  ;;  %v376_v37 = vadd.f32 %v2621_v2, %v374_v34  ;;  %v2881_v2 = vpack.c.bf16 %v1302_v1, %v1302_v1 }
  0x4c   : > { %v1177_v60 = vld [vmem:[#allocation2 + $0xb0] sm:$0xff]  ;;  %v2794_v0 = vpack.c.bf16 %v1176_v61, %v1176_v61  ;;  %2403 = vmatpush3.bf16.msra.mxu1 %v2460_v11 }
  0x4d   : > { %1104 = vrot.lane.b32.xlu0 %v2777_v54, %s2513_s26  ;;  %v2792_v63 = vpack.c.bf16 %v1177_v60, %v1177_v60  ;;  %v1435_v35 = vld [vmem:[#allocation2 + $0xb2] sm:$0xff] }
  0x4e   : > { %518 = vst.msk [vmem:[#allocation3 + $0x38] sm:$0xf] %vm503_vm2, %v2794_v0 }
  0x4f   : > { %1236 = vrot.lane.b32.xlu1 %v2691_v6, %s2514_s27  ;;  %519 = vst.msk [vmem:[#allocation3 + $0x3c] sm:$0xf] %vm503_vm2, %v2792_v63 }
  0x51   : > { %1230 = vrot.lane.b32.xlu0 %v2685_v62, %s2514_s27  ;;  %v2326_v62 = vpack.c.bf16 %v1298_v58, %v1298_v58 }
  0x53   : > { %1361 = vrot.lane.b32.xlu1 %v2745_v40, %s2515_s8 }
  0x55   : > { %1234 = vrot.lane.b32.xlu0 %v2693_v7, %s2514_s27 }
  0x57   : > { %1365 = vrot.lane.b32.xlu1 %v2326_v62, %s2515_s8 }
  0x59   : > { %1359 = vrot.lane.b32.xlu0 %v2761_v44, %s2515_s8 }
  0x5b   : > { %1490 = vrot.lane.b32.xlu1 %v2764_v46, %s2516_s28 }
  0x5d   : > { %1363 = vrot.lane.b32.xlu0 %v2325_v8, %s2515_s8 }
  0x5f   : > { %594 = vrot.lane.b32.xlu1 %v2745_v40, %s2509_s14  ;;  %v378_v40 = vmax.f32 %v376_v37, 0.0 }
  0x61   : > { %1488 = vrot.lane.b32.xlu0 %v2777_v54, %s2516_s28  ;;  %422 = vst.msk [vmem:[#allocation2 + $0xe1] sm:$0xff] %vm400_vm1, %v378_v40  ;;  %v1434_v40 = vld [vmem:[#allocation2 + $0xaa] sm:$0xff] }
  0x63   : > { %1494 = vrot.lane.b32.xlu1 %v2342_v12, %s2516_s28 }
  0x65   : > { %592 = vrot.lane.b32.xlu0 %v2761_v44, %s2509_s14  ;;  %v1301_v44 = vld [vmem:[#allocation2 + $0x79] sm:$0xff] }
  0x67   : > { %598 = vrot.lane.b32.xlu1 %v2326_v62, %s2509_s14 }
  0x69   : > { %1492 = vrot.lane.b32.xlu0 %v2341_v16, %s2516_s28 }
  0x6b   : > { %723 = vrot.lane.b32.xlu1 %v2764_v46, %s2510_s15  ;;  %v1431_v46 = vld [vmem:[#allocation2 + $0x82] sm:$0xff] }
  0x6c   : > { %v2899_v49 = vpack.c.bf16 %v1431_v46, %v1431_v46 }
  0x6d   : > { %596 = vrot.lane.b32.xlu0 %v2325_v8, %s2509_s14 }
  0x6f   : > { %727 = vrot.lane.b32.xlu1 %v2342_v12, %s2510_s15 }
  0x71   : > { %721 = vrot.lane.b32.xlu0 %v2777_v54, %s2510_s15 }
  0x73   : > { %852 = vrot.lane.b32.xlu1 %v2691_v6, %s2511_s16  ;;  %v2281_v6 = vpack.c.bf16 %v913_v29, %v913_v29 }
  0x75   : > { %725 = vrot.lane.b32.xlu0 %v2341_v16, %s2510_s15 }
  0x77   : > { %856 = vrot.lane.b32.xlu1 %v2706_v14, %s2511_s16 }
  0x79   : > { %850 = vrot.lane.b32.xlu0 %v2693_v7, %s2511_s16  ;;  %v2861_v7 = vpack.c.bf16 %v1043_v30, %v1043_v30 }
  0x7b   : > { %981 = vrot.lane.b32.xlu1 %v2326_v62, %s2512_s17 }
  0x7d   : > { %854 = vrot.lane.b32.xlu0 %v2708_v15, %s2511_s16 }
  0x7f   : > { %985 = vrot.lane.b32.xlu1 %v2282_v28, %s2512_s17 }
  0x81   : > { %979 = vrot.lane.b32.xlu0 %v2325_v8, %s2512_s17 }
  0x83   : > { %1110 = vrot.lane.b32.xlu1 %v2342_v12, %s2513_s26  ;;  %v1047_v12 = vld [vmem:[#allocation2 + $0x9a] sm:$0xff] }
  0x84   : > { %v2959_v17 = vpack.c.bf16 %v1047_v12, %v1047_v12 }
  0x85   : > { %983 = vrot.lane.b32.xlu0 %v2281_v6, %s2512_s17 }
  0x87   : > { %1114 = vrot.lane.b32.xlu1 %v2861_v7, %s2513_s26 }
  0x89   : > { %1108 = vrot.lane.b32.xlu0 %v2341_v16, %s2513_s26 }
  0x8b   : > { %1240 = vrot.lane.b32.xlu1 %v2706_v14, %s2514_s27  ;;  %v2889_v14 = vpack.c.bf16 %v1301_v44, %v1301_v44 }
  0x8d   : > { %1112 = vrot.lane.b32.xlu0 %v2297_v38, %s2513_s26 }
  0x8f   : > { %1244 = vrot.lane.b32.xlu1 %v2710_v19, %s2514_s27 }
  0x91   : > { %1238 = vrot.lane.b32.xlu0 %v2708_v15, %s2514_s27 }
  0x93   : > { %1369 = vrot.lane.b32.xlu1 %v2282_v28, %s2515_s8 }
  0x95   : > { %1242 = vrot.lane.b32.xlu0 %v2712_v20, %s2514_s27  ;;  %v589_v43 = vpop.permute.xlu1 %588 }
  0x96   : > { %635 = vst.msk [vmem:[#allocation3 + $0x8] sm:$0xf] %vm632_vm4, %v589_v43  ;;  %v3021_v43 = vpack.c.bf16 %v1434_v40, %v1434_v40 }
  0x97   : > { %1373 = vrot.lane.b32.xlu1 %v2881_v2, %s2515_s8 }
  0x99   : > { %1367 = vrot.lane.b32.xlu0 %v2281_v6, %s2515_s8  ;;  %v591_v15 = vpop.permute.xlu1 %590 }
  0x9a   : > { %636 = vst.msk [vmem:[#allocation3 + $0xc] sm:$0xf] %vm632_vm4, %v591_v15 }
  0x9b   : > { %v585_v45 = vpop.permute.xlu0 %584  ;;  %1498 = vrot.lane.b32.xlu1 %v2861_v7, %s2516_s28 }
  0x9c   : > { %633 = vst.msk [vmem:[#allocation3] sm:$0xf] %vm632_vm4, %v585_v45 }
  0x9d   : > { %1371 = vrot.lane.b32.xlu0 %v2889_v14, %s2515_s8  ;;  %v716_v47 = vpop.permute.xlu1 %715 }
  0x9f   : > { %v587_v48 = vpop.permute.xlu0 %586  ;;  %602 = vrot.lane.b32.xlu1 %v2282_v28, %s2509_s14  ;;  %v1306_v28 = vld [vmem:[#allocation2 + $0xb1] sm:$0xff] }
  0xa0   : > { %634 = vst.msk [vmem:[#allocation3 + $0x4] sm:$0xf] %vm632_vm4, %v587_v48  ;;  %v793_v48 = vld [vmem:[#allocation2 + $0xc8] sm:$0xff] }
  0xa1   : > { %1496 = vrot.lane.b32.xlu0 %v2297_v38, %s2516_s28  ;;  %763 = vst.msk [vmem:[#allocation3 + $0x4] sm:$0xf] %vm761_vm5, %v716_v47  ;;  %v720_v50 = vpop.permute.xlu1 %719  ;;  %v2274_v51 = vpack.c.bf16 %v793_v48, %v793_v48 }
  0xa2   : > { %765 = vst.msk [vmem:[#allocation3 + $0xc] sm:$0xf] %vm761_vm5, %v720_v50 }
  0xa3   : > { %v714_v52 = vpop.permute.xlu0 %713  ;;  %1502 = vrot.lane.b32.xlu1 %v2899_v49, %s2516_s28 }
  0xa4   : > { %762 = vst.msk [vmem:[#allocation3] sm:$0xf] %vm761_vm5, %v714_v52 }
  0xa5   : > { %600 = vrot.lane.b32.xlu0 %v2281_v6, %s2509_s14  ;;  %v845_v54 = vpop.permute.xlu1 %844 }
  0xa6   : > { %892 = vst.msk [vmem:[#allocation3 + $0x4] sm:$0xf] %vm890_vm6, %v845_v54 }
  0xa7   : > { %v718_v55 = vpop.permute.xlu0 %717  ;;  %606 = vrot.lane.b32.xlu1 %v2881_v2, %s2509_s14 }
  0xa8   : > { %764 = vst.msk [vmem:[#allocation3 + $0x8] sm:$0xf] %vm761_vm5, %v718_v55 }
  0xa9   : > { %1500 = vrot.lane.b32.xlu0 %v2908_v53, %s2516_s28  ;;  %v849_v56 = vpop.permute.xlu1 %848 }
  0xaa   : > { %894 = vst.msk [vmem:[#allocation3 + $0xc] sm:$0xf] %vm890_vm6, %v849_v56  ;;  %v922_v56 = vld [vmem:[#allocation2 + $0xc9] sm:$0xff] }
  0xab   : > { %v843_v57 = vpop.permute.xlu0 %842  ;;  %731 = vrot.lane.b32.xlu1 %v2861_v7, %s2510_s15  ;;  %v1305_v7 = vld [vmem:[#allocation2 + $0xa9] sm:$0xff] }
  0xac   : > { %891 = vst.msk [vmem:[#allocation3] sm:$0xf] %vm890_vm6, %v843_v57 }
  0xad   : > { %604 = vrot.lane.b32.xlu0 %v2889_v14, %s2509_s14  ;;  %v974_v58 = vpop.permute.xlu1 %973 }
  0xae   : > { %1021 = vst.msk [vmem:[#allocation3 + $0x4] sm:$0xf] %vm1019_vm7, %v974_v58  ;;  %v2290_v58 = vpack.c.bf16 %v922_v56, %v922_v56 }
  0xaf   : > { %v847_v59 = vpop.permute.xlu0 %846  ;;  %735 = vrot.lane.b32.xlu1 %v2899_v49, %s2510_s15 }
  0xb0   : > { %893 = vst.msk [vmem:[#allocation3 + $0x8] sm:$0xf] %vm890_vm6, %v847_v59 }
  0xb1   : > { %729 = vrot.lane.b32.xlu0 %v2297_v38, %s2510_s15  ;;  %v978_v60 = vpop.permute.xlu1 %977  ;;  %v3010_v38 = vpack.c.bf16 %v1435_v35, %v1435_v35 }
  0xb2   : > { %1023 = vst.msk [vmem:[#allocation3 + $0xc] sm:$0xf] %vm1019_vm7, %v978_v60  ;;  %v921_v60 = vld [vmem:[#allocation2 + $0xc1] sm:$0xff] }
  0xb3   : > { %v972_v61 = vpop.permute.xlu0 %971  ;;  %860 = vrot.lane.b32.xlu1 %v2710_v19, %s2511_s16  ;;  %v2943_v19 = vpack.c.bf16 %v918_v4, %v918_v4 }
  0xb4   : > { %1020 = vst.msk [vmem:[#allocation3] sm:$0xf] %vm1019_vm7, %v972_v61 }
  0xb5   : > { %733 = vrot.lane.b32.xlu0 %v2908_v53, %s2510_s15  ;;  %v1103_v3 = vpop.permute.xlu1 %1102 }
  0xb6   : > { %1150 = vst.msk [vmem:[#allocation3 + $0x4] sm:$0xf] %vm1148_vm8, %v1103_v3  ;;  %v1051_v3 = vld [vmem:[#allocation2 + $0xca] sm:$0xff] }
  0xb7   : > { %v976_v62 = vpop.permute.xlu0 %975  ;;  %864 = vrot.lane.b32.xlu1 %v2747_v41, %s2511_s16 }
  0xb8   : > { %1022 = vst.msk [vmem:[#allocation3 + $0x8] sm:$0xf] %vm1019_vm7, %v976_v62 }
  0xb9   : > { %858 = vrot.lane.b32.xlu0 %v2712_v20, %s2511_s16  ;;  %v1107_v5 = vpop.permute.xlu1 %1106  ;;  %v2953_v20 = vpack.c.bf16 %v917_v10, %v917_v10 }
  0xba   : > { %1152 = vst.msk [vmem:[#allocation3 + $0xc] sm:$0xf] %vm1148_vm8, %v1107_v5  ;;  %v2306_v5 = vpack.c.bf16 %v1051_v3, %v1051_v3 }
  0xbb   : > { %v1101_v8 = vpop.permute.xlu0 %1100  ;;  %989 = vrot.lane.b32.xlu1 %v2881_v2, %s2512_s17 }
  0xbc   : > { %1149 = vst.msk [vmem:[#allocation3] sm:$0xf] %vm1148_vm8, %v1101_v8 }
  0xbd   : > { %862 = vrot.lane.b32.xlu0 %v2749_v42, %s2511_s16  ;;  %v1233_v9 = vpop.permute.xlu1 %1232 }
  0xbe   : > { %1280 = vst.msk [vmem:[#allocation3 + $0x4] sm:$0xf] %vm1278_vm9, %v1233_v9 }
  0xbf   : > { %v1105_v11 = vpop.permute.xlu0 %1104  ;;  %993 = vrot.lane.b32.xlu1 %v2943_v19, %s2512_s17 }
  0xc0   : > { %1151 = vst.msk [vmem:[#allocation3 + $0x8] sm:$0xf] %vm1148_vm8, %v1105_v11  ;;  %v1181_v11 = vld [vmem:[#allocation2 + $0xe0] sm:$0xff] }
  0xc1   : > { %987 = vrot.lane.b32.xlu0 %v2889_v14, %s2512_s17  ;;  %v1237_v13 = vpop.permute.xlu1 %1236 }
  0xc2   : > { %1282 = vst.msk [vmem:[#allocation3 + $0xc] sm:$0xf] %vm1278_vm9, %v1237_v13  ;;  %v2322_v13 = vpack.c.bf16 %v1181_v11, %v1181_v11 }
  0xc3   : > { %v1231_v16 = vpop.permute.xlu0 %1230  ;;  %1118 = vrot.lane.b32.xlu1 %v2899_v49, %s2513_s26 }
  0xc4   : > { %1279 = vst.msk [vmem:[#allocation3] sm:$0xf] %vm1278_vm9, %v1231_v16 }
  0xc5   : > { %991 = vrot.lane.b32.xlu0 %v2953_v20, %s2512_s17  ;;  %v1362_v18 = vpop.permute.xlu1 %1361 }
  0xc6   : > { %1409 = vst.msk [vmem:[#allocation3 + $0x4] sm:$0xf] %vm1407_vm10, %v1362_v18 }
  0xc7   : > { %v1235_v22 = vpop.permute.xlu0 %1234  ;;  %1122 = vrot.lane.b32.xlu1 %v2959_v17, %s2513_s26 }
  0xc8   : > { %1281 = vst.msk [vmem:[#allocation3 + $0x8] sm:$0xf] %vm1278_vm9, %v1235_v22  ;;  %v1310_v22 = vld [vmem:[#allocation2 + $0xe1] sm:$0xff] }
  0xc9   : > { %1116 = vrot.lane.b32.xlu0 %v2908_v53, %s2513_s26  ;;  %v1366_v24 = vpop.permute.xlu1 %1365  ;;  %v792_v53 = vld [vmem:[#allocation2 + $0xc0] sm:$0xff] }
  0xca   : > { %1411 = vst.msk [vmem:[#allocation3 + $0xc] sm:$0xf] %vm1407_vm10, %v1366_v24  ;;  %v2273_v55 = vpack.c.bf16 %v792_v53, %v792_v53 }
  0xcb   : > { %v1360_v25 = vpop.permute.xlu0 %1359  ;;  %1248 = vrot.lane.b32.xlu1 %v2747_v41, %s2514_s27  ;;  %v2987_v41 = vpack.c.bf16 %v1306_v28, %v1306_v28 }
  0xcc   : > { %1408 = vst.msk [vmem:[#allocation3] sm:$0xf] %vm1407_vm10, %v1360_v25  ;;  %v2338_v25 = vpack.c.bf16 %v1310_v22, %v1310_v22 }
  0xcd   : > { %1120 = vrot.lane.b32.xlu0 %v2969_v23, %s2513_s26  ;;  %v1491_v26 = vpop.permute.xlu1 %1490 }
  0xce   : > { %1538 = vst.msk [vmem:[#allocation3 + $0x4] sm:$0xf] %vm1536_vm11, %v1491_v26 }
  0xcf   : > { %v1364_v27 = vpop.permute.xlu0 %1363  ;;  %1252 = vrot.lane.b32.xlu1 %v2792_v63, %s2514_s27 }
  0xd0   : > { %1410 = vst.msk [vmem:[#allocation3 + $0x8] sm:$0xf] %vm1407_vm10, %v1364_v27  ;;  %v1309_v27 = vld [vmem:[#allocation2 + $0xd9] sm:$0xff] }
  0xd1   : > { %1246 = vrot.lane.b32.xlu0 %v2749_v42, %s2514_s27  ;;  %v595_v29 = vpop.permute.xlu1 %594  ;;  %v2997_v42 = vpack.c.bf16 %v1305_v7, %v1305_v7 }
  0xd2   : > { %638 = vst.msk [vmem:[#allocation3 + $0x14] sm:$0xf] %vm632_vm4, %v595_v29  ;;  %v2337_v29 = vpack.c.bf16 %v1309_v27, %v1309_v27 }
  0xd3   : > { %v1489_v6 = vpop.permute.xlu0 %1488  ;;  %1377 = vrot.lane.b32.xlu1 %v2943_v19, %s2515_s8 }
  0xd4   : > { %1537 = vst.msk [vmem:[#allocation3] sm:$0xf] %vm1536_vm11, %v1489_v6  ;;  %v1439_v6 = vld [vmem:[#allocation2 + $0xe2] sm:$0xff] }
  0xd5   : > { %1250 = vrot.lane.b32.xlu0 %v2794_v0, %s2514_s27  ;;  %v1495_v30 = vpop.permute.xlu1 %1494 }
  0xd6   : > { %1540 = vst.msk [vmem:[#allocation3 + $0xc] sm:$0xf] %vm1536_vm11, %v1495_v30 }
  0xd7   : > { %v593_v31 = vpop.permute.xlu0 %592  ;;  %1381 = vrot.lane.b32.xlu1 %v2987_v41, %s2515_s8 }
  0xd8   : > { %637 = vst.msk [vmem:[#allocation3 + $0x10] sm:$0xf] %vm632_vm4, %v593_v31  ;;  %v2354_v31 = vpack.c.bf16 %v1439_v6, %v1439_v6 }
  0xd9   : > { %1375 = vrot.lane.b32.xlu0 %v2953_v20, %s2515_s8  ;;  %v599_v32 = vpop.permute.xlu1 %598 }
  0xda   : > { %640 = vst.msk [vmem:[#allocation3 + $0x1c] sm:$0xf] %vm632_vm4, %v599_v32  ;;  %v1438_v32 = vld [vmem:[#allocation2 + $0xda] sm:$0xff] }
  0xdb   : > { %v1493_v33 = vpop.permute.xlu0 %1492  ;;  %v2459_v34 = vld [vmem:[#allocation3] sm:$0xff]   ;;  %1506 = vrot.lane.b32.xlu1 %v2959_v17, %s2516_s28 }
  0xdc   : > { %1539 = vst.msk [vmem:[#allocation3 + $0x8] sm:$0xf] %vm1536_vm11, %v1493_v33  ;;  %2378 = vmatprep.mubr.msk.bf16.mxu0 %vm1645_vm12, %v2459_v34  ;;  %v2353_v34 = vpack.c.bf16 %v1438_v32, %v1438_v32 }
  0xdd   : > { %1379 = vrot.lane.b32.xlu0 %v2997_v42, %s2515_s8  ;;  %v724_v36 = vpop.permute.xlu1 %723 }
  0xde   : > { %767 = vst.msk [vmem:[#allocation3 + $0x14] sm:$0xf] %vm761_vm5, %v724_v36 }
  0xdf   : > { %v597_v37 = vpop.permute.xlu0 %596  ;;  %610 = vrot.lane.b32.xlu1 %v2943_v19, %s2509_s14  ;;  %v1050_v19 = vld [vmem:[#allocation2 + $0xc2] sm:$0xff] }
  0xe0   : > { %639 = vst.msk [vmem:[#allocation3 + $0x18] sm:$0xf] %vm632_vm4, %v597_v37  ;;  %v2305_v10 = vpack.c.bf16 %v1050_v19, %v1050_v19 }
  0xe1   : > { %1504 = vrot.lane.b32.xlu0 %v2969_v23, %s2516_s28  ;;  %v728_v39 = vpop.permute.xlu1 %727 }
  0xe2   : > { %769 = vst.msk [vmem:[#allocation3 + $0x1c] sm:$0xf] %vm761_vm5, %v728_v39 }
  0xe3   : > { %v722_v1 = vpop.permute.xlu0 %721  ;;  %v2461_v2 = vld [vmem:[#allocation3 + $0x8] sm:$0xff]   ;;  %1510 = vrot.lane.b32.xlu1 %v3010_v38, %s2516_s28 }
  0xe4   : > { %766 = vst.msk [vmem:[#allocation3 + $0x10] sm:$0xf] %vm761_vm5, %v722_v1  ;;  %2379 = vmatmul.mubr.msk.bf16.vlgmr.msra.gmra.mxu0 %vm1645_vm12, %v2461_v2 }
  0xe5   : > { %608 = vrot.lane.b32.xlu0 %v2953_v20, %s2509_s14  ;;  %v853_v44 = vpop.permute.xlu1 %852 }
  0xe6   : > { %896 = vst.msk [vmem:[#allocation3 + $0x14] sm:$0xf] %vm890_vm6, %v853_v44 }
  0xe7   : > { %v726_v14 = vpop.permute.xlu0 %725  ;;  %614 = vrot.lane.b32.xlu1 %v2987_v41, %s2509_s14 }
  0xe8   : > { %768 = vst.msk [vmem:[#allocation3 + $0x18] sm:$0xf] %vm761_vm5, %v726_v14 }
  0xe9   : > { %1508 = vrot.lane.b32.xlu0 %v3021_v43, %s2516_s28  ;;  %v857_v15 = vpop.permute.xlu1 %856 }
  0xea   : > { %898 = vst.msk [vmem:[#allocation3 + $0x1c] sm:$0xf] %vm890_vm6, %v857_v15 }
  0xeb   : > { %v851_v45 = vpop.permute.xlu0 %850  ;;  %739 = vrot.lane.b32.xlu1 %v2959_v17, %s2510_s15  ;;  %v1180_v17 = vld [vmem:[#allocation2 + $0xd8] sm:$0xff] }
  0xec   : > { %895 = vst.msk [vmem:[#allocation3 + $0x10] sm:$0xf] %vm890_vm6, %v851_v45  ;;  %v2321_v21 = vpack.c.bf16 %v1180_v17, %v1180_v17 }
  0xed   : > { %612 = vrot.lane.b32.xlu0 %v2997_v42, %s2509_s14  ;;  %v982_v46 = vpop.permute.xlu1 %981  ;;  %s2031_s14 = sshll.u32 %s3274_s19, 5 }
  0xee   : > { %1025 = vst.msk [vmem:[#allocation3 + $0x14] sm:$0xf] %vm1019_vm7, %v982_v46 }
  0xef   : > { %v855_v47 = vpop.permute.xlu0 %854  ;;  %743 = vrot.lane.b32.xlu1 %v3010_v38, %s2510_s15 }
  0xf0   : > { %897 = vst.msk [vmem:[#allocation3 + $0x18] sm:$0xf] %vm890_vm6, %v855_v47 }
  0xf1   : > { %737 = vrot.lane.b32.xlu0 %v2969_v23, %s2510_s15  ;;  %v986_v49 = vpop.permute.xlu1 %985 }
  0xf2   : > { %1027 = vst.msk [vmem:[#allocation3 + $0x1c] sm:$0xf] %vm1019_vm7, %v986_v49 }
  0xf3   : > { %v980_v50 = vpop.permute.xlu0 %979  ;;  %868 = vrot.lane.b32.xlu1 %v2792_v63, %s2511_s16 }
  0xf4   : > { %1024 = vst.msk [vmem:[#allocation3 + $0x10] sm:$0xf] %vm1019_vm7, %v980_v50 }
  0xf5   : > { %741 = vrot.lane.b32.xlu0 %v3021_v43, %s2510_s15  ;;  %v1111_v52 = vpop.permute.xlu1 %1110  ;;  %s259_s15 = sadd.s32 %s2031_s14, %s2030_s7 }
  0xf6   : > { %1154 = vst.msk [vmem:[#allocation3 + $0x14] sm:$0xf] %vm1148_vm8, %v1111_v52 }
  0xf7   : > { %v984_v54 = vpop.permute.xlu0 %983  ;;  %872 = vrot.lane.b32.xlu1 %v2274_v51, %s2511_s16 }
  0xf8   : > { %1026 = vst.msk [vmem:[#allocation3 + $0x18] sm:$0xf] %vm1019_vm7, %v984_v54 }
  0xf9   : > { %866 = vrot.lane.b32.xlu0 %v2794_v0, %s2511_s16  ;;  %v1115_v57 = vpop.permute.xlu1 %1114  ;;  %v2289_v0 = vpack.c.bf16 %v921_v60, %v921_v60 }
  0xfa   : > { %1156 = vst.msk [vmem:[#allocation3 + $0x1c] sm:$0xf] %vm1148_vm8, %v1115_v57 }
  0xfb   : > { %v1109_v63 = vpop.permute.xlu0 %1108  ;;  %997 = vrot.lane.b32.xlu1 %v2987_v41, %s2512_s17 }
  0xfc   : > { %1153 = vst.msk [vmem:[#allocation3 + $0x10] sm:$0xf] %vm1148_vm8, %v1109_v63 }
  0xfd   : > { %870 = vrot.lane.b32.xlu0 %v2273_v55, %s2511_s16  ;;  %v1241_v59 = vpop.permute.xlu1 %1240  ;;  %s2032_s16 = sshll.u32 %s259_s15, 3 }
  0xfe   : > { %1284 = vst.msk [vmem:[#allocation3 + $0x14] sm:$0xf] %vm1278_vm9, %v1241_v59 }
  0xff   : > { %v1113_v61 = vpop.permute.xlu0 %1112  ;;  %1001 = vrot.lane.b32.xlu1 %v2290_v58, %s2512_s17 }
 0x100   : > { %1155 = vst.msk [vmem:[#allocation3 + $0x18] sm:$0xf] %vm1148_vm8, %v1113_v61 }
 0x101   : > { %995 = vrot.lane.b32.xlu0 %v2997_v42, %s2512_s17  ;;  %v1245_v62 = vpop.permute.xlu1 %1244 }
 0x102   : > { %1286 = vst.msk [vmem:[#allocation3 + $0x1c] sm:$0xf] %vm1278_vm9, %v1245_v62 }
 0x103   : > { %v1239_v4 = vpop.permute.xlu0 %1238  ;;  %1126 = vrot.lane.b32.xlu1 %v3010_v38, %s2513_s26 }
 0x104   : > { %1283 = vst.msk [vmem:[#allocation3 + $0x10] sm:$0xf] %vm1278_vm9, %v1239_v4 }
 0x105   : > { %999 = vrot.lane.b32.xlu0 %v2289_v0, %s2512_s17  ;;  %v1370_v8 = vpop.permute.xlu1 %1369 }
 0x106   : > { %1413 = vst.msk [vmem:[#allocation3 + $0x14] sm:$0xf] %vm1407_vm10, %v1370_v8 }
 0x107   : > { %v1243_v9 = vpop.permute.xlu0 %1242  ;;  %1130 = vrot.lane.b32.xlu1 %v2306_v5, %s2513_s26 }
 0x108   : > { %1285 = vst.msk [vmem:[#allocation3 + $0x18] sm:$0xf] %vm1278_vm9, %v1243_v9 }
 0x109   : > { %1124 = vrot.lane.b32.xlu0 %v3021_v43, %s2513_s26  ;;  %v1374_v20 = vpop.permute.xlu1 %1373 }
 0x10a   : > { %1415 = vst.msk [vmem:[#allocation3 + $0x1c] sm:$0xf] %vm1407_vm10, %v1374_v20 }
 0x10b   : > { %v1368_v12 = vpop.permute.xlu0 %1367  ;;  %1256 = vrot.lane.b32.xlu1 %v2274_v51, %s2514_s27 }
 0x10c   : > { %1412 = vst.msk [vmem:[#allocation3 + $0x10] sm:$0xf] %vm1407_vm10, %v1368_v12 }
 0x10d   : > { %1128 = vrot.lane.b32.xlu0 %v2305_v10, %s2513_s26  ;;  %v1499_v16 = vpop.permute.xlu1 %1498 }
 0x10e   : > { %1542 = vst.msk [vmem:[#allocation3 + $0x14] sm:$0xf] %vm1536_vm11, %v1499_v16 }
 0x10f   : > { %v1372_v18 = vpop.permute.xlu0 %1371  ;;  %1260 = vrot.lane.b32.xlu1 %v2322_v13, %s2514_s27 }
 0x110   : > { %1414 = vst.msk [vmem:[#allocation3 + $0x18] sm:$0xf] %vm1407_vm10, %v1372_v18 }
 0x111   : > { %1254 = vrot.lane.b32.xlu0 %v2273_v55, %s2514_s27  ;;  %v603_v23 = vpop.permute.xlu1 %602 }
 0x112   : > { %642 = vst.msk [vmem:[#allocation3 + $0x24] sm:$0xf] %vm632_vm4, %v603_v23 }
 0x113   : > { %v1497_v24 = vpop.permute.xlu0 %1496  ;;  %1385 = vrot.lane.b32.xlu1 %v2290_v58, %s2515_s8 }
 0x114   : > { %1541 = vst.msk [vmem:[#allocation3 + $0x10] sm:$0xf] %vm1536_vm11, %v1497_v24 }
 0x115   : > { %1258 = vrot.lane.b32.xlu0 %v2321_v21, %s2514_s27  ;;  %v1503_v26 = vpop.permute.xlu1 %1502  ;;  %s3168_s27 = scalar_lea.vmem %s3261_s4, %s2032_s16 }
 0x116   : > { %1544 = vst.msk [vmem:[#allocation3 + $0x1c] sm:$0xf] %vm1536_vm11, %v1503_v26 }
 0x117   : > { %v601_v28 = vpop.permute.xlu0 %600  ;;  %1389 = vrot.lane.b32.xlu1 %v2338_v25, %s2515_s8 }
 0x118   : > { %641 = vst.msk [vmem:[#allocation3 + $0x20] sm:$0xf] %vm632_vm4, %v601_v28 }
 0x119   : > { %1383 = vrot.lane.b32.xlu0 %v2289_v0, %s2515_s8  ;;  %v607_v41 = vpop.permute.xlu1 %606 }
 0x11a   : > { %644 = vst.msk [vmem:[#allocation3 + $0x2c] sm:$0xf] %vm632_vm4, %v607_v41 }
 0x11b   : > { %v1501_v30 = vpop.permute.xlu0 %1500  ;;  %v2462_v7 = vld [vmem:[#allocation3 + $0x10] sm:$0xff]   ;;  %1514 = vrot.lane.b32.xlu1 %v2306_v5, %s2516_s28 }
 0x11c   : > { %1543 = vst.msk [vmem:[#allocation3 + $0x18] sm:$0xf] %vm1536_vm11, %v1501_v30  ;;  %2382 = vmatprep.mubr.msk.bf16.mxu0 %vm1645_vm12, %v2462_v7 }
 0x11d   : > { %1387 = vrot.lane.b32.xlu0 %v2337_v29, %s2515_s8  ;;  %v732_v42 = vpop.permute.xlu1 %731  ;;  %s268_s8 = sadd.s32 %s2033_s25, %s3282_s18 }
 0x11e   : > { %771 = vst.msk [vmem:[#allocation3 + $0x24] sm:$0xf] %vm761_vm5, %v732_v42  ;;  %s2034_s10 = sshll.u32 %s268_s8, 1 }
 0x11f   : > { %v605_v33 = vpop.permute.xlu0 %604  ;;  %1518 = vrot.lane.b32.xlu1 %v2354_v31, %s2516_s28 }
 0x120   : > { %643 = vst.msk [vmem:[#allocation3 + $0x28] sm:$0xf] %vm632_vm4, %v605_v33 }
 0x121   : > { %1512 = vrot.lane.b32.xlu0 %v2305_v10, %s2516_s28  ;;  %v736_v35 = vpop.permute.xlu1 %735 }
 0x122   : > { %773 = vst.msk [vmem:[#allocation3 + $0x2c] sm:$0xf] %vm761_vm5, %v736_v35 }
 0x123   : > { %v730_v36 = vpop.permute.xlu0 %729  ;;  %v2463_v37 = vld [vmem:[#allocation3 + $0x18] sm:$0xff]  }
 0x124   : > { %770 = vst.msk [vmem:[#allocation3 + $0x20] sm:$0xf] %vm761_vm5, %v730_v36  ;;  %2383 = vmatmul.mubr.msk.bf16.gmra.mxu0 %vm1645_vm12, %v2463_v37 }
 0x125   : > { %1516 = vrot.lane.b32.xlu0 %v2353_v34, %s2516_s28  ;;  %v861_v38 = vpop.permute.xlu1 %860  ;;  %s270_s28 = scalar_lea.vmem %s3262_s5, %s2034_s10 }
 0x126   : > { %900 = vst.msk [vmem:[#allocation3 + $0x24] sm:$0xf] %vm890_vm6, %v861_v38 }
 0x127   : > { %v734_v39 = vpop.permute.xlu0 %733 }
 0x128   : > { %772 = vst.msk [vmem:[#allocation3 + $0x28] sm:$0xf] %vm761_vm5, %v734_v39 }
 0x129   : > { %v865_v40 = vpop.permute.xlu1 %864 }
 0x12a   : > { %902 = vst.msk [vmem:[#allocation3 + $0x2c] sm:$0xf] %vm890_vm6, %v865_v40 }
 0x12b   : > { %v859_v1 = vpop.permute.xlu0 %858 }
 0x12c   : > { %899 = vst.msk [vmem:[#allocation3 + $0x20] sm:$0xf] %vm890_vm6, %v859_v1 }
 0x12d   : > { %v990_v2 = vpop.permute.xlu1 %989 }
 0x12e   : > { %1029 = vst.msk [vmem:[#allocation3 + $0x24] sm:$0xf] %vm1019_vm7, %v990_v2 }
 0x12f   : > { %v863_v43 = vpop.permute.xlu0 %862 }
 0x130   : > { %901 = vst.msk [vmem:[#allocation3 + $0x28] sm:$0xf] %vm890_vm6, %v863_v43 }
 0x131   : > { %v994_v44 = vpop.permute.xlu1 %993 }
 0x132   : > { %1031 = vst.msk [vmem:[#allocation3 + $0x2c] sm:$0xf] %vm1019_vm7, %v994_v44 }
 0x133   : > { %v988_v14 = vpop.permute.xlu0 %987 }
 0x134   : > { %1028 = vst.msk [vmem:[#allocation3 + $0x20] sm:$0xf] %vm1019_vm7, %v988_v14 }
 0x135   : > { %v1119_v15 = vpop.permute.xlu1 %1118 }
 0x136   : > { %1158 = vst.msk [vmem:[#allocation3 + $0x24] sm:$0xf] %vm1148_vm8, %v1119_v15 }
 0x137   : > { %v992_v45 = vpop.permute.xlu0 %991 }
 0x138   : > { %1030 = vst.msk [vmem:[#allocation3 + $0x28] sm:$0xf] %vm1019_vm7, %v992_v45 }
 0x139   : > { %v1123_v46 = vpop.permute.xlu1 %1122 }
 0x13a   : > { %1160 = vst.msk [vmem:[#allocation3 + $0x2c] sm:$0xf] %vm1148_vm8, %v1123_v46 }
 0x13b   : > { %v1117_v47 = vpop.permute.xlu0 %1116 }
 0x13c   : > { %1157 = vst.msk [vmem:[#allocation3 + $0x20] sm:$0xf] %vm1148_vm8, %v1117_v47 }
 0x13d   : > { %v1249_v48 = vpop.permute.xlu1 %1248 }
 0x13e   : > { %1288 = vst.msk [vmem:[#allocation3 + $0x24] sm:$0xf] %vm1278_vm9, %v1249_v48 }
 0x13f   : > { %v1121_v49 = vpop.permute.xlu0 %1120 }
 0x140   : > { %1159 = vst.msk [vmem:[#allocation3 + $0x28] sm:$0xf] %vm1148_vm8, %v1121_v49 }
 0x141   : > { %v1253_v50 = vpop.permute.xlu1 %1252 }
 0x142   : > { %1290 = vst.msk [vmem:[#allocation3 + $0x2c] sm:$0xf] %vm1278_vm9, %v1253_v50 }
 0x143   : > { %v1247_v51 = vpop.permute.xlu0 %1246 }
 0x144   : > { %1287 = vst.msk [vmem:[#allocation3 + $0x20] sm:$0xf] %vm1278_vm9, %v1247_v51 }
 0x145   : > { %v1378_v52 = vpop.permute.xlu1 %1377 }
 0x146   : > { %1417 = vst.msk [vmem:[#allocation3 + $0x24] sm:$0xf] %vm1407_vm10, %v1378_v52 }
 0x147   : > { %v1251_v53 = vpop.permute.xlu0 %1250 }
 0x148   : > { %1289 = vst.msk [vmem:[#allocation3 + $0x28] sm:$0xf] %vm1278_vm9, %v1251_v53 }
 0x149   : > { %v1382_v54 = vpop.permute.xlu1 %1381 }
 0x14a   : > { %1419 = vst.msk [vmem:[#allocation3 + $0x2c] sm:$0xf] %vm1407_vm10, %v1382_v54 }
 0x14b   : > { %v1376_v55 = vpop.permute.xlu0 %1375 }
 0x14c   : > { %1416 = vst.msk [vmem:[#allocation3 + $0x20] sm:$0xf] %vm1407_vm10, %v1376_v55 }
 0x14d   : > { %v1507_v56 = vpop.permute.xlu1 %1506 }
 0x14e   : > { %1546 = vst.msk [vmem:[#allocation3 + $0x24] sm:$0xf] %vm1536_vm11, %v1507_v56 }
 0x14f   : > { %v1380_v57 = vpop.permute.xlu0 %1379 }
 0x150   : > { %1418 = vst.msk [vmem:[#allocation3 + $0x28] sm:$0xf] %vm1407_vm10, %v1380_v57 }
 0x151   : > { %v611_v63 = vpop.permute.xlu1 %610 }
 0x152   : > { %646 = vst.msk [vmem:[#allocation3 + $0x34] sm:$0xf] %vm632_vm4, %v611_v63 }
 0x153   : > { %v1505_v58 = vpop.permute.xlu0 %1504 }
 0x154   : > { %1545 = vst.msk [vmem:[#allocation3 + $0x20] sm:$0xf] %vm1536_vm11, %v1505_v58 }
 0x155   : > { %v1511_v59 = vpop.permute.xlu1 %1510 }
 0x156   : > { %1548 = vst.msk [vmem:[#allocation3 + $0x2c] sm:$0xf] %vm1536_vm11, %v1511_v59 }
 0x157   : > { %v609_v60 = vpop.permute.xlu0 %608 }
 0x158   : > { %645 = vst.msk [vmem:[#allocation3 + $0x30] sm:$0xf] %vm632_vm4, %v609_v60 }
 0x159   : > { %v615_v61 = vpop.permute.xlu1 %614 }
 0x15a   : > { %648 = vst.msk [vmem:[#allocation3 + $0x3c] sm:$0xf] %vm632_vm4, %v615_v61 }
 0x15b   : > { %v1509_v0 = vpop.permute.xlu0 %1508  ;;  %v2464_v3 = vld [vmem:[#allocation3 + $0x20] sm:$0xff]  }
 0x15c   : > { %1547 = vst.msk [vmem:[#allocation3 + $0x28] sm:$0xf] %vm1536_vm11, %v1509_v0  ;;  %2386 = vmatprep.mubr.msk.bf16.mxu1 %vm1645_vm12, %v2464_v3 }
 0x15d   : > { %v740_v62 = vpop.permute.xlu1 %739 }
 0x15e   : > { %775 = vst.msk [vmem:[#allocation3 + $0x34] sm:$0xf] %vm761_vm5, %v740_v62 }
 0x15f   : > { %v613_v4 = vpop.permute.xlu0 %612 }
 0x160   : > { %647 = vst.msk [vmem:[#allocation3 + $0x38] sm:$0xf] %vm632_vm4, %v613_v4 }
 0x161   : > { %v744_v5 = vpop.permute.xlu1 %743 }
 0x162   : > { %777 = vst.msk [vmem:[#allocation3 + $0x3c] sm:$0xf] %vm761_vm5, %v744_v5 }
 0x163   : > { %v738_v8 = vpop.permute.xlu0 %737  ;;  %v2465_v19 = vld [vmem:[#allocation3 + $0x28] sm:$0xff]  }
 0x164   : > { %774 = vst.msk [vmem:[#allocation3 + $0x30] sm:$0xf] %vm761_vm5, %v738_v8  ;;  %2387 = vmatmul.mubr.msk.bf16.vlgmr.msra.gmra.mxu1 %vm1645_vm12, %v2465_v19 }
 0x165   : > { %v869_v9 = vpop.permute.xlu1 %868 }
 0x166   : > { %904 = vst.msk [vmem:[#allocation3 + $0x34] sm:$0xf] %vm890_vm6, %v869_v9 }
 0x167   : > { %v742_v10 = vpop.permute.xlu0 %741 }
 0x168   : > { %776 = vst.msk [vmem:[#allocation3 + $0x38] sm:$0xf] %vm761_vm5, %v742_v10 }
 0x169   : > { %v873_v11 = vpop.permute.xlu1 %872 }
 0x16a   : > { %906 = vst.msk [vmem:[#allocation3 + $0x3c] sm:$0xf] %vm890_vm6, %v873_v11 }
 0x16b   : > { %v867_v20 = vpop.permute.xlu0 %866 }
 0x16c   : > { %903 = vst.msk [vmem:[#allocation3 + $0x30] sm:$0xf] %vm890_vm6, %v867_v20 }
 0x16d   : > { %v998_v12 = vpop.permute.xlu1 %997 }
 0x16e   : > { %1033 = vst.msk [vmem:[#allocation3 + $0x34] sm:$0xf] %vm1019_vm7, %v998_v12 }
 0x16f   : > { %v871_v13 = vpop.permute.xlu0 %870 }
 0x170   : > { %905 = vst.msk [vmem:[#allocation3 + $0x38] sm:$0xf] %vm890_vm6, %v871_v13 }
 0x171   : > { %v1002_v16 = vpop.permute.xlu1 %1001 }
 0x172   : > { %1035 = vst.msk [vmem:[#allocation3 + $0x3c] sm:$0xf] %vm1019_vm7, %v1002_v16 }
 0x173   : > { %v996_v17 = vpop.permute.xlu0 %995 }
 0x174   : > { %1032 = vst.msk [vmem:[#allocation3 + $0x30] sm:$0xf] %vm1019_vm7, %v996_v17 }
 0x175   : > { %v1127_v18 = vpop.permute.xlu1 %1126 }
 0x176   : > { %1162 = vst.msk [vmem:[#allocation3 + $0x34] sm:$0xf] %vm1148_vm8, %v1127_v18 }
 0x177   : > { %v1000_v21 = vpop.permute.xlu0 %999 }
 0x178   : > { %1034 = vst.msk [vmem:[#allocation3 + $0x38] sm:$0xf] %vm1019_vm7, %v1000_v21 }
 0x179   : > { %v1131_v22 = vpop.permute.xlu1 %1130 }
 0x17a   : > { %1164 = vst.msk [vmem:[#allocation3 + $0x3c] sm:$0xf] %vm1148_vm8, %v1131_v22 }
 0x17b   : > { %v1125_v23 = vpop.permute.xlu0 %1124 }
 0x17c   : > { %1161 = vst.msk [vmem:[#allocation3 + $0x30] sm:$0xf] %vm1148_vm8, %v1125_v23 }
 0x17d   : > { %v1257_v24 = vpop.permute.xlu1 %1256 }
 0x17e   : > { %1292 = vst.msk [vmem:[#allocation3 + $0x34] sm:$0xf] %vm1278_vm9, %v1257_v24 }
 0x17f   : > { %v1129_v25 = vpop.permute.xlu0 %1128 }
 0x180   : > { %1163 = vst.msk [vmem:[#allocation3 + $0x38] sm:$0xf] %vm1148_vm8, %v1129_v25 }
 0x181   : > { %v1261_v26 = vpop.permute.xlu1 %1260 }
 0x182   : > { %1294 = vst.msk [vmem:[#allocation3 + $0x3c] sm:$0xf] %vm1278_vm9, %v1261_v26 }
 0x183   : > { %v1255_v27 = vpop.permute.xlu0 %1254 }
 0x184   : > { %1291 = vst.msk [vmem:[#allocation3 + $0x30] sm:$0xf] %vm1278_vm9, %v1255_v27 }
 0x185   : > { %v1386_v28 = vpop.permute.xlu1 %1385 }
 0x186   : > { %1421 = vst.msk [vmem:[#allocation3 + $0x34] sm:$0xf] %vm1407_vm10, %v1386_v28 }
 0x187   : > { %v1259_v29 = vpop.permute.xlu0 %1258 }
 0x188   : > { %1293 = vst.msk [vmem:[#allocation3 + $0x38] sm:$0xf] %vm1278_vm9, %v1259_v29 }
 0x189   : > { %v1390_v6 = vpop.permute.xlu1 %1389 }
 0x18a   : > { %1423 = vst.msk [vmem:[#allocation3 + $0x3c] sm:$0xf] %vm1407_vm10, %v1390_v6 }
 0x18b   : > { %v1384_v41 = vpop.permute.xlu0 %1383 }
 0x18c   : > { %1420 = vst.msk [vmem:[#allocation3 + $0x30] sm:$0xf] %vm1407_vm10, %v1384_v41 }
 0x18d   : > { %v1515_v30 = vpop.permute.xlu1 %1514 }
 0x18e   : > { %1550 = vst.msk [vmem:[#allocation3 + $0x34] sm:$0xf] %vm1536_vm11, %v1515_v30 }
 0x18f   : > { %v1388_v7 = vpop.permute.xlu0 %1387 }
 0x190   : > { %1422 = vst.msk [vmem:[#allocation3 + $0x38] sm:$0xf] %vm1407_vm10, %v1388_v7 }
 0x191   : > { %v1519_v31 = vpop.permute.xlu1 %1518 }
 0x192   : > { %1552 = vst.msk [vmem:[#allocation3 + $0x3c] sm:$0xf] %vm1536_vm11, %v1519_v31 }
 0x193   : > { %v1513_v42 = vpop.permute.xlu0 %1512 }
 0x194   : > { %1549 = vst.msk [vmem:[#allocation3 + $0x30] sm:$0xf] %vm1536_vm11, %v1513_v42 }
 0x197   : > { %v1517_v32 = vpop.permute.xlu0 %1516 }
 0x198   : > { %1551 = vst.msk [vmem:[#allocation3 + $0x38] sm:$0xf] %vm1536_vm11, %v1517_v32 }
 0x19b   : > { %v2466_v33 = vld [vmem:[#allocation3 + $0x30] sm:$0xff]  }
 0x19c   : > { %2390 = vmatprep.mubr.msk.bf16.mxu1 %vm1645_vm12, %v2466_v33 }
 0x19f   : > { %v2467_v34 = vld [vmem:[#allocation3 + $0x38] sm:$0xff]  }
 0x1a0   : > { %2391 = vmatmul.mubr.msk.bf16.gmra.mxu1 %vm1645_vm12, %v2467_v34 }
 0x1a4   : > { %v2380_v35 = vpop.f32.mrf.mxu0 }
 0x1a5   : > { %1773 = vst.msk [vmem:[%s3168_s27 + $0x10] sm:$0xff] %vm400_vm1, %v2380_v35  ;;  %v1827_v40 = vmul.f32 %v2380_v35, %v2380_v35  ;;  %v1790_v14 = vsel %vm400_vm1, %v2380_v35, 0.0 }
 0x1a6   : > { %v1708_v36 = vpop.f32.mrf.mxu0 }
 0x1a7   : > { %1771 = vst.msk [vmem:[%s3168_s27] sm:$0xff] %vm400_vm1, %v1708_v36  ;;  %v1825_v38 = vmul.f32 %v1708_v36, %v1708_v36  ;;  %v1787_v1 = vsel %vm400_vm1, %v1708_v36, 0.0  ;;  %v1844_v49 = vsel %vm400_vm1, %v1827_v40, 0.0 }
 0x1a8   : > { %v2381_v37 = vpop.f32.mrf.mxu0 }
 0x1a9   : > { %1774 = vst.msk [vmem:[%s3168_s27 + $0x18] sm:$0xff] %vm400_vm1, %v2381_v37  ;;  %v1841_v15 = vsel %vm400_vm1, %v1825_v38, 0.0  ;;  %v1828_v45 = vmul.f32 %v2381_v37, %v2381_v37  ;;  %v1792_v50 = vsel %vm400_vm1, %v2381_v37, 0.0 }
 0x1aa   : > { %v1711_v39 = vpop.f32.mrf.mxu0 }
 0x1ab   : > { %1772 = vst.msk [vmem:[%s3168_s27 + $0x8] sm:$0xff] %vm400_vm1, %v1711_v39  ;;  %v1788_v2 = vsel %vm400_vm1, %v1711_v39, 0.0  ;;  %v1826_v43 = vmul.f32 %v1711_v39, %v1711_v39  ;;  %v1846_v53 = vsel %vm400_vm1, %v1828_v45, 0.0 }
 0x1ac   : > { %v1789_v44 = vadd.f32 %v1788_v2, %v1787_v1 }
 0x1ad   : > { %v1842_v46 = vsel %vm400_vm1, %v1826_v43, 0.0 }
 0x1ae   : > { %v1791_v47 = vadd.f32 %v1790_v14, %v1789_v44  ;;  %v1843_v48 = vadd.f32 %v1842_v46, %v1841_v15 }
 0x1b0   : > { %v1845_v51 = vadd.f32 %v1844_v49, %v1843_v48  ;;  %v1793_v52 = vadd.f32 %v1792_v50, %v1791_v47 }
 0x1b2   : > { %v1847_v54 = vadd.f32 %v1846_v53, %v1845_v51 }
 0x1e4   : > { %v2384_v55 = vpop.f32.mrf.mxu0 }
 0x1e5   : > { %1777 = vst.msk [vmem:[%s3168_s27 + $0x30] sm:$0xff] %vm400_vm1, %v2384_v55  ;;  %v1831_v3 = vmul.f32 %v2384_v55, %v2384_v55  ;;  %v1798_v8 = vsel %vm400_vm1, %v2384_v55, 0.0 }
 0x1e6   : > { %v1724_v56 = vpop.f32.mrf.mxu0 }
 0x1e7   : > { %1775 = vst.msk [vmem:[%s3168_s27 + $0x20] sm:$0xff] %vm400_vm1, %v1724_v56  ;;  %v1794_v57 = vsel %vm400_vm1, %v1724_v56, 0.0  ;;  %v1829_v63 = vmul.f32 %v1724_v56, %v1724_v56  ;;  %v1852_v20 = vsel %vm400_vm1, %v1831_v3, 0.0 }
 0x1e8   : > { %v1795_v58 = vadd.f32 %v1794_v57, %v1793_v52  ;;  %v2385_v59 = vpop.f32.mrf.mxu0 }
 0x1e9   : > { %v1848_v60 = vsel %vm400_vm1, %v1829_v63, 0.0  ;;  %1778 = vst.msk [vmem:[%s3168_s27 + $0x38] sm:$0xff] %vm400_vm1, %v2385_v59  ;;  %v1832_v19 = vmul.f32 %v2385_v59, %v2385_v59  ;;  %v1800_v12 = vsel %vm400_vm1, %v2385_v59, 0.0 }
 0x1ea   : > { %v1849_v61 = vadd.f32 %v1848_v60, %v1847_v54  ;;  %v1727_v0 = vpop.f32.mrf.mxu0 }
 0x1eb   : > { %1776 = vst.msk [vmem:[%s3168_s27 + $0x28] sm:$0xff] %vm400_vm1, %v1727_v0  ;;  %v1796_v62 = vsel %vm400_vm1, %v1727_v0, 0.0  ;;  %v1830_v4 = vmul.f32 %v1727_v0, %v1727_v0  ;;  %v1854_v17 = vsel %vm400_vm1, %v1832_v19, 0.0 }
 0x1ec   : > { %v1797_v5 = vadd.f32 %v1796_v62, %v1795_v58 }
 0x1ed   : > { %v1850_v9 = vsel %vm400_vm1, %v1830_v4, 0.0 }
 0x1ee   : > { %v1799_v10 = vadd.f32 %v1798_v8, %v1797_v5  ;;  %v1851_v11 = vadd.f32 %v1850_v9, %v1849_v61 }
 0x1f0   : > { %v1853_v13 = vadd.f32 %v1852_v20, %v1851_v11  ;;  %v1801_v16 = vadd.f32 %v1800_v12, %v1799_v10 }
 0x1f2   : > { %v1855_v18 = vadd.f32 %v1854_v17, %v1853_v13 }
 0x224   : > { %v2388_v21 = vpop.f32.mrf.mxu1 }
 0x225   : > { %1781 = vst.msk [vmem:[%s3168_s27 + $0x50] sm:$0xff] %vm400_vm1, %v2388_v21  ;;  %v1835_v31 = vmul.f32 %v2388_v21, %v2388_v21  ;;  %v1806_v32 = vsel %vm400_vm1, %v2388_v21, 0.0 }
 0x226   : > { %v1740_v22 = vpop.f32.mrf.mxu1 }
 0x227   : > { %1779 = vst.msk [vmem:[%s3168_s27 + $0x40] sm:$0xff] %vm400_vm1, %v1740_v22  ;;  %v1833_v25 = vmul.f32 %v1740_v22, %v1740_v22  ;;  %v1802_v26 = vsel %vm400_vm1, %v1740_v22, 0.0  ;;  %v1860_v35 = vsel %vm400_vm1, %v1835_v31, 0.0 }
 0x228   : > { %v2389_v23 = vpop.f32.mrf.mxu1  ;;  %v1803_v6 = vadd.f32 %v1802_v26, %v1801_v16 }
 0x229   : > { %1782 = vst.msk [vmem:[%s3168_s27 + $0x58] sm:$0xff] %vm400_vm1, %v2389_v23  ;;  %v1856_v28 = vsel %vm400_vm1, %v1833_v25, 0.0  ;;  %v1836_v36 = vmul.f32 %v2389_v23, %v2389_v23  ;;  %v1808_v39 = vsel %vm400_vm1, %v2389_v23, 0.0 }
 0x22a   : > { %v1743_v24 = vpop.f32.mrf.mxu1  ;;  %v1857_v30 = vadd.f32 %v1856_v28, %v1855_v18 }
 0x22b   : > { %1780 = vst.msk [vmem:[%s3168_s27 + $0x48] sm:$0xff] %vm400_vm1, %v1743_v24  ;;  %v1834_v27 = vmul.f32 %v1743_v24, %v1743_v24  ;;  %v1804_v29 = vsel %vm400_vm1, %v1743_v24, 0.0  ;;  %v1862_v44 = vsel %vm400_vm1, %v1836_v36, 0.0 }
 0x22c   : > { %v1805_v7 = vadd.f32 %v1804_v29, %v1803_v6 }
 0x22d   : > { %v1858_v41 = vsel %vm400_vm1, %v1834_v27, 0.0 }
 0x22e   : > { %v1859_v42 = vadd.f32 %v1858_v41, %v1857_v30  ;;  %v1807_v33 = vadd.f32 %v1806_v32, %v1805_v7 }
 0x230   : > { %v1861_v37 = vadd.f32 %v1860_v35, %v1859_v42  ;;  %v1809_v2 = vadd.f32 %v1808_v39, %v1807_v33 }
 0x232   : > { %v1863_v45 = vadd.f32 %v1862_v44, %v1861_v37 }
 0x260   : > { %v2392_v34 = vpop.f32.mrf.mxu1 }
 0x261   : > { %1785 = vst.msk [vmem:[%s3168_s27 + $0x70] sm:$0xff] %vm400_vm1, %v2392_v34  ;;  %v1839_v47 = vmul.f32 %v2392_v34, %v2392_v34  ;;  %v1814_v52 = vsel %vm400_vm1, %v2392_v34, 0.0 }
 0x262   : > { %v1756_v38 = vpop.f32.mrf.mxu1 }
 0x263   : > { %1783 = vst.msk [vmem:[%s3168_s27 + $0x60] sm:$0xff] %vm400_vm1, %v1756_v38  ;;  %v1810_v40 = vsel %vm400_vm1, %v1756_v38, 0.0  ;;  %v1837_v1 = vmul.f32 %v1756_v38, %v1756_v38  ;;  %v1868_v57 = vsel %vm400_vm1, %v1839_v47, 0.0 }
 0x264   : > { %v2393_v43 = vpop.f32.mrf.mxu1  ;;  %v1811_v15 = vadd.f32 %v1810_v40, %v1809_v2 }
 0x265   : > { %v1864_v14 = vsel %vm400_vm1, %v1837_v1, 0.0  ;;  %1786 = vst.msk [vmem:[%s3168_s27 + $0x78] sm:$0xff] %vm400_vm1, %v2393_v43  ;;  %v1840_v53 = vmul.f32 %v2393_v43, %v2393_v43  ;;  %v1816_v63 = vsel %vm400_vm1, %v2393_v43, 0.0 }
 0x266   : > { %v1759_v46 = vpop.f32.mrf.mxu1  ;;  %v1865_v50 = vadd.f32 %v1864_v14, %v1863_v45 }
 0x267   : > { %1784 = vst.msk [vmem:[%s3168_s27 + $0x68] sm:$0xff] %vm400_vm1, %v1759_v46  ;;  %v1812_v48 = vsel %vm400_vm1, %v1759_v46, 0.0  ;;  %v1838_v49 = vmul.f32 %v1759_v46, %v1759_v46  ;;  %v1870_v60 = vsel %vm400_vm1, %v1840_v53, 0.0 }
 0x268   : > { %v1813_v51 = vadd.f32 %v1812_v48, %v1811_v15 }
 0x269   : > { %v1866_v54 = vsel %vm400_vm1, %v1838_v49, 0.0 }
 0x26a   : > { %v1815_v55 = vadd.f32 %v1814_v52, %v1813_v51  ;;  %v1867_v56 = vadd.f32 %v1866_v54, %v1865_v50 }
 0x26c   : > { %v1817_v58 = vadd.f32 %v1816_v63, %v1815_v55  ;;  %v1869_v59 = vadd.f32 %v1868_v57, %v1867_v56 }
 0x26e   : > { %v1818_v61 = vrot.slane %v1817_v58, 4  ;;  %v1871_v0 = vadd.f32 %v1870_v60, %v1869_v59 }
 0x270   : > { %v1819_v3 = vadd.f32 %v1818_v61, %v1817_v58  ;;  %v1872_v62 = vrot.slane %v1871_v0, 4 }
 0x272   : > { %v1820_v4 = vrot.slane %v1819_v3, 2  ;;  %v1873_v5 = vadd.f32 %v1872_v62, %v1871_v0 }
 0x274   : > { %v1821_v8 = vadd.f32 %v1820_v4, %v1819_v3  ;;  %v1874_v19 = vrot.slane %v1873_v5, 2 }
 0x276   : > { %v1822_v9 = vrot.slane %v1821_v8, 1  ;;  %v1875_v10 = vadd.f32 %v1874_v19, %v1873_v5 }
 0x278   : > { %v1823_v11 = vadd.f32 %v1822_v9, %v1821_v8  ;;  %v1876_v20 = vrot.slane %v1875_v10, 1 }
 0x27a   : > { %1824 = vst.msk [vmem:[%s270_s28] sm:$0x1] %vm379_vm0, %v1823_v11  ;;  %v1877_v12 = vadd.f32 %v1876_v20, %v1875_v10 }
 0x27c   : > { %1878 = vst.msk [vmem:[%s270_s28 + $0x1] sm:$0x1] %vm379_vm0, %v1877_v12 }
 0x27d PF: > { %s16_s22 = sadd.s32 1, %s2506_s22   ;;  %s3263_s18 = smov %s2498_s20 }
 0x27e   : > { %p13_p10 = scmp.ge.s32.totalorder %s16_s22, 6   ;;  %s3264_s19 = smov %s2502_s21 }
 0x27f   : > { %s3265_s20 = smov %s3268_s23  ;;  %s3266_s21 = smov %s3272_s24 }
 0x280   :  { %15 = sbr.rel (!%p13_p10) target bundleno = 3 (0x3), region = 84 }

</bundles_post_ra>
